<compile_context>
chip_gen: v7x
topology: tpu7x:2x2x1
jax: 0.10.0
libtpu: 0.0.40
codegen_flags: <defaults>
</compile_context>

<pallas_src>
import functools

import jax
import jax.numpy as jnp
from jax.experimental import pallas as pl
from jax.experimental.pallas import tpu as pltpu


# --------------------------------------------------------------------------- #
# Kernel
# --------------------------------------------------------------------------- #
def _fusion_kernel(t_ref, wvg_ref, wfc_ref, wg1_ref, consts_ref, out_ref,
                   *, eps, d_model):
    f32 = jnp.float32
    t = t_ref[...].astype(f32)
    # MXU operands in the (bf16) weight dtype; accumulate in f32.
    t_mx = t_ref[...].astype(wvg_ref.dtype)

    bv    = consts_ref[0:1, :]
    bfc   = consts_ref[1:2, :]
    bg    = consts_ref[2:3, :]
    gamma = consts_ref[3:4, :]
    beta  = consts_ref[4:5, :]

    # Fused t-side matmul: [v | gate_logits_t] = t @ [Wv | Wg2].
    vg = jnp.dot(t_mx, wvg_ref[...], preferred_element_type=f32)
    v = vg[:, :d_model] + bv          # == attention output (softmax over len-1 == 1)
    g2 = vg[:, d_model:]              # t's contribution to the gate logits

    # fc projection + residual + LayerNorm (one-pass mean / E[x^2] variance).
    attn = jnp.dot(v.astype(wfc_ref.dtype), wfc_ref[...],
                   preferred_element_type=f32) + bfc
    x = attn + t
    mean = jnp.mean(x, axis=-1, keepdims=True)
    mean_sq = jnp.mean(x * x, axis=-1, keepdims=True)
    var = jnp.maximum(mean_sq - mean * mean, 0.0)
    xn = (x - mean) * jax.lax.rsqrt(var + eps)
    xn = xn * gamma + beta

    # Gate: sigmoid(concat([xn, t]) @ Wg + bg) split into xn@Wg1 + t@Wg2.
    gate_logits = jnp.dot(xn.astype(wg1_ref.dtype), wg1_ref[...],
                          preferred_element_type=f32) + g2 + bg
    gate = jax.nn.sigmoid(gate_logits)

    # out = gate*xn + (1-gate)*t, written as t + gate*(xn - t) (one fewer VALU op).
    out_ref[...] = (t + gate * (xn - t)).astype(out_ref.dtype)


# --------------------------------------------------------------------------- #
# Tiling / VMEM heuristics
# --------------------------------------------------------------------------- #
def _tpu_vmem_capacity_bytes(default=128 * 1024 * 1024):
    try:
        info = pltpu.get_tpu_info()
        cap = getattr(info, "vmem_capacity_bytes", None)
        if cap:
            return int(cap)
    except Exception:
        pass
    return default


def _act_bytes_per_row(d_model, io_bytes):
    # double-buffered in+out activation tiles + generous f32 intermediates
    # (t, vg (2d wide), x/xn, gate, ...).
    return 4 * d_model * io_bytes + 12 * d_model * 4


def _pick_block_b(batch, sublane, fits):
    """Largest batch tile that (a) divides batch, (b) is sublane-aligned,
    (c) fits the VMEM budget, preferring an even number of grid steps so v7x's
    two TensorCores stay balanced (harmless on v5e/v6e)."""
    divisors = [d for d in range(1, batch + 1) if batch % d == 0]
    aligned = [d for d in divisors if d % sublane == 0 or d == batch] or divisors
    fitting = [d for d in aligned if fits(d)] or [min(aligned)]
    even_steps = [d for d in fitting if (batch // d) >= 2 and (batch // d) % 2 == 0]
    multi_step = [d for d in fitting if (batch // d) >= 2]
    return max(even_steps or multi_step or fitting)


# --------------------------------------------------------------------------- #
# Wrapper
# --------------------------------------------------------------------------- #
def enhanced_cross_attention_fusion(transformer_output, lstm_output, params, *,
                                    num_heads=8, eps=1e-5, block_b=None,
                                    vmem_limit_bytes=None,
                                    donate_transformer_output=False,
                                    single_buffer_weights=True):
    """params: dict with
         w_vg   (d, 2d)  bf16   -- [Wv | Wg2] pre-transposed to (in, out)
         wfc    (d, d)   bf16
         wg1    (d, d)   bf16
         consts (8, d)   f32    -- rows: bv, bfc, bg, gamma, beta, 0, 0, 0

    lstm_output is accepted for interface parity with the PyTorch module but has
    no effect on the output (softmax over a length-1 key axis is exactly 1).
    Activations may be passed in bf16 to halve HBM traffic; LN / gate / residual
    math stays f32 inside the kernel.
    """
    del lstm_output
    B, d_model = transformer_output.shape
    assert d_model % num_heads == 0, "d_model must be divisible by num_heads"

    io_bytes = jnp.dtype(transformer_output.dtype).itemsize
    w_bytes = jnp.dtype(params["w_vg"].dtype).itemsize
    weight_bytes = 4 * d_model * d_model * w_bytes + 8 * d_model * 4  # single-buffered

    cap = _tpu_vmem_capacity_bytes()
    limit = int(vmem_limit_bytes) if vmem_limit_bytes is not None else int(cap * 0.70)
    budget = int(limit * 0.85)  # headroom inside the limit for Mosaic scratch

    if weight_bytes > budget:
        # TODO(synk): streamed-weight fallback (weights in pl.ANY + in-kernel
        # pltpu.emit_pipeline over N-column weight blocks) for d_model too large
        # for resident single-buffered weights (v7x 64 MiB/TC: d_model >~ 2300).
        raise ValueError(
            f"d_model={d_model}: single-buffered weights ({weight_bytes} B) exceed "
            f"the VMEM budget ({budget} B); streamed-weight fallback not implemented.")

    def fits(tb_):
        return weight_bytes + tb_ * _act_bytes_per_row(d_model, io_bytes) <= budget

    sublane = 8 * max(1, 4 // max(io_bytes, 1))   # 8 for f32, 16 for bf16
    tb = block_b if block_b is not None else _pick_block_b(B, sublane, fits)
    assert B % tb == 0, f"block_b={tb} must divide batch={B}"

    out_dtype = transformer_output.dtype
    if donate_transformer_output:
        # Aliasing is only safe because in/out tiles share block shape + index_map
        # and dtype (per-tile read-then-write pipeline).
        assert out_dtype == transformer_output.dtype

    kernel = functools.partial(_fusion_kernel, eps=eps, d_model=d_model)

    def _call(single_buffer):
        if single_buffer:
            # Constant-index blocks: second pipeline buffer is pure waste.
            def const_spec(shape):
                return pl.BlockSpec(shape, lambda i: (0, 0),
                                    pipeline_mode=pl.Buffered(1))
        else:
            def const_spec(shape):
                return pl.BlockSpec(shape, lambda i: (0, 0))

        grid_spec = pltpu.PrefetchScalarGridSpec(
            num_scalar_prefetch=0,
            grid=(B // tb,),
            in_specs=[
                pl.BlockSpec((tb, d_model), lambda i: (i, 0)),   # transformer_output
                const_spec((d_model, 2 * d_model)),              # [Wv | Wg2]
                const_spec((d_model, d_model)),                  # Wfc
                const_spec((d_model, d_model)),                  # Wg1
                const_spec((8, d_model)),                        # packed biases / LN
            ],
            out_specs=pl.BlockSpec((tb, d_model), lambda i: (i, 0)),
        )
        return pl.pallas_call(
            kernel,
            out_shape=jax.ShapeDtypeStruct((B, d_model), out_dtype),
            grid_spec=grid_spec,
            input_output_aliases={0: 0} if donate_transformer_output else {},
            compiler_params=pltpu.CompilerParams(
                dimension_semantics=("parallel",),
                vmem_limit_bytes=limit),
        )(transformer_output, params["w_vg"], params["wfc"], params["wg1"],
          params["consts"])

    if single_buffer_weights:
        try:
            return jax.block_until_ready(_call(True))
        except Exception:
            # Fallback for JAX builds where Buffered(1) on a grid-level BlockSpec
            # is rejected: default (double-buffered) constant blocks.
            return _call(False)
    return _call(False)


# --------------------------------------------------------------------------- #
# Params + reference
# --------------------------------------------------------------------------- #
def init_params(key, hidden_size, d_model, weight_dtype=jnp.bfloat16):
    del hidden_size  # only the (dead) query layer depended on it
    ks = jax.random.split(key, 6)
    std = 0.02
    wv  = jax.random.normal(ks[0], (d_model, d_model), jnp.float32) * std
    wfc = jax.random.normal(ks[1], (d_model, d_model), jnp.float32) * std
    wg1 = jax.random.normal(ks[2], (d_model, d_model), jnp.float32) * std
    wg2 = jax.random.normal(ks[3], (d_model, d_model), jnp.float32) * std
    bv  = jax.random.normal(ks[4], (d_model,), jnp.float32) * std
    bfc = jax.random.normal(ks[5], (d_model,), jnp.float32) * std

    consts = jnp.zeros((8, d_model), jnp.float32)
    consts = (consts.at[0].set(bv)                     # bv
                    .at[1].set(bfc)                    # bfc
                    .at[2].set(jnp.zeros((d_model,)))  # bg
                    .at[3].set(jnp.ones((d_model,)))   # gamma
                    .at[4].set(jnp.zeros((d_model,)))) # beta
    return {
        # query/key layer parameters are omitted: mathematically dead
        # (softmax over a length-1 key axis is identically 1).
        "w_vg": jnp.concatenate([wv, wg2], axis=1).astype(weight_dtype),
        "wfc":  wfc.astype(weight_dtype),
        "wg1":  wg1.astype(weight_dtype),
        "consts": consts,
    }


def _reference(transformer_output, lstm_output, p, eps=1e-5):
    # Pure-JAX reference mirroring the PyTorch forward (eval mode); the query
    # path has no effect on the output, so lstm_output is unused.
    del lstm_output
    f32 = jnp.float32
    d = transformer_output.shape[-1]
    t = transformer_output.astype(f32)
    wv, wg2 = p["w_vg"][:, :d].astype(f32), p["w_vg"][:, d:].astype(f32)
    wfc, wg1 = p["wfc"].astype(f32), p["wg1"].astype(f32)
    bv, bfc, bg, gamma, beta = (p["consts"][i] for i in range(5))

    value = t @ wv + bv
    attn = value @ wfc + bfc
    x = attn + t
    mean = x.mean(-1, keepdims=True)
    var = ((x - mean) ** 2).mean(-1, keepdims=True)
    xn = (x - mean) / jnp.sqrt(var + eps) * gamma + beta
    gate = jax.nn.sigmoid(xn @ wg1 + t @ wg2 + bg)
    return gate * xn + (1 - gate) * t


# --------------------------------------------------------------------------- #
# Demo / self-test
# --------------------------------------------------------------------------- #
if __name__ == "__main__":
    key = jax.random.PRNGKey(0)
    k1, k2, k3 = jax.random.split(key, 3)

    # Lane-dense d_model (multiple of 128); batch gives 2 grid steps of 128 rows
    # (even step count -> v7x megacore-friendly).
    batch = 256
    hidden_size = 128
    d_model = 128
    num_heads = 8

    t_f32 = jax.random.normal(k1, (batch, d_model), jnp.float32)
    lstm_output = jax.random.normal(k2, (batch, hidden_size), jnp.float32)
    params = init_params(k3, hidden_size, d_model)

    # Stream activations as bf16 (halves HBM traffic); LN/gate math stays f32.
    t_bf16 = t_f32.astype(jnp.bfloat16)

    out = enhanced_cross_attention_fusion(
        t_bf16, lstm_output, params, num_heads=num_heads)
    out = jax.block_until_ready(out)

    ref = _reference(t_bf16, lstm_output, params)
    assert out.shape == (batch, d_model)
    # bf16 weights / activations vs. f32 math in the reference -> loose tolerance.
    err = float(jnp.max(jnp.abs(out.astype(jnp.float32) - ref)))
    assert jnp.allclose(out.astype(jnp.float32), ref, atol=5e-2, rtol=5e-2), err

    print("KERNEL_OK")
</pallas_src>

<mosaic_0001>
module attributes {stable_mosaic.version = 11 : i64} {
  func.func @_fusion_kernel(%arg0: i32, %arg1: memref<128x128xbf16, #tpu.memory_space<vmem>>, %arg2: memref<128x256xbf16, #tpu.memory_space<vmem>>, %arg3: memref<128x128xbf16, #tpu.memory_space<vmem>>, %arg4: memref<128x128xbf16, #tpu.memory_space<vmem>>, %arg5: memref<8x128xf32, #tpu.memory_space<vmem>>, %arg6: memref<128x128xbf16, #tpu.memory_space<vmem>>) attributes {dimension_semantics = [#tpu.dimension_semantics<parallel>], iteration_bounds = array<i64: 2>, scalar_prefetch = 0 : i64, scratch_operands = 0 : i64, tpu.core_type = #tpu.core_type<tc>, window_params = [{transform_indices = @transform_0, window_bounds = array<i64: 128, 128>}, {pipeline_mode = #tpu.pipeline_mode<synchronous>, transform_indices = @transform_1, window_bounds = array<i64: 128, 256>}, {pipeline_mode = #tpu.pipeline_mode<synchronous>, transform_indices = @transform_2, window_bounds = array<i64: 128, 128>}, {pipeline_mode = #tpu.pipeline_mode<synchronous>, transform_indices = @transform_3, window_bounds = array<i64: 128, 128>}, {pipeline_mode = #tpu.pipeline_mode<synchronous>, transform_indices = @transform_4, window_bounds = array<i64: 8, 128>}, {transform_indices = @transform_5, window_bounds = array<i64: 128, 128>}]} {
    %c0 = arith.constant 0 : index
    %c0_0 = arith.constant 0 : index
    %0 = vector.load %arg1[%c0, %c0_0] : memref<128x128xbf16, #tpu.memory_space<vmem>>, vector<128x128xbf16>
    %1 = arith.extf %0 : vector<128x128xbf16> to vector<128x128xf32>
    %c0_1 = arith.constant 0 : index
    %c0_2 = arith.constant 0 : index
    %2 = vector.load %arg1[%c0_1, %c0_2] : memref<128x128xbf16, #tpu.memory_space<vmem>>, vector<128x128xbf16>
    %c0_3 = arith.constant 0 : index
    %c0_4 = arith.constant 0 : index
    %3 = vector.load %arg5[%c0_3, %c0_4] : memref<8x128xf32, #tpu.memory_space<vmem>>, vector<1x128xf32>
    %c1 = arith.constant 1 : index
    %c0_5 = arith.constant 0 : index
    %4 = vector.load %arg5[%c1, %c0_5] : memref<8x128xf32, #tpu.memory_space<vmem>>, vector<1x128xf32>
    %c2 = arith.constant 2 : index
    %c0_6 = arith.constant 0 : index
    %5 = vector.load %arg5[%c2, %c0_6] : memref<8x128xf32, #tpu.memory_space<vmem>>, vector<1x128xf32>
    %c3 = arith.constant 3 : index
    %c0_7 = arith.constant 0 : index
    %6 = vector.load %arg5[%c3, %c0_7] : memref<8x128xf32, #tpu.memory_space<vmem>>, vector<1x128xf32>
    %c4 = arith.constant 4 : index
    %c0_8 = arith.constant 0 : index
    %7 = vector.load %arg5[%c4, %c0_8] : memref<8x128xf32, #tpu.memory_space<vmem>>, vector<1x128xf32>
    %c0_9 = arith.constant 0 : index
    %c0_10 = arith.constant 0 : index
    %8 = vector.load %arg2[%c0_9, %c0_10] : memref<128x256xbf16, #tpu.memory_space<vmem>>, vector<128x256xbf16>
    %cst = arith.constant dense<0.000000e+00> : vector<128x256xf32>
    %9 = tpu.matmul %2, %8, %cst {dimension_numbers = #tpu.dot_dimension_numbers<[1], [0], [0], [1], [0, 0, 1, 1], [], []>} : vector<128x128xbf16>, vector<128x256xbf16>, vector<128x256xf32> -> vector<128x256xf32>
    %10 = vector.extract_strided_slice %9 {offsets = [0, 0], sizes = [128, 128], strides = [1, 1]} : vector<128x256xf32> to vector<128x128xf32>
    %11 = vector.broadcast %3 : vector<1x128xf32> to vector<128x128xf32>
    %12 = arith.addf %10, %11 : vector<128x128xf32>
    %13 = vector.extract_strided_slice %9 {offsets = [0, 128], sizes = [128, 128], strides = [1, 1]} : vector<128x256xf32> to vector<128x128xf32>
    %14 = arith.truncf %12 : vector<128x128xf32> to vector<128x128xbf16>
    %c0_11 = arith.constant 0 : index
    %c0_12 = arith.constant 0 : index
    %15 = vector.load %arg3[%c0_11, %c0_12] : memref<128x128xbf16, #tpu.memory_space<vmem>>, vector<128x128xbf16>
    %cst_13 = arith.constant dense<0.000000e+00> : vector<128x128xf32>
    %16 = tpu.matmul %14, %15, %cst_13 {dimension_numbers = #tpu.dot_dimension_numbers<[1], [0], [0], [1], [0, 0, 1, 1], [], []>} : vector<128x128xbf16>, vector<128x128xbf16>, vector<128x128xf32> -> vector<128x128xf32>
    %17 = vector.broadcast %4 : vector<1x128xf32> to vector<128x128xf32>
    %18 = arith.addf %16, %17 : vector<128x128xf32>
    %19 = arith.addf %18, %1 : vector<128x128xf32>
    %cst_14 = arith.constant dense<0.000000e+00> : vector<128xf32>
    %20 = vector.multi_reduction <add>, %19, %cst_14 [1] : vector<128x128xf32> to vector<128xf32>
    %21 = vector.shape_cast %20 : vector<128xf32> to vector<128x1xf32>
    %cst_15 = arith.constant 1.280000e+02 : f32
    %22 = vector.broadcast %cst_15 : f32 to vector<128x1xf32>
    %23 = arith.divf %21, %22 : vector<128x1xf32>
    %24 = arith.mulf %19, %19 : vector<128x128xf32>
    %cst_16 = arith.constant dense<0.000000e+00> : vector<128xf32>
    %25 = vector.multi_reduction <add>, %24, %cst_16 [1] : vector<128x128xf32> to vector<128xf32>
    %26 = vector.shape_cast %25 : vector<128xf32> to vector<128x1xf32>
    %cst_17 = arith.constant 1.280000e+02 : f32
    %27 = vector.broadcast %cst_17 : f32 to vector<128x1xf32>
    %28 = arith.divf %26, %27 : vector<128x1xf32>
    %29 = arith.mulf %23, %23 : vector<128x1xf32>
    %30 = arith.subf %28, %29 : vector<128x1xf32>
    %cst_18 = arith.constant 0.000000e+00 : f32
    %31 = vector.broadcast %cst_18 : f32 to vector<128x1xf32>
    %32 = arith.maximumf %30, %31 : vector<128x1xf32>
    %33 = vector.broadcast %23 : vector<128x1xf32> to vector<128x128xf32>
    %34 = arith.subf %19, %33 : vector<128x128xf32>
    %cst_19 = arith.constant 9.99999974E-6 : f32
    %35 = vector.broadcast %cst_19 : f32 to vector<128x1xf32>
    %36 = arith.addf %32, %35 : vector<128x1xf32>
    %37 = math.rsqrt %36 : vector<128x1xf32>
    %38 = vector.broadcast %37 : vector<128x1xf32> to vector<128x128xf32>
    %39 = arith.mulf %34, %38 : vector<128x128xf32>
    %40 = vector.broadcast %6 : vector<1x128xf32> to vector<128x128xf32>
    %41 = arith.mulf %39, %40 : vector<128x128xf32>
    %42 = vector.broadcast %7 : vector<1x128xf32> to vector<128x128xf32>
    %43 = arith.addf %41, %42 : vector<128x128xf32>
    %44 = arith.truncf %43 : vector<128x128xf32> to vector<128x128xbf16>
    %c0_20 = arith.constant 0 : index
    %c0_21 = arith.constant 0 : index
    %45 = vector.load %arg4[%c0_20, %c0_21] : memref<128x128xbf16, #tpu.memory_space<vmem>>, vector<128x128xbf16>
    %cst_22 = arith.constant dense<0.000000e+00> : vector<128x128xf32>
    %46 = tpu.matmul %44, %45, %cst_22 {dimension_numbers = #tpu.dot_dimension_numbers<[1], [0], [0], [1], [0, 0, 1, 1], [], []>} : vector<128x128xbf16>, vector<128x128xbf16>, vector<128x128xf32> -> vector<128x128xf32>
    %47 = arith.addf %46, %13 : vector<128x128xf32>
    %48 = vector.broadcast %5 : vector<1x128xf32> to vector<128x128xf32>
    %49 = arith.addf %47, %48 : vector<128x128xf32>
    %50 = arith.negf %49 : vector<128x128xf32>
    %51 = math.exp %50 : vector<128x128xf32>
    %cst_23 = arith.constant 1.000000e+00 : f32
    %52 = vector.broadcast %cst_23 : f32 to vector<128x128xf32>
    %53 = arith.addf %52, %51 : vector<128x128xf32>
    %54 = arith.divf %52, %53 : vector<128x128xf32>
    %55 = arith.subf %43, %1 : vector<128x128xf32>
    %56 = arith.mulf %54, %55 : vector<128x128xf32>
    %57 = arith.addf %1, %56 : vector<128x128xf32>
    %58 = arith.truncf %57 : vector<128x128xf32> to vector<128x128xbf16>
    %c0_24 = arith.constant 0 : index
    %c0_25 = arith.constant 0 : index
    %59 = vector.load %arg6[%c0_24, %c0_25] : memref<128x128xbf16, #tpu.memory_space<vmem>>, vector<128x128xbf16>
    tpu.vector_store %arg6[%c0_24, %c0_25], %58 {strides = array<i32>} : memref<128x128xbf16, #tpu.memory_space<vmem>>, vector<128x128xbf16>,
    return
  }
  func.func @transform_0(%arg0: i32) -> (i32, i32) {
    %c0_i32 = arith.constant 0 : i32
    %c0_i32_0 = arith.constant 0 : i32
    return %arg0, %c0_i32 : i32, i32
  }
  func.func @transform_1(%arg0: i32) -> (i32, i32) {
    %c0_i32 = arith.constant 0 : i32
    %c0_i32_0 = arith.constant 0 : i32
    %c0_i32_1 = arith.constant 0 : i32
    return %c0_i32, %c0_i32_0 : i32, i32
  }
  func.func @transform_2(%arg0: i32) -> (i32, i32) {
    %c0_i32 = arith.constant 0 : i32
    %c0_i32_0 = arith.constant 0 : i32
    %c0_i32_1 = arith.constant 0 : i32
    return %c0_i32, %c0_i32_0 : i32, i32
  }
  func.func @transform_3(%arg0: i32) -> (i32, i32) {
    %c0_i32 = arith.constant 0 : i32
    %c0_i32_0 = arith.constant 0 : i32
    %c0_i32_1 = arith.constant 0 : i32
    return %c0_i32, %c0_i32_0 : i32, i32
  }
  func.func @transform_4(%arg0: i32) -> (i32, i32) {
    %c0_i32 = arith.constant 0 : i32
    %c0_i32_0 = arith.constant 0 : i32
    %c0_i32_1 = arith.constant 0 : i32
    return %c0_i32, %c0_i32_0 : i32, i32
  }
  func.func @transform_5(%arg0: i32) -> (i32, i32) {
    %c0_i32 = arith.constant 0 : i32
    %c0_i32_0 = arith.constant 0 : i32
    return %arg0, %c0_i32 : i32, i32
  }
}

module attributes {stable_mosaic.version = 11 : i64} {
  func.func @_fusion_kernel(%arg0: i32, %arg1: memref<128x128xbf16, #tpu.memory_space<vmem>>, %arg2: memref<128x256xbf16, #tpu.memory_space<vmem>>, %arg3: memref<128x128xbf16, #tpu.memory_space<vmem>>, %arg4: memref<128x128xbf16, #tpu.memory_space<vmem>>, %arg5: memref<8x128xf32, #tpu.memory_space<vmem>>, %arg6: memref<128x128xbf16, #tpu.memory_space<vmem>>) attributes {dimension_semantics = [#tpu.dimension_semantics<parallel>], iteration_bounds = array<i64: 2>, scalar_prefetch = 0 : i64, scratch_operands = 0 : i64, tpu.core_type = #tpu.core_type<tc>, window_params = [{transform_indices = @transform_0, window_bounds = array<i64: 128, 128>}, {pipeline_mode = #tpu.pipeline_mode<synchronous>, transform_indices = @transform_1, window_bounds = array<i64: 128, 256>}, {pipeline_mode = #tpu.pipeline_mode<synchronous>, transform_indices = @transform_2, window_bounds = array<i64: 128, 128>}, {pipeline_mode = #tpu.pipeline_mode<synchronous>, transform_indices = @transform_3, window_bounds = array<i64: 128, 128>}, {pipeline_mode = #tpu.pipeline_mode<synchronous>, transform_indices = @transform_4, window_bounds = array<i64: 8, 128>}, {transform_indices = @transform_5, window_bounds = array<i64: 128, 128>}]} {
    %c0 = arith.constant 0 : index
    %c0_0 = arith.constant 0 : index
    %0 = vector.load %arg1[%c0, %c0_0] : memref<128x128xbf16, #tpu.memory_space<vmem>>, vector<128x128xbf16>
    %1 = arith.extf %0 : vector<128x128xbf16> to vector<128x128xf32>
    %c0_1 = arith.constant 0 : index
    %c0_2 = arith.constant 0 : index
    %2 = vector.load %arg1[%c0_1, %c0_2] : memref<128x128xbf16, #tpu.memory_space<vmem>>, vector<128x128xbf16>
    %c0_3 = arith.constant 0 : index
    %c0_4 = arith.constant 0 : index
    %3 = vector.load %arg5[%c0_3, %c0_4] : memref<8x128xf32, #tpu.memory_space<vmem>>, vector<1x128xf32>
    %c1 = arith.constant 1 : index
    %c0_5 = arith.constant 0 : index
    %4 = vector.load %arg5[%c1, %c0_5] : memref<8x128xf32, #tpu.memory_space<vmem>>, vector<1x128xf32>
    %c2 = arith.constant 2 : index
    %c0_6 = arith.constant 0 : index
    %5 = vector.load %arg5[%c2, %c0_6] : memref<8x128xf32, #tpu.memory_space<vmem>>, vector<1x128xf32>
    %c3 = arith.constant 3 : index
    %c0_7 = arith.constant 0 : index
    %6 = vector.load %arg5[%c3, %c0_7] : memref<8x128xf32, #tpu.memory_space<vmem>>, vector<1x128xf32>
    %c4 = arith.constant 4 : index
    %c0_8 = arith.constant 0 : index
    %7 = vector.load %arg5[%c4, %c0_8] : memref<8x128xf32, #tpu.memory_space<vmem>>, vector<1x128xf32>
    %c0_9 = arith.constant 0 : index
    %c0_10 = arith.constant 0 : index
    %8 = vector.load %arg2[%c0_9, %c0_10] : memref<128x256xbf16, #tpu.memory_space<vmem>>, vector<128x256xbf16>
    %cst = arith.constant dense<0.000000e+00> : vector<128x256xf32>
    %9 = tpu.matmul %2, %8, %cst {dimension_numbers = #tpu.dot_dimension_numbers<[1], [0], [0], [1], [0, 0, 1, 1], [], []>} : vector<128x128xbf16>, vector<128x256xbf16>, vector<128x256xf32> -> vector<128x256xf32>
    %10 = vector.extract_strided_slice %9 {offsets = [0, 0], sizes = [128, 128], strides = [1, 1]} : vector<128x256xf32> to vector<128x128xf32>
    %11 = vector.broadcast %3 : vector<1x128xf32> to vector<128x128xf32>
    %12 = arith.addf %10, %11 : vector<128x128xf32>
    %13 = vector.extract_strided_slice %9 {offsets = [0, 128], sizes = [128, 128], strides = [1, 1]} : vector<128x256xf32> to vector<128x128xf32>
    %14 = arith.truncf %12 : vector<128x128xf32> to vector<128x128xbf16>
    %c0_11 = arith.constant 0 : index
    %c0_12 = arith.constant 0 : index
    %15 = vector.load %arg3[%c0_11, %c0_12] : memref<128x128xbf16, #tpu.memory_space<vmem>>, vector<128x128xbf16>
    %cst_13 = arith.constant dense<0.000000e+00> : vector<128x128xf32>
    %16 = tpu.matmul %14, %15, %cst_13 {dimension_numbers = #tpu.dot_dimension_numbers<[1], [0], [0], [1], [0, 0, 1, 1], [], []>} : vector<128x128xbf16>, vector<128x128xbf16>, vector<128x128xf32> -> vector<128x128xf32>
    %17 = vector.broadcast %4 : vector<1x128xf32> to vector<128x128xf32>
    %18 = arith.addf %16, %17 : vector<128x128xf32>
    %19 = arith.addf %18, %1 : vector<128x128xf32>
    %cst_14 = arith.constant dense<0.000000e+00> : vector<128xf32>
    %20 = vector.multi_reduction <add>, %19, %cst_14 [1] : vector<128x128xf32> to vector<128xf32>
    %21 = vector.shape_cast %20 : vector<128xf32> to vector<128x1xf32>
    %cst_15 = arith.constant 1.280000e+02 : f32
    %22 = vector.broadcast %cst_15 : f32 to vector<128x1xf32>
    %23 = arith.divf %21, %22 : vector<128x1xf32>
    %24 = arith.mulf %19, %19 : vector<128x128xf32>
    %cst_16 = arith.constant dense<0.000000e+00> : vector<128xf32>
    %25 = vector.multi_reduction <add>, %24, %cst_16 [1] : vector<128x128xf32> to vector<128xf32>
    %26 = vector.shape_cast %25 : vector<128xf32> to vector<128x1xf32>
    %cst_17 = arith.constant 1.280000e+02 : f32
    %27 = vector.broadcast %cst_17 : f32 to vector<128x1xf32>
    %28 = arith.divf %26, %27 : vector<128x1xf32>
    %29 = arith.mulf %23, %23 : vector<128x1xf32>
    %30 = arith.subf %28, %29 : vector<128x1xf32>
    %cst_18 = arith.constant 0.000000e+00 : f32
    %31 = vector.broadcast %cst_18 : f32 to vector<128x1xf32>
    %32 = arith.maximumf %30, %31 : vector<128x1xf32>
    %33 = vector.broadcast %23 : vector<128x1xf32> to vector<128x128xf32>
    %34 = arith.subf %19, %33 : vector<128x128xf32>
    %cst_19 = arith.constant 9.99999974E-6 : f32
    %35 = vector.broadcast %cst_19 : f32 to vector<128x1xf32>
    %36 = arith.addf %32, %35 : vector<128x1xf32>
    %37 = math.rsqrt %36 : vector<128x1xf32>
    %38 = vector.broadcast %37 : vector<128x1xf32> to vector<128x128xf32>
    %39 = arith.mulf %34, %38 : vector<128x128xf32>
    %40 = vector.broadcast %6 : vector<1x128xf32> to vector<128x128xf32>
    %41 = arith.mulf %39, %40 : vector<128x128xf32>
    %42 = vector.broadcast %7 : vector<1x128xf32> to vector<128x128xf32>
    %43 = arith.addf %41, %42 : vector<128x128xf32>
    %44 = arith.truncf %43 : vector<128x128xf32> to vector<128x128xbf16>
    %c0_20 = arith.constant 0 : index
    %c0_21 = arith.constant 0 : index
    %45 = vector.load %arg4[%c0_20, %c0_21] : memref<128x128xbf16, #tpu.memory_space<vmem>>, vector<128x128xbf16>
    %cst_22 = arith.constant dense<0.000000e+00> : vector<128x128xf32>
    %46 = tpu.matmul %44, %45, %cst_22 {dimension_numbers = #tpu.dot_dimension_numbers<[1], [0], [0], [1], [0, 0, 1, 1], [], []>} : vector<128x128xbf16>, vector<128x128xbf16>, vector<128x128xf32> -> vector<128x128xf32>
    %47 = arith.addf %46, %13 : vector<128x128xf32>
    %48 = vector.broadcast %5 : vector<1x128xf32> to vector<128x128xf32>
    %49 = arith.addf %47, %48 : vector<128x128xf32>
    %50 = arith.negf %49 : vector<128x128xf32>
    %51 = math.exp %50 : vector<128x128xf32>
    %cst_23 = arith.constant 1.000000e+00 : f32
    %52 = vector.broadcast %cst_23 : f32 to vector<128x128xf32>
    %53 = arith.addf %52, %51 : vector<128x128xf32>
    %54 = arith.divf %52, %53 : vector<128x128xf32>
    %55 = arith.subf %43, %1 : vector<128x128xf32>
    %56 = arith.mulf %54, %55 : vector<128x128xf32>
    %57 = arith.addf %1, %56 : vector<128x128xf32>
    %58 = arith.truncf %57 : vector<128x128xf32> to vector<128x128xbf16>
    %c0_24 = arith.constant 0 : index
    %c0_25 = arith.constant 0 : index
    %59 = vector.load %arg6[%c0_24, %c0_25] : memref<128x128xbf16, #tpu.memory_space<vmem>>, vector<128x128xbf16>
    tpu.vector_store %arg6[%c0_24, %c0_25], %58 {strides = array<i32>} : memref<128x128xbf16, #tpu.memory_space<vmem>>, vector<128x128xbf16>,
    return
  }
  func.func @transform_0(%arg0: i32) -> (i32, i32) {
    %c0_i32 = arith.constant 0 : i32
    %c0_i32_0 = arith.constant 0 : i32
    return %arg0, %c0_i32 : i32, i32
  }
  func.func @transform_1(%arg0: i32) -> (i32, i32) {
    %c0_i32 = arith.constant 0 : i32
    %c0_i32_0 = arith.constant 0 : i32
    %c0_i32_1 = arith.constant 0 : i32
    return %c0_i32, %c0_i32_0 : i32, i32
  }
  func.func @transform_2(%arg0: i32) -> (i32, i32) {
    %c0_i32 = arith.constant 0 : i32
    %c0_i32_0 = arith.constant 0 : i32
    %c0_i32_1 = arith.constant 0 : i32
    return %c0_i32, %c0_i32_0 : i32, i32
  }
  func.func @transform_3(%arg0: i32) -> (i32, i32) {
    %c0_i32 = arith.constant 0 : i32
    %c0_i32_0 = arith.constant 0 : i32
    %c0_i32_1 = arith.constant 0 : i32
    return %c0_i32, %c0_i32_0 : i32, i32
  }
  func.func @transform_4(%arg0: i32) -> (i32, i32) {
    %c0_i32 = arith.constant 0 : i32
    %c0_i32_0 = arith.constant 0 : i32
    %c0_i32_1 = arith.constant 0 : i32
    return %c0_i32, %c0_i32_0 : i32, i32
  }
  func.func @transform_5(%arg0: i32) -> (i32, i32) {
    %c0_i32 = arith.constant 0 : i32
    %c0_i32_0 = arith.constant 0 : i32
    return %arg0, %c0_i32 : i32, i32
  }
}

</mosaic_0001>

<bundles_post_ra>
// kernel: tpu_custom_call.1
= control target key start
LH: loop header
LB: loop body
LE: loop exit
PB: predicated region body
PF: predicated region fallthrough
CT: control target
= control target key end

     0   :  { %10 = vsyncpa [#allocation3], 0  ;;  %s3142_s0 = inlined_call_operand.hbm [shape: bf16[256,128], index: 0, kind: input, shape index: {}]   ;;  %s3143_s1 = inlined_call_operand.hbm [shape: bf16[128,256], index: 1, kind: input, shape index: {}]   ;;  %s3144_s2 = inlined_call_operand.hbm [shape: bf16[128,128], index: 2, kind: input, shape index: {}]   ;;  %s3145_s3 = inlined_call_operand.hbm [shape: bf16[128,128], index: 3, kind: input, shape index: {}]   ;;  %s3146_s4 = inlined_call_operand.hbm [shape: f32[8,128], index: 4, kind: input, shape index: {}]   ;;  %s3147_s5 = inlined_call_operand.hbm [shape: bf16[256,128], index: 5, kind: output, shape index: {}]  }
   0x1   :  { %12 = vsyncpa [#allocation3 + $0x1], 0 }
   0x2   :  { %13 = vsyncpa [#allocation6], 0 }
   0x3   :  { %14 = vsyncpa [#allocation9], 0 }
   0x4   :  { %15 = vsyncpa [#allocation4], 0 }
   0x5   :  { %17 = vsyncpa [#allocation4 + $0x1], 0  ;;  %s2375_s18 = smov 0   ;;  %s2377_s19 = smov 0  }
   0x6   :  { %s2379_s20 = smov 0   ;;  %s2381_s21 = smov 0  }
   0x7 LB: > { %s2396_s22 = sadd.s32 4294967295, %s2330_s21   ;;  %s1608_s23 = sadd.s32 4294967294, %s2330_s21   ;;  %s2330_s21 = sphi %s2381_s21, %s3214_s21   ;;  %s2326_s20 = sphi %s2379_s20, %s3213_s20   ;;  %s2322_s19 = sphi %s2377_s19, %s3212_s19   ;;  %s2318_s18 = sphi %s2375_s18, %s3211_s18  }
   0x8   : > { %p43_p0 = scmp.ne.s32.totalorder %s2322_s19, %s2318_s18  ;;  %p3148_p1 = scmp.eq.s32.totalorder %s2396_s22, 0 }
   0x9   : > { %p157_p3 = scmp.eq.s32.totalorder %s1608_s23, 1  ;;  %p1609_p5 = scmp.ge.s32.totalorder %s2330_s21, 1 }
   0xa   : > { %p2405_p4 = por %p3148_p1, %p43_p0  ;;  %p164_p7 = scmp.lt.s32.totalorder %s2330_s21, 3 }
   0xb   : > { %p2410_p6 = por %p157_p3, %p43_p0  ;;  %s2332_s27 = smov [#allocation5]  }
   0xc   : > { %s3169_s24 = scalar_select %p2405_p4, 1, 0 }
   0xd   : > { %s3170_s25 = scalar_select %p2410_p6, 1, 0 }
   0xe   : > { %p2415_p8 = pnand %p1609_p5, %p164_p7  ;;  %s176_s28 = sshll.u32 %s2332_s27, 4  ;;  %s177_s28 = int_to_ptr.vmem [resolvable:$true] %s176_s28 }
   0xf   : > { %s2333_s30 = smov [#allocation8]   ;;  %s2114_s9 = scalar_lea.hbm %s3143_s1, 2048 }
  0x10   : > { %s3171_s26 = scalar_select %p2415_p8, 1, 0 }
  0x11   : > { %p1888_p9 = pneg %p2415_p8  ;;  %s202_s6 = sshll.u32 %s2333_s30, 4  ;;  %s203_s6 = int_to_ptr.vmem [resolvable:$true] %s202_s6 }
  0x12   : > { %p2115_p12 = scmp.ne.s32.totalorder %s3143_s1, %s2114_s9  ;;  %p2121_p5 = scmp.lt.u32.totalorder %s2114_s9, %s3143_s1 }
  0x13   : > { %p2424_p11 = pnand %p1888_p9, %p3148_p1 }
  0x15   : > { %p2436_p13 = pneg %p2424_p11 }
  0x17   : > { %p2117_p0 = pnand %p2436_p13, %p2115_p12 }
  0x19   : > { %p2118_p3 = pneg %p2117_p0 }
  0x1b   : > { %p2123_p7 = pnand %p2121_p5, %p2118_p3 }
  0x1d   : > { %2126 = shalt.err (!%p2123_p7)
}
  0x1e   : > { %s2127_s15 = scalar_lea.vmem %s177_s28, 2048  ;;  %p2135_p2 = scmp.lt.s32.totalorder %s177_s28, %s177_s28 }
  0x1f   : > { %p2128_p9 = scmp.ne.s32.totalorder %s177_s28, %s2127_s15  ;;  %p2136_p6 = scmp.lt.s32.totalorder %s2127_s15, %s2127_s15 }
  0x21   : > { %p2130_p10 = pnand %p2128_p9, %p2436_p13  ;;  %p2137_p4 = por %p2136_p6, %p2135_p2 }
  0x23   : > { %p2131_p1 = pneg %p2130_p10 }
  0x25   : > { %p2138_p8 = pnand %p2137_p4, %p2131_p1 }
  0x27   : > { %2141 = shalt.err (!%p2138_p8)
}
  0x28   : > { %s2334_s16 = smov 128   ;;  %s2335_s17 = smov 8  }
  0x29   : > { %1891 = dma.hbm_to_vmem [thread:$0]  (!%p2424_p11), %s3143_s1, 2048, %s177_s28, [#allocation6], %s2334_s16, %s2334_s16, %s2335_s17  }
  0x2a   : > { %s2336_s30 = smov [#allocation7]   ;;  %s2142_s10 = scalar_lea.hbm %s3145_s3, 1024 }
  0x2b   : > { %s189_s7 = sshll.u32 %s2336_s30, 4  ;;  %p2143_p1 = scmp.ne.s32.totalorder %s3145_s3, %s2142_s10  ;;  %s190_s7 = int_to_ptr.vmem [resolvable:$true] %s189_s7 }
  0x2c   : > { %p2149_p6 = scmp.lt.u32.totalorder %s2142_s10, %s3145_s3 }
  0x2d   : > { %p2145_p2 = pnand %p2143_p1, %p2436_p13 }
  0x2f   : > { %p2146_p4 = pneg %p2145_p2 }
  0x31   : > { %p2151_p8 = pnand %p2149_p6, %p2146_p4 }
  0x33   : > { %2154 = shalt.err (!%p2151_p8)
}
  0x34   : > { %s2155_s28 = scalar_lea.vmem %s203_s6, 1024  ;;  %p2163_p3 = scmp.lt.s32.totalorder %s203_s6, %s203_s6 }
  0x35   : > { %p2156_p10 = scmp.ne.s32.totalorder %s203_s6, %s2155_s28  ;;  %p2164_p5 = scmp.lt.s32.totalorder %s2155_s28, %s2155_s28 }
  0x37   : > { %p2158_p12 = pnand %p2156_p10, %p2436_p13  ;;  %p2165_p7 = por %p2164_p5, %p2163_p3 }
  0x39   : > { %p2159_p0 = pneg %p2158_p12 }
  0x3b   : > { %p2166_p9 = pnand %p2165_p7, %p2159_p0 }
  0x3d   : > { %2169 = shalt.err (!%p2166_p9)
}
  0x3e   : > { %s2337_s16 = smov 64   ;;  %s2338_s17 = smov 4  }
  0x3f   : > { %1897 = dma.hbm_to_vmem [thread:$0]  (!%p2424_p11), %s3145_s3, 1024, %s203_s6, [#allocation9], %s2337_s16, %s2337_s16, %s2338_s17  }
  0x40   : > { %s2170_s9 = scalar_lea.hbm %s3144_s2, 1024 }
  0x41   : > { %p2171_p1 = scmp.ne.s32.totalorder %s3144_s2, %s2170_s9  ;;  %p2177_p6 = scmp.lt.u32.totalorder %s2170_s9, %s3144_s2 }
  0x43   : > { %p2173_p2 = pnand %p2171_p1, %p2436_p13 }
  0x45   : > { %p2174_p4 = pneg %p2173_p2 }
  0x47   : > { %p2179_p8 = pnand %p2177_p6, %p2174_p4 }
  0x49   : > { %2182 = shalt.err (!%p2179_p8)
}
  0x4a   : > { %s2183_s15 = scalar_lea.vmem %s190_s7, 1024  ;;  %p2191_p3 = scmp.lt.s32.totalorder %s190_s7, %s190_s7 }
  0x4b   : > { %p2184_p10 = scmp.ne.s32.totalorder %s190_s7, %s2183_s15  ;;  %p2192_p5 = scmp.lt.s32.totalorder %s2183_s15, %s2183_s15 }
  0x4d   : > { %p2186_p12 = pnand %p2184_p10, %p2436_p13  ;;  %p2193_p7 = por %p2192_p5, %p2191_p3 }
  0x4f   : > { %p2187_p0 = pneg %p2186_p12 }
  0x51   : > { %p2194_p9 = pnand %p2193_p7, %p2187_p0 }
  0x53   : > { %2197 = shalt.err (!%p2194_p9)
}
  0x54   : > { %1894 = dma.hbm_to_vmem [thread:$0]  (!%p2424_p11), %s3144_s2, 1024, %s190_s7, [#allocation6], %s2337_s16, %s2337_s16, %s2338_s17  }
  0x55   : > { %s2339_s23 = smov [#allocation10]   ;;  %s2198_s9 = scalar_lea.hbm %s3146_s4, 128 }
  0x56   : > { %s216_s27 = sshll.u32 %s2339_s23, 4  ;;  %p2199_p1 = scmp.ne.s32.totalorder %s3146_s4, %s2198_s9  ;;  %s217_s27 = int_to_ptr.vmem [resolvable:$true] %s216_s27 }
  0x57   : > { %p2205_p6 = scmp.lt.u32.totalorder %s2198_s9, %s3146_s4 }
  0x58   : > { %p2201_p2 = pnand %p2199_p1, %p2436_p13 }
  0x5a   : > { %p2202_p4 = pneg %p2201_p2 }
  0x5c   : > { %p2207_p8 = pnand %p2205_p6, %p2202_p4 }
  0x5e   : > { %2210 = shalt.err (!%p2207_p8)
}
  0x5f   : > { %s2211_s7 = scalar_lea.vmem %s217_s27, 128  ;;  %p2219_p3 = scmp.lt.s32.totalorder %s217_s27, %s217_s27 }
  0x60   : > { %p2212_p10 = scmp.ne.s32.totalorder %s217_s27, %s2211_s7  ;;  %p2220_p5 = scmp.lt.s32.totalorder %s2211_s7, %s2211_s7 }
  0x62   : > { %p2214_p12 = pnand %p2212_p10, %p2436_p13  ;;  %p2221_p7 = por %p2220_p5, %p2219_p3 }
  0x64   : > { %p2215_p0 = pneg %p2214_p12 }
  0x66   : > { %p2222_p9 = pnand %p2221_p7, %p2215_p0 }
  0x68   : > { %2225 = shalt.err (!%p2222_p9)
}
  0x69   : > { %1900 = dma.hbm_to_vmem [thread:$0]  (!%p2424_p11), %s3146_s4, 128, %s217_s27, [#allocation9]  }
  0x6a   : > { %s2513_s12 = sadd.s32 1, %s2330_s21   ;;  %s30_s28 = sadd.s32 1, %s2326_s20 }
  0x6b   : > { %s27_s29 = ssub.s32 %s2330_s21, %s2513_s12  ;;  %p37_p13 = scmp.ne.s32.totalorder %s2326_s20, %s2322_s19 }
  0x6c   : > { %p28_p1 = scmp.eq.s32.totalorder %s27_s29, 0  ;;  %p38_p2 = scmp.eq.s32.totalorder %s2330_s21, 0 }
  0x6d   : > { %p3174_p4 = scmp.eq.s32.totalorder %s2396_s22, 1  ;;  %p1913_p8 = scmp.lt.s32.totalorder %s2330_s21, 2 }
  0x6e   : > { %s2529_s30 = scalar_select %p28_p1, %s2326_s20, %s30_s28  }
  0x6f   : > { %p2523_p6 = por %p3174_p4, %p37_p13  ;;  %p39_p10 = por %p38_p2, %p37_p13 }
  0x70   : > { %s227_s8 = sand.u32 1, %s2326_s20   ;;  %s1707_s27 = sshll.u32 %s2330_s21, 10 }
  0x71   : > { %s1615_s9 = sshll.u32 %s227_s8, 6  ;;  %s2536_s13 = scalar_lea.hbm %s3142_s0, %s1707_s27 }
  0x72   : > { %s231_s14 = scalar_lea.vmem [#allocation2], %s1615_s9  ;;  %p2540_p11 = pnand %p1913_p8, %p39_p10 }
  0x73   : > { %s238_s7 = sshll.u32 %s231_s14, 4  ;;  %s2544_s6 = scalar_lea.sflag [#allocation3], %s227_s8  ;;  %s2538_s7 = int_to_ptr.vmem [resolvable:$true] %s238_s7 }
  0x74   : > { %s2226_s28 = scalar_lea.hbm %s2536_s13, 1024  ;;  %p2228_p0 = pneg %p2540_p11 }
  0x75   : > { %p2227_p12 = scmp.ne.s32.totalorder %s2536_s13, %s2226_s28  ;;  %s2231_s27 = scalar_lea.hbm %s3142_s0, 2048 }
  0x76   : > { %p2232_p7 = scmp.lt.u32.totalorder %s2536_s13, %s3142_s0  ;;  %p2233_p9 = scmp.lt.u32.totalorder %s2231_s27, %s2226_s28 }
  0x77   : > { %p2229_p3 = pnand %p2228_p0, %p2227_p12  ;;  %p2235_p1 = scmp.lt.u32.totalorder %s2226_s28, %s2536_s13 }
  0x78   : > { %p2234_p13 = por %p2233_p9, %p2232_p7 }
  0x79   : > { %p2230_p5 = pneg %p2229_p3 }
  0x7a   : > { %p2236_p2 = por %p2235_p1, %p2234_p13 }
  0x7c   : > { %p2237_p4 = pnand %p2236_p2, %p2230_p5 }
  0x7e   : > { %2240 = shalt.err (!%p2237_p4)
}
  0x7f   : > { %s2241_s8 = scalar_lea.vmem %s2538_s7, 1024  ;;  %s2340_s14 = smov [#allocation2]  }
  0x80   : > { %p2242_p8 = scmp.ne.s32.totalorder %s2538_s7, %s2241_s8  ;;  %s2246_s29 = sshll.u32 %s2340_s14, 4  ;;  %s2247_s29 = int_to_ptr.vmem [resolvable:$false] %s2246_s29 }
  0x81   : > { %s2248_s9 = scalar_lea.vmem %s2247_s29, 2048  ;;  %p2249_p3 = scmp.lt.s32.totalorder %s2538_s7, %s2247_s29 }
  0x82   : > { %p2244_p10 = pnand %p2242_p8, %p2228_p0  ;;  %p2250_p7 = scmp.lt.s32.totalorder %s2248_s9, %s2241_s8 }
  0x84   : > { %p2245_p12 = pneg %p2244_p10  ;;  %p2251_p9 = por %p2250_p7, %p2249_p3 }
  0x86   : > { %p2252_p13 = pnand %p2251_p9, %p2245_p12 }
  0x88   : > { %2255 = shalt.err (!%p2252_p13)
}
  0x89   : > { %1904 = dma.hbm_to_vmem [thread:$0]  (!%p2540_p11), %s2536_s13, 1024, %s2538_s7, %s2544_s6, %s2337_s16, %s2337_s16, %s2338_s17  }
  0x8a   : > { %p3177_p0 = scmp.ne.s32.totalorder %s3171_s26, 0 }
  0x8c   : > { %250 = sbr.rel (%p3177_p0) target bundleno = 1133 (0x46d), region = 40 }
  0x93   : > { %s2578_s28 = sand.u32 1, %s2322_s19   ;;  %p3178_p5 = scmp.ne.s32.totalorder %s3169_s24, 0 }
  0x94   : > { %s1619_s27 = sshll.u32 %s2578_s28, 6  ;;  %s253_s10 = scalar_lea.sflag [#allocation3], %s2578_s28 }
  0x95   : > { %s2584_s15 = scalar_lea.vmem [#allocation2], %s1619_s27 }
  0x96   : > { %2301 = dma.done.wait (%p3178_p5), %s253_s10, 1024  }
  0x97   : > { %2303 = vsyncadd (%p3178_p5), %s253_s10, 4294966272  ;;  %p3179_p11 = scmp.eq.s32.totalorder %s2396_s22, 0 }
  0x99   : > { %2305 = dma.done.wait (%p3179_p11), [#allocation6], 3072   ;;  %p3180_p1 = pmov %p3179_p11 }
  0x9b   : > { %2307 = vsyncadd (%p3180_p1), [#allocation6], 4294964224  ;;  %p3181_p2 = pmov %p3180_p1 }
  0x9c   : > { %p3182_p4 = pmov %p3180_p1 }
  0x9d   : > { %2309 = dma.done.wait (%p3181_p2), [#allocation9], 1152  }
  0x9e   : > { %2311 = vsyncadd (%p3182_p4), [#allocation9], 4294966144  ;;  %v2341_v0 = vmov 0   ;;  %v1962_v1 = vld [vmem:[#allocation5 + $0x4] ss:$8 sps:$4 sm:$0xff]   ;;  %v1996_v16 = vld [vmem:[#allocation7 + $0x10] sm:$0xff]  }
  0x9f   : > { %515 = vmatprep.mubr.bf16.mxu0 %v2341_v0  ;;  %v1964_v2 = vld [vmem:[#allocation5] ss:$8 sps:$4 sm:$0xff]   ;;  %483 = vmatprep.subr.bf16.mxu0 %v1962_v1  ;;  %v1965_v3 = vld [vmem:[#allocation5 + $0x14] ss:$8 sps:$4 sm:$0xff]   ;;  %v1967_v4 = vld [vmem:[#allocation5 + $0x10] ss:$8 sps:$4 sm:$0xff]  }
  0xa0   : > { %484 = vmatpush1.bf16.msra.mxu0 %v1964_v2  ;;  %v1968_v5 = vld [vmem:[#allocation5 + $0x24] ss:$8 sps:$4 sm:$0xff]   ;;  %v1970_v6 = vld [vmem:[#allocation5 + $0x20] ss:$8 sps:$4 sm:$0xff]   ;;  %v1971_v7 = vld [vmem:[#allocation5 + $0x34] ss:$8 sps:$4 sm:$0xff]  }
  0xa1   : > { %485 = vmatprep.subr.bf16.mxu0 %v1965_v3  ;;  %v1973_v8 = vld [vmem:[#allocation5 + $0x30] ss:$8 sps:$4 sm:$0xff]   ;;  %v1974_v9 = vld [vmem:[#allocation5 + $0x44] ss:$8 sps:$4 sm:$0xff]   ;;  %v1976_v10 = vld [vmem:[#allocation5 + $0x40] ss:$8 sps:$4 sm:$0xff]  }
  0xa2   : > { %v1994_v11 = vld [vmem:[#allocation7] sm:$0xff]   ;;  %v1995_v12 = vld [vmem:[#allocation7 + $0x8] sm:$0xff]   ;;  %v1977_v13 = vld [vmem:[#allocation5 + $0x54] ss:$8 sps:$4 sm:$0xff]   ;;  %s3034_s24 = scalar_lea.vmem [#allocation11], %s1619_s27  ;;  %s1724_s26 = sshll.u32 %s2396_s22, 10 }
  0xa3   : > { %1804 = vmatprep.subr.bf16.mxu1 %v1994_v11  ;;  %v1979_v14 = vld [vmem:[#allocation5 + $0x50] ss:$8 sps:$4 sm:$0xff]   ;;  %v1980_v15 = vld [vmem:[#allocation5 + $0x64] ss:$8 sps:$4 sm:$0xff]   ;;  %v1982_v18 = vld [vmem:[#allocation5 + $0x60] ss:$8 sps:$4 sm:$0xff]   ;;  %s3094_s7 = scalar_lea.hbm %s3147_s5, %s1724_s26 }
  0xa4   : > { %486 = vmatpush1.bf16.msra.mxu0 %v1967_v4  ;;  %1805 = vmatpush3.bf16.msra.mxu1 %v1994_v11  ;;  %v1997_v17 = vld [vmem:[#allocation7 + $0x18] sm:$0xff]   ;;  %v1998_v20 = vld [vmem:[#allocation7 + $0x20] sm:$0xff]   ;;  %v2605_v23 = vld [vmem:[%s2584_s15 + $0x8] sm:$0xff]   ;;  %s1497_s16 = sshll.u32 %s3034_s24, 4  ;;  %s1484_s22 = scalar_lea.sflag [#allocation4], %s2578_s28  ;;  %s3096_s16 = int_to_ptr.vmem [resolvable:$true] %s1497_s16 }
  0xa5   : > { %487 = vmatprep.subr.bf16.mxu0 %v1968_v5  ;;  %1806 = vmatprep.subr.bf16.mxu1 %v1995_v12  ;;  %v1983_v19 = vld [vmem:[#allocation5 + $0x74] ss:$8 sps:$4 sm:$0xff]   ;;  %v1985_v21 = vld [vmem:[#allocation5 + $0x70] ss:$8 sps:$4 sm:$0xff]   ;;  %v2600_v22 = vld [vmem:[%s2584_s15] sm:$0xff]   ;;  %s2256_s6 = scalar_lea.vmem %s3096_s16, 1024 }
  0xa6   : > { %v2610_v24 = vld [vmem:[%s2584_s15 + $0x10] sm:$0xff]   ;;  %v2615_v25 = vld [vmem:[%s2584_s15 + $0x18] sm:$0xff]   ;;  %v2620_v26 = vld [vmem:[%s2584_s15 + $0x20] sm:$0xff]   ;;  %p2257_p8 = scmp.ne.s32.totalorder %s3096_s16, %s2256_s6  ;;  %s2342_s11 = smov [#allocation11]  }
  0xa7   : > { %v2625_v27 = vld [vmem:[%s2584_s15 + $0x28] sm:$0xff]   ;;  %v2630_v28 = vld [vmem:[%s2584_s15 + $0x30] sm:$0xff]   ;;  %v2635_v29 = vld [vmem:[%s2584_s15 + $0x38] sm:$0xff]   ;;  %s2260_s8 = sshll.u32 %s2342_s11, 4  ;;  %s2261_s8 = int_to_ptr.vmem [resolvable:$false] %s2260_s8 }
  0xa8   : > { %488 = vmatpush1.bf16.msra.mxu0 %v1970_v6  ;;  %1807 = vmatpush3.bf16.msra.mxu1 %v1995_v12  ;;  %v1999_v30 = vld [vmem:[#allocation7 + $0x28] sm:$0xff]   ;;  %v2000_v31 = vld [vmem:[#allocation7 + $0x30] sm:$0xff]   ;;  %v2001_v32 = vld [vmem:[#allocation7 + $0x38] sm:$0xff]   ;;  %p2258_p10 = pnand %p2257_p8, %p2523_p6  ;;  %s2262_s14 = scalar_lea.vmem %s2261_s8, 2048 }
  0xa9   : > { %489 = vmatprep.subr.bf16.mxu0 %v1971_v7  ;;  %1808 = vmatprep.subr.bf16.mxu1 %v1996_v16  ;;  %v1649_v33 = vld [vmem:[#allocation10] ss:$0 sm:$0xff]  ;;  %p2263_p3 = scmp.lt.s32.totalorder %s3096_s16, %s2261_s8  ;;  %p2264_p7 = scmp.lt.s32.totalorder %s2262_s14, %s2256_s6 }
  0xaa   : > { %p2259_p12 = pneg %p2258_p10 }
  0xab   : > { %p2265_p9 = por %p2264_p7, %p2263_p3 }
  0xac   : > { %490 = vmatpush1.bf16.msra.mxu0 %v1973_v8  ;;  %1809 = vmatpush3.bf16.msra.mxu1 %v1996_v16 }
  0xad   : > { %491 = vmatprep.subr.bf16.mxu0 %v1974_v9  ;;  %1810 = vmatprep.subr.bf16.mxu1 %v1997_v17  ;;  %p2266_p13 = pnand %p2265_p9, %p2259_p12 }
  0xb0   : > { %492 = vmatpush1.bf16.msra.mxu0 %v1976_v10  ;;  %1811 = vmatpush3.bf16.msra.mxu1 %v1997_v17 }
  0xb1   : > { %493 = vmatprep.subr.bf16.mxu0 %v1977_v13  ;;  %1812 = vmatprep.subr.bf16.mxu1 %v1998_v20 }
  0xb4   : > { %494 = vmatpush1.bf16.msra.mxu0 %v1979_v14  ;;  %1813 = vmatpush3.bf16.msra.mxu1 %v1998_v20 }
  0xb5   : > { %495 = vmatprep.subr.bf16.mxu0 %v1980_v15  ;;  %1814 = vmatprep.subr.bf16.mxu1 %v1999_v30 }
  0xb8   : > { %496 = vmatpush1.bf16.msra.mxu0 %v1982_v18  ;;  %1815 = vmatpush3.bf16.msra.mxu1 %v1999_v30 }
  0xb9   : > { %497 = vmatprep.subr.bf16.mxu0 %v1983_v19  ;;  %1816 = vmatprep.subr.bf16.mxu1 %v2000_v31 }
  0xbc   : > { %498 = vmatpush1.bf16.msra.mxu0 %v1985_v21  ;;  %1817 = vmatpush3.bf16.msra.mxu1 %v2000_v31 }
  0xbd   : > { %1818 = vmatprep.subr.bf16.mxu1 %v2001_v32 }
  0xbf   : > { %516 = vmatmul.mubr.bf16.vlgmr.msra.gmra.mrb[0].mxu0 %v2600_v22 }
  0xc0   : > { %525 = vmatprep.mubr.bf16.mxu0 %v2341_v0  ;;  %1819 = vmatpush3.bf16.msra.mxu1 %v2001_v32 }
  0xc7   : > { %526 = vmatmul.mubr.bf16.gmra.mrb[4].mxu0 %v2605_v23 }
  0xc8   : > { %535 = vmatprep.mubr.bf16.mxu0 %v2341_v0 }
  0xcf   : > { %536 = vmatmul.mubr.bf16.gmra.mrb[8].mxu0 %v2610_v24 }
  0xd0   : > { %545 = vmatprep.mubr.bf16.mxu0 %v2341_v0 }
  0xd7   : > { %546 = vmatmul.mubr.bf16.gmra.mrb[12].mxu0 %v2615_v25 }
  0xd8   : > { %555 = vmatprep.mubr.bf16.mxu0 %v2341_v0 }
  0xdf   : > { %556 = vmatmul.mubr.bf16.gmra.mrb[16].mxu0 %v2620_v26 }
  0xe0   : > { %565 = vmatprep.mubr.bf16.mxu0 %v2341_v0 }
  0xe7   : > { %566 = vmatmul.mubr.bf16.gmra.mrb[20].mxu0 %v2625_v27 }
  0xe8   : > { %575 = vmatprep.mubr.bf16.mxu0 %v2341_v0 }
  0xef   : > { %576 = vmatmul.mubr.bf16.gmra.mrb[24].mxu0 %v2630_v28 }
  0xf0   : > { %585 = vmatprep.mubr.bf16.mxu0 %v2341_v0 }
  0xf7   : > { %586 = vmatmul.mubr.bf16.gmra.mrb[28].mxu0 %v2635_v29 }
 0x192   : > { %v517_v34 = vpop.f32.mrb[0].mxu0 }
 0x193   : > { %v2638_v35 = vpop.f32.mrb[1].mxu0  ;;  %v600_v37 = vadd.f32 %v1649_v33, %v517_v34 }
 0x194   : > { %v521_v36 = vpop.f32.mrb[2].mxu0 }
 0x195   : > { %v601_v38 = vadd.f32 %v1649_v33, %v521_v36  ;;  %v2640_v39 = vpop.f32.mrb[3].mxu0  ;;  %v2670_v36 = vld [vmem:[#allocation10 + $0x1] ss:$0 sm:$0xff] }
 0x197   : > { %v616_v40 = vpack.c.bf16 %v601_v38, %v600_v37  ;;  %v2673_v37 = vunpack.c.l.bf16 %v2605_v23  ;;  %v2676_v38 = vunpack.c.l.bf16 %v2600_v22 }
 0x199   : > { %1820 = vmatprep.mubr.bf16.mxu1 %v616_v40 }
 0x19a   : > { %v527_v41 = vpop.f32.mrb[4].mxu0 }
 0x19b   : > { %v2642_v42 = vpop.f32.mrb[5].mxu0  ;;  %v602_v44 = vadd.f32 %v1649_v33, %v527_v41 }
 0x19c   : > { %v531_v43 = vpop.f32.mrb[6].mxu0 }
 0x19d   : > { %v603_v45 = vadd.f32 %v1649_v33, %v531_v43  ;;  %v2644_v46 = vpop.f32.mrb[7].mxu0 }
 0x19f   : > { %v617_v47 = vpack.c.bf16 %v603_v45, %v602_v44 }
 0x1a1   : > { %1821 = vmatmul.mubr.bf16.vlgmr.msra.gmra.mrb[0].mxu1 %v617_v47 }
 0x1a2   : > { %v537_v48 = vpop.f32.mrb[8].mxu0 }
 0x1a3   : > { %v2646_v49 = vpop.f32.mrb[9].mxu0  ;;  %v604_v51 = vadd.f32 %v1649_v33, %v537_v48 }
 0x1a4   : > { %v541_v50 = vpop.f32.mrb[10].mxu0 }
 0x1a5   : > { %v605_v52 = vadd.f32 %v1649_v33, %v541_v50  ;;  %v2648_v53 = vpop.f32.mrb[11].mxu0 }
 0x1a7   : > { %v618_v54 = vpack.c.bf16 %v605_v52, %v604_v51  ;;  %v2693_v52 = vunpack.c.h.bf16 %v2600_v22  ;;  %v2709_v22 = vunpack.c.l.bf16 %v2615_v25 }
 0x1a9   : > { %1824 = vmatprep.mubr.bf16.mxu1 %v618_v54 }
 0x1aa   : > { %v547_v55 = vpop.f32.mrb[12].mxu0 }
 0x1ab   : > { %v2650_v56 = vpop.f32.mrb[13].mxu0  ;;  %v606_v58 = vadd.f32 %v1649_v33, %v547_v55 }
 0x1ac   : > { %v551_v57 = vpop.f32.mrb[14].mxu0 }
 0x1ad   : > { %v607_v59 = vadd.f32 %v1649_v33, %v551_v57  ;;  %v2652_v60 = vpop.f32.mrb[15].mxu0 }
 0x1af   : > { %v619_v61 = vpack.c.bf16 %v607_v59, %v606_v58 }
 0x1b1   : > { %1825 = vmatmul.mubr.bf16.gmra.mrb[4].mxu1 %v619_v61 }
 0x1b2   : > { %v557_v62 = vpop.f32.mrb[16].mxu0 }
 0x1b3   : > { %v2654_v63 = vpop.f32.mrb[17].mxu0  ;;  %v608_v1 = vadd.f32 %v1649_v33, %v557_v62 }
 0x1b4   : > { %v561_v0 = vpop.f32.mrb[18].mxu0 }
 0x1b5   : > { %v609_v2 = vadd.f32 %v1649_v33, %v561_v0  ;;  %v2656_v3 = vpop.f32.mrb[19].mxu0  ;;  %v2716_v0 = vunpack.c.h.bf16 %v2615_v25  ;;  %v2728_v25 = vunpack.c.h.bf16 %v2610_v24 }
 0x1b7   : > { %v620_v4 = vpack.c.bf16 %v609_v2, %v608_v1  ;;  %3187 = vst [vmem:[#allocation20_spill] sm:$0xff] %v2728_v25 }
 0x1b9   : > { %1828 = vmatprep.mubr.bf16.mxu1 %v620_v4 }
 0x1ba   : > { %v567_v5 = vpop.f32.mrb[20].mxu0 }
 0x1bb   : > { %v2658_v6 = vpop.f32.mrb[21].mxu0  ;;  %v610_v8 = vadd.f32 %v1649_v33, %v567_v5 }
 0x1bc   : > { %v571_v7 = vpop.f32.mrb[22].mxu0 }
 0x1bd   : > { %v611_v9 = vadd.f32 %v1649_v33, %v571_v7  ;;  %v2660_v10 = vpop.f32.mrb[23].mxu0 }
 0x1bf   : > { %v621_v11 = vpack.c.bf16 %v611_v9, %v610_v8  ;;  %v2724_v9 = vunpack.c.l.bf16 %v2610_v24 }
 0x1c1   : > { %1829 = vmatmul.mubr.bf16.gmra.mrb[8].mxu1 %v621_v11 }
 0x1c2   : > { %v577_v12 = vpop.f32.mrb[24].mxu0 }
 0x1c3   : > { %v2662_v13 = vpop.f32.mrb[25].mxu0  ;;  %v612_v15 = vadd.f32 %v1649_v33, %v577_v12 }
 0x1c4   : > { %3183 = vst [vmem:[#allocation16_spill] sm:$0xff] %v2662_v13  ;;  %v581_v14 = vpop.f32.mrb[26].mxu0 }
 0x1c5   : > { %v613_v16 = vadd.f32 %v1649_v33, %v581_v14  ;;  %v2664_v17 = vpop.f32.mrb[27].mxu0 }
 0x1c6   : > { %3184 = vst [vmem:[#allocation17_spill] sm:$0xff] %v2664_v17 }
 0x1c7   : > { %v622_v18 = vpack.c.bf16 %v613_v16, %v612_v15 }
 0x1c9   : > { %1832 = vmatprep.mubr.bf16.mxu1 %v622_v18  ;;  %v2002_v18 = vld [vmem:[#allocation8] sm:$0xff]  }
 0x1ca   : > { %v587_v19 = vpop.f32.mrb[28].mxu0  ;;  %1836 = vmatprep.subr.bf16.mxu1 %v2002_v18 }
 0x1cb   : > { %v2666_v20 = vpop.f32.mrb[29].mxu0  ;;  %v614_v30 = vadd.f32 %v1649_v33, %v587_v19  ;;  %1837 = vmatpush3.bf16.msra.mxu1 %v2002_v18 }
 0x1cc   : > { %3185 = vst [vmem:[#allocation18_spill] sm:$0xff] %v2666_v20  ;;  %v591_v21 = vpop.f32.mrb[30].mxu0 }
 0x1cd   : > { %v615_v31 = vadd.f32 %v1649_v33, %v591_v21  ;;  %v2668_v32 = vpop.f32.mrb[31].mxu0  ;;  %v2681_v33 = vunpack.c.h.bf16 %v2605_v23  ;;  %v2003_v21 = vld [vmem:[#allocation8 + $0x8] sm:$0xff]  }
 0x1ce   : > { %3186 = vst [vmem:[#allocation19_spill] sm:$0xff] %v2668_v32  ;;  %1838 = vmatprep.subr.bf16.mxu1 %v2003_v21 }
 0x1cf   : > { %v623_v34 = vpack.c.bf16 %v615_v31, %v614_v30  ;;  %v2749_v30 = vunpack.c.l.bf16 %v2625_v27  ;;  %1839 = vmatpush3.bf16.msra.mxu1 %v2003_v21 }
 0x1d1   : > { %1833 = vmatmul.mubr.bf16.gmra.mrb[12].mxu1 %v623_v34  ;;  %3188 = vst [vmem:[#allocation21_spill] sm:$0xff] %v2749_v30 }
 0x274   : > { %v1822_v40 = vpop.f32.mrb[0].mxu1 }
 0x275   : > { %v735_v41 = vadd.f32 %v1822_v40, %v2670_v36  ;;  %v726_v43 = vpop.f32.mrb[1].mxu1  ;;  %v2754_v40 = vunpack.c.h.bf16 %v2625_v27  ;;  %v2764_v27 = vunpack.c.l.bf16 %v2620_v26 }
 0x276   : > { %v727_v44 = vadd.f32 %v2670_v36, %v726_v43  ;;  %v1823_v45 = vpop.f32.mrb[2].mxu1 }
 0x277   : > { %v2684_v47 = vadd.f32 %v735_v41, %v2673_v37  ;;  %v738_v48 = vadd.f32 %v1823_v45, %v2670_v36  ;;  %v729_v50 = vpop.f32.mrb[3].mxu1  ;;  %3189 = vst [vmem:[#allocation22_spill] sm:$0xff] %v2754_v40  ;;  %3190 = vst [vmem:[#allocation23_spill] sm:$0xff] %v2764_v27 }
 0x278   : > { %v2688_v51 = vadd.f32 %v727_v44, %v2676_v38  ;;  %v730_v23 = vadd.f32 %v2670_v36, %v729_v50 }
 0x279   : > { %809 = vadd.xlane.f32.xlu1 %v2684_v47  ;;  %v2696_v54 = vadd.f32 %v738_v48, %v2681_v33  ;;  %v856_v55 = vmul.f32 %v2684_v47, %v2684_v47  ;;  %v2004_v48 = vld [vmem:[#allocation8 + $0x10] sm:$0xff]  }
 0x27a   : > { %805 = vadd.xlane.f32.xlu0 %v2688_v51  ;;  %v2703_v57 = vadd.f32 %v730_v23, %v2693_v52  ;;  %v854_v62 = vmul.f32 %v2688_v51, %v2688_v51  ;;  %1840 = vmatprep.subr.bf16.mxu1 %v2004_v48 }
 0x27b   : > { %v857_v58 = vmul.f32 %v2696_v54, %v2696_v54  ;;  %1841 = vmatpush3.bf16.msra.mxu1 %v2004_v48 }
 0x27c   : > { %v855_v59 = vmul.f32 %v2703_v57, %v2703_v57 }
 0x27d   : > { %811 = vadd.xlane.f32.xlu1 %v2696_v54 }
 0x27e   : > { %874 = vadd.xlane.f32.xlu0 %v856_v55 }
 0x281   : > { %876 = vadd.xlane.f32.xlu1 %v857_v58 }
 0x282   : > { %807 = vadd.xlane.f32.xlu0 %v2703_v57 }
 0x284   : > { %v1826_v61 = vpop.f32.mrb[4].mxu1 }
 0x285   : > { %v751_v1 = vadd.f32 %v1826_v61, %v2670_v36  ;;  %872 = vadd.xlane.f32.xlu1 %v855_v59  ;;  %v742_v2 = vpop.f32.mrb[5].mxu1  ;;  %v2768_v59 = vunpack.c.h.bf16 %v2620_v26  ;;  %v2006_v26 = vld [vmem:[#allocation8 + $0x20] sm:$0xff]  }
 0x286   : > { %v1827_v4 = vpop.f32.mrb[6].mxu1  ;;  %870 = vadd.xlane.f32.xlu0 %v854_v62  ;;  %v743_v11 = vadd.f32 %v2670_v36, %v742_v2 }
 0x287   : > { %v2720_v5 = vadd.f32 %v751_v1, %v2709_v22  ;;  %v754_v7 = vadd.f32 %v1827_v4, %v2670_v36  ;;  %v745_v8 = vpop.f32.mrb[7].mxu1  ;;  %3191 = vst [vmem:[#allocation24_spill] sm:$0xff] %v2768_v59  ;;  %v2005_v1 = vld [vmem:[#allocation8 + $0x18] sm:$0xff]  }
 0x288   : > { %v746_v14 = vadd.f32 %v2670_v36, %v745_v8  ;;  %v2737_v15 = vadd.f32 %v743_v11, %v2724_v9  ;;  %1842 = vmatprep.subr.bf16.mxu1 %v2005_v1  ;;  %v2007_v11 = vld [vmem:[#allocation8 + $0x28] sm:$0xff]  }
 0x289   : > { %v2731_v12 = vadd.f32 %v754_v7, %v2716_v0  ;;  %v860_v24 = vmul.f32 %v2720_v5, %v2720_v5  ;;  %1843 = vmatpush3.bf16.msra.mxu1 %v2005_v1  ;;  %v2009_v1 = vld [vmem:[#allocation8 + $0x38] sm:$0xff]  }
 0x28a   : > { %817 = vadd.xlane.f32.xlu0 %v2720_v5  ;;  %v2740_v16 = vadd.f32 %v746_v14, %v2728_v25  ;;  %v858_v34 = vmul.f32 %v2737_v15, %v2737_v15  ;;  %1844 = vmatprep.subr.bf16.mxu1 %v2006_v26  ;;  %v2789_v14 = vunpack.c.l.bf16 %v2635_v29 }
 0x28b   : > { %819 = vadd.xlane.f32.xlu1 %v2731_v12  ;;  %v861_v19 = vmul.f32 %v2731_v12, %v2731_v12 }
 0x28c   : > { %v859_v44 = vmul.f32 %v2740_v16, %v2740_v16  ;;  %3192 = vst [vmem:[#allocation25_spill] sm:$0xff] %v2789_v14 }
 0x28d   : > { %1845 = vmatpush3.bf16.msra.mxu1 %v2006_v26 }
 0x28e   : > { %813 = vadd.xlane.f32.xlu0 %v2737_v15  ;;  %1846 = vmatprep.subr.bf16.mxu1 %v2007_v11 }
 0x28f   : > { %815 = vadd.xlane.f32.xlu1 %v2740_v16 }
 0x291   : > { %1847 = vmatpush3.bf16.msra.mxu1 %v2007_v11 }
 0x292   : > { %882 = vadd.xlane.f32.xlu0 %v860_v24 }
 0x293   : > { %884 = vadd.xlane.f32.xlu1 %v861_v19  ;;  %v2794_v19 = vunpack.c.h.bf16 %v2635_v29  ;;  %v2804_v29 = vunpack.c.l.bf16 %v2630_v28 }
 0x294   : > { %v1830_v31 = vpop.f32.mrb[8].mxu1 }
 0x295   : > { %v767_v41 = vadd.f32 %v1830_v31, %v2670_v36  ;;  %v758_v43 = vpop.f32.mrb[9].mxu1  ;;  %3193 = vst [vmem:[#allocation26_spill] sm:$0xff] %v2794_v19  ;;  %3194 = vst [vmem:[#allocation27_spill] sm:$0xff] %v2804_v29 }
 0x296   : > { %v1831_v45 = vpop.f32.mrb[10].mxu1  ;;  %878 = vadd.xlane.f32.xlu0 %v858_v34  ;;  %v759_v58 = vadd.f32 %v2670_v36, %v758_v43  ;;  %v2008_v43 = vld [vmem:[#allocation8 + $0x30] sm:$0xff]  }
 0x297   : > { %v2760_v50 = vadd.f32 %v767_v41, %v2749_v30  ;;  %v770_v23 = vadd.f32 %v1831_v45, %v2670_v36  ;;  %880 = vadd.xlane.f32.xlu1 %v859_v44  ;;  %v761_v55 = vpop.f32.mrb[11].mxu1  ;;  %1848 = vmatprep.subr.bf16.mxu1 %v2008_v43 }
 0x298   : > { %v762_v62 = vadd.f32 %v2670_v36, %v761_v55  ;;  %v2777_v2 = vadd.f32 %v759_v58, %v2764_v27  ;;  %v2808_v55 = vunpack.c.h.bf16 %v2630_v28  ;;  %1849 = vmatpush3.bf16.msra.mxu1 %v2008_v43 }
 0x299   : > { %v2771_v61 = vadd.f32 %v770_v23, %v2754_v40  ;;  %v864_v7 = vmul.f32 %v2760_v50, %v2760_v50  ;;  %1850 = vmatprep.subr.bf16.mxu1 %v2009_v1 }
 0x29a   : > { %825 = vadd.xlane.f32.xlu0 %v2760_v50  ;;  %v2780_v4 = vadd.f32 %v762_v62, %v2768_v59  ;;  %v862_v24 = vmul.f32 %v2777_v2, %v2777_v2  ;;  %3195 = vst [vmem:[#allocation28_spill] sm:$0xff] %v2808_v55 }
 0x29b   : > { %827 = vadd.xlane.f32.xlu1 %v2771_v61  ;;  %v865_v8 = vmul.f32 %v2771_v61, %v2771_v61 }
 0x29c   : > { %v863_v34 = vmul.f32 %v2780_v4, %v2780_v4  ;;  %1851 = vmatpush3.bf16.msra.mxu1 %v2009_v1 }
 0x29e   : > { %821 = vadd.xlane.f32.xlu0 %v2777_v2 }
 0x29f   : > { %823 = vadd.xlane.f32.xlu1 %v2780_v4 }
 0x2a2   : > { %890 = vadd.xlane.f32.xlu0 %v864_v7 }
 0x2a3   : > { %892 = vadd.xlane.f32.xlu1 %v865_v8 }
 0x2a4   : > { %v1834_v18 = vpop.f32.mrb[12].mxu1 }
 0x2a5   : > { %v783_v21 = vadd.f32 %v1834_v18, %v2670_v36  ;;  %v774_v31 = vpop.f32.mrb[13].mxu1 }
 0x2a6   : > { %v1835_v41 = vpop.f32.mrb[14].mxu1  ;;  %886 = vadd.xlane.f32.xlu0 %v862_v24  ;;  %v775_v23 = vadd.f32 %v2670_v36, %v774_v31 }
 0x2a7   : > { %v2800_v44 = vadd.f32 %v783_v21, %v2789_v14  ;;  %v786_v45 = vadd.f32 %v1835_v41, %v2670_v36  ;;  %888 = vadd.xlane.f32.xlu1 %v863_v34  ;;  %v777_v48 = vpop.f32.mrb[15].mxu1 }
 0x2a8   : > { %v778_v62 = vadd.f32 %v2670_v36, %v777_v48  ;;  %v2817_v26 = vadd.f32 %v775_v23, %v2804_v29 }
 0x2a9   : > { %v2811_v58 = vadd.f32 %v786_v45, %v2794_v19  ;;  %v868_v8 = vmul.f32 %v2800_v44, %v2800_v44 }
 0x2aa   : > { %833 = vadd.xlane.f32.xlu0 %v2800_v44  ;;  %v2820_v7 = vadd.f32 %v778_v62, %v2808_v55  ;;  %v866_v28 = vmul.f32 %v2817_v26, %v2817_v26 }
 0x2ab   : > { %835 = vadd.xlane.f32.xlu1 %v2811_v58  ;;  %v869_v11 = vmul.f32 %v2811_v58, %v2811_v58 }
 0x2ac   : > { %v867_v36 = vmul.f32 %v2820_v7, %v2820_v7 }
 0x2ae   : > { %829 = vadd.xlane.f32.xlu0 %v2817_v26 }
 0x2af   : > { %831 = vadd.xlane.f32.xlu1 %v2820_v7 }
 0x2b2   : > { %894 = vadd.xlane.f32.xlu0 %v866_v28 }
 0x2b3   : > { %896 = vadd.xlane.f32.xlu1 %v867_v36 }
 0x2b6   : > { %898 = vadd.xlane.f32.xlu0 %v868_v8 }
 0x2b7   : > { %900 = vadd.xlane.f32.xlu1 %v869_v11 }
 0x306   : > { %v810_v18 = vpop.xlane.xlu1 %809 }
 0x307   : > { %v806_v24 = vpop.xlane.xlu0 %805  ;;  %v840_v21 = vmul.f32 0.0078125, %v810_v18 }
 0x308   : > { %v2832_v36 = vmul.f32 0.0078125, %v806_v24 }
 0x309   : > { %v920_v43 = vmul.f32 %v840_v21, %v840_v21 }
 0x30a   : > { %v812_v31 = vpop.xlane.xlu1 %811 }
 0x30b   : > { %v841_v34 = vmul.f32 0.0078125, %v812_v31  ;;  %v875_v41 = vpop.xlane.xlu0 %874  ;;  %v918_v31 = vmul.f32 %v2832_v36, %v2832_v36 }
 0x30c   : > { %v904_v45 = vmul.f32 0.0078125, %v875_v41 }
 0x30d   : > { %v921_v62 = vmul.f32 %v841_v34, %v841_v34 }
 0x30e   : > { %v936_v48 = vsub.f32 %v904_v45, %v920_v43  ;;  %v877_v23 = vpop.xlane.xlu1 %876 }
 0x30f   : > { %v905_v1 = vmul.f32 0.0078125, %v877_v23  ;;  %v808_v28 = vpop.xlane.xlu0 %807 }
 0x310   : > { %v952_v55 = vmax.f32 %v936_v48, 0.0  ;;  %v839_v19 = vmul.f32 0.0078125, %v808_v28 }
 0x311   : > { %v937_v29 = vsub.f32 %v905_v1, %v921_v62 }
 0x312   : > { %v984_v8 = vadd.f32 1e-05, %v952_v55  ;;  %v919_v11 = vmul.f32 %v839_v19, %v839_v19  ;;  %v873_v14 = vpop.xlane.xlu1 %872 }
 0x313   : > { %v953_v59 = vmax.f32 %v937_v29, 0.0  ;;  %v903_v18 = vmul.f32 0.0078125, %v873_v14  ;;  %v871_v40 = vpop.xlane.xlu0 %870 }
 0x314   : > { %v902_v41 = vmul.f32 0.0078125, %v871_v40  ;;  %2018 = vrsqrt.f32 %v984_v8  ;;  %v969_v8 = vsub.f32 %v2696_v54, %v841_v34  ;;  %v967_v54 = vsub.f32 %v2703_v57, %v839_v19 }
 0x315   : > { %v985_v43 = vadd.f32 1e-05, %v953_v59  ;;  %v935_v45 = vsub.f32 %v903_v18, %v919_v11 }
 0x316   : > { %v934_v23 = vsub.f32 %v902_v41, %v918_v31 }
 0x317   : > { %2020 = vrsqrt.f32 %v985_v43  ;;  %v951_v24 = vmax.f32 %v935_v45, 0.0  ;;  %v818_v27 = vpop.xlane.xlu0 %817 }
 0x318   : > { %v950_v48 = vmax.f32 %v934_v23, 0.0  ;;  %v820_v28 = vpop.xlane.xlu1 %819  ;;  %v2836_v14 = vmul.f32 0.0078125, %v818_v27 }
 0x319   : > { %v983_v62 = vadd.f32 1e-05, %v951_v24  ;;  %v2838_v30 = vmul.f32 0.0078125, %v820_v28  ;;  %v968_v24 = vsub.f32 %v2684_v47, %v840_v21 }
 0x31a   : > { %v982_v55 = vadd.f32 1e-05, %v950_v48  ;;  %v924_v11 = vmul.f32 %v2836_v14, %v2836_v14 }
 0x31b   : > { %2022 = vrsqrt.f32 %v983_v62  ;;  %v814_v1 = vpop.xlane.xlu0 %813  ;;  %v925_v45 = vmul.f32 %v2838_v30, %v2838_v30 }
 0x31c   : > { %2024 = vrsqrt.f32 %v982_v55  ;;  %v816_v29 = vpop.xlane.xlu1 %815  ;;  %v2843_v18 = vmul.f32 0.0078125, %v814_v1 }
 0x31d   : > { %v2847_v27 = vmul.f32 0.0078125, %v816_v29  ;;  %v966_v29 = vsub.f32 %v2688_v51, %v2832_v36 }
 0x31e   : > { %v2019_v59 = vpop.eup %2018  ;;  %v922_v1 = vmul.f32 %v2843_v18, %v2843_v18 }
 0x31f   : > { %v883_v40 = vpop.xlane.xlu0 %882  ;;  %v1016_v55 = vmul.f32 %v2019_v59, %v968_v24  ;;  %v923_v47 = vmul.f32 %v2847_v27, %v2847_v27 }
 0x320   : > { %v908_v31 = vmul.f32 0.0078125, %v883_v40  ;;  %v885_v41 = vpop.xlane.xlu1 %884 }
 0x321   : > { %v2021_v43 = vpop.eup %2020  ;;  %v909_v23 = vmul.f32 0.0078125, %v885_v41 }
 0x322   : > { %v1017_v48 = vmul.f32 %v2021_v43, %v969_v8  ;;  %v940_v28 = vsub.f32 %v908_v31, %v924_v11  ;;  %v2857_v11 = vld [vmem:[#allocation10 + $0x3] ss:$0 sm:$0xff] }
 0x323   : > { %v941_v34 = vsub.f32 %v909_v23, %v925_v45  ;;  %v879_v62 = vpop.xlane.xlu0 %878 }
 0x324   : > { %v956_v40 = vmax.f32 %v940_v28, 0.0  ;;  %v906_v17 = vmul.f32 0.0078125, %v879_v62  ;;  %v881_v32 = vpop.xlane.xlu1 %880  ;;  %v1037_v41 = vmul.f32 %v2857_v11, %v1017_v48  ;;  %v2862_v62 = vld [vmem:[#allocation10 + $0x4] ss:$0 sm:$0xff] }
 0x325   : > { %v2023_v13 = vpop.eup %2022  ;;  %v957_v21 = vmax.f32 %v941_v34, 0.0  ;;  %v907_v8 = vmul.f32 0.0078125, %v881_v32  ;;  %v1036_v34 = vmul.f32 %v2857_v11, %v1016_v55 }
 0x326   : > { %v2025_v57 = vpop.eup %2024  ;;  %v988_v19 = vadd.f32 1e-05, %v956_v40  ;;  %v938_v59 = vsub.f32 %v906_v17, %v922_v1  ;;  %v1015_v31 = vmul.f32 %v2023_v13, %v967_v54  ;;  %v2869_v54 = vadd.f32 %v2862_v62, %v1037_v41 }
 0x327   : > { %v989_v43 = vadd.f32 1e-05, %v957_v21  ;;  %v939_v45 = vsub.f32 %v907_v8, %v923_v47  ;;  %v826_v23 = vpop.xlane.xlu0 %825  ;;  %v1014_v24 = vmul.f32 %v2025_v57, %v966_v29  ;;  %v2877_v21 = vadd.f32 %v2862_v62, %v1036_v34 }
 0x328   : > { %2026 = vrsqrt.f32 %v988_v19  ;;  %v954_v28 = vmax.f32 %v938_v59, 0.0  ;;  %v828_v51 = vpop.xlane.xlu1 %827  ;;  %v1035_v36 = vmul.f32 %v2857_v11, %v1015_v31  ;;  %v2874_v55 = vmul.f32 0.0078125, %v826_v23 }
 0x329   : > { %2028 = vrsqrt.f32 %v989_v43  ;;  %v955_v32 = vmax.f32 %v939_v45, 0.0  ;;  %v1034_v17 = vmul.f32 %v2857_v11, %v1014_v24  ;;  %v2879_v8 = vmul.f32 0.0078125, %v828_v51 }
 0x32a   : > { %v986_v13 = vadd.f32 1e-05, %v954_v28  ;;  %v2866_v48 = vadd.f32 %v2862_v62, %v1035_v36  ;;  %v1071_v19 = vpack.c.bf16 %v2869_v54, %v2877_v21  ;;  %v928_v31 = vmul.f32 %v2874_v55, %v2874_v55 }
 0x32b   : > { %v987_v1 = vadd.f32 1e-05, %v955_v32  ;;  %v822_v40 = vpop.xlane.xlu0 %821  ;;  %v2872_v29 = vadd.f32 %v2862_v62, %v1034_v17  ;;  %v972_v23 = vsub.f32 %v2720_v5, %v2836_v14  ;;  %v929_v24 = vmul.f32 %v2879_v8, %v2879_v8 }
 0x32c   : > { %2030 = vrsqrt.f32 %v986_v13  ;;  %v824_v47 = vpop.xlane.xlu1 %823  ;;  %v2887_v41 = vmul.f32 0.0078125, %v822_v40  ;;  %v973_v34 = vsub.f32 %v2731_v12, %v2838_v30 }
 0x32d   : > { %2032 = vrsqrt.f32 %v987_v1  ;;  %v1070_v57 = vpack.c.bf16 %v2866_v48, %v2872_v29  ;;  %v2893_v28 = vmul.f32 0.0078125, %v824_v47  ;;  %v970_v47 = vsub.f32 %v2737_v15, %v2843_v18 }
 0x32f   : > { %1852 = vmatprep.mubr.bf16.mxu1 %v1070_v57  ;;  %v891_v59 = vpop.xlane.xlu0 %890  ;;  %v926_v57 = vmul.f32 %v2887_v41, %v2887_v41 }
 0x330   : > { %v912_v43 = vmul.f32 0.0078125, %v891_v59  ;;  %v893_v45 = vpop.xlane.xlu1 %892  ;;  %1853 = vmatmul.mubr.bf16.vlgmr.msra.gmra.mrb[16].mxu1 %v1071_v19 }
 0x331   : > { %v913_v51 = vmul.f32 0.0078125, %v893_v45  ;;  %v927_v45 = vmul.f32 %v2893_v28, %v2893_v28 }
 0x332   : > { %v2027_v36 = vpop.eup %2026  ;;  %v944_v32 = vsub.f32 %v912_v43, %v928_v31  ;;  %v971_v31 = vsub.f32 %v2740_v16, %v2847_v27 }
 0x333   : > { %v2029_v17 = vpop.eup %2028  ;;  %v945_v13 = vsub.f32 %v913_v51, %v929_v24  ;;  %v887_v1 = vpop.xlane.xlu0 %886  ;;  %v1020_v40 = vmul.f32 %v2027_v36, %v972_v23 }
 0x334   : > { %v960_v19 = vmax.f32 %v944_v32, 0.0  ;;  %v910_v5 = vmul.f32 0.0078125, %v887_v1  ;;  %v889_v14 = vpop.xlane.xlu1 %888  ;;  %v1021_v59 = vmul.f32 %v2029_v17, %v973_v34 }
 0x335   : > { %v961_v20 = vmax.f32 %v945_v13, 0.0  ;;  %v911_v12 = vmul.f32 0.0078125, %v889_v14  ;;  %v1040_v34 = vmul.f32 %v2857_v11, %v1020_v40 }
 0x336   : > { %v2031_v30 = vpop.eup %2030  ;;  %v992_v43 = vadd.f32 1e-05, %v960_v19  ;;  %v942_v23 = vsub.f32 %v910_v5, %v926_v57  ;;  %v1041_v13 = vmul.f32 %v2857_v11, %v1021_v59 }
 0x337   : > { %v2033_v24 = vpop.eup %2032  ;;  %v993_v51 = vadd.f32 1e-05, %v961_v20  ;;  %v943_v36 = vsub.f32 %v911_v12, %v927_v45  ;;  %v834_v32 = vpop.xlane.xlu0 %833  ;;  %v1018_v1 = vmul.f32 %v2031_v30, %v970_v47  ;;  %v2913_v40 = vadd.f32 %v2862_v62, %v1040_v34 }
 0x338   : > { %2034 = vrsqrt.f32 %v992_v43  ;;  %v958_v15 = vmax.f32 %v942_v23, 0.0  ;;  %v836_v18 = vpop.xlane.xlu1 %835  ;;  %v1019_v17 = vmul.f32 %v2033_v24, %v971_v31  ;;  %v2921_v45 = vadd.f32 %v2862_v62, %v1041_v13 }
 0x339   : > { %2036 = vrsqrt.f32 %v993_v51  ;;  %v959_v14 = vmax.f32 %v943_v36, 0.0  ;;  %v1038_v25 = vmul.f32 %v2857_v11, %v1018_v1  ;;  %v2929_v43 = vmul.f32 0.0078125, %v834_v32 }
 0x33a   : > { %v990_v16 = vadd.f32 1e-05, %v958_v15  ;;  %v1039_v27 = vmul.f32 %v2857_v11, %v1019_v17  ;;  %v1073_v31 = vpack.c.bf16 %v2921_v45, %v2913_v40  ;;  %v976_v36 = vsub.f32 %v2760_v50, %v2874_v55 }
 0x33b   : > { %v991_v57 = vadd.f32 1e-05, %v959_v14  ;;  %v830_v20 = vpop.xlane.xlu0 %829  ;;  %v2910_v19 = vadd.f32 %v2862_v62, %v1038_v25  ;;  %v2935_v1 = vmul.f32 0.0078125, %v836_v18  ;;  %v977_v32 = vsub.f32 %v2771_v61, %v2879_v8 }
 0x33c   : > { %2038 = vrsqrt.f32 %v990_v16  ;;  %v2915_v5 = vmul.f32 0.0078125, %v830_v20  ;;  %v832_v47 = vpop.xlane.xlu1 %831  ;;  %v2918_v59 = vadd.f32 %v2862_v62, %v1039_v27  ;;  %v932_v20 = vmul.f32 %v2929_v43, %v2929_v43 }
 0x33d   : > { %2040 = vrsqrt.f32 %v991_v57  ;;  %v2923_v12 = vmul.f32 0.0078125, %v832_v47 }
 0x33e   : > { %v1072_v25 = vpack.c.bf16 %v2918_v59, %v2910_v19  ;;  %v930_v23 = vmul.f32 %v2915_v5, %v2915_v5 }
 0x33f   : > { %v895_v30 = vpop.xlane.xlu0 %894  ;;  %v931_v34 = vmul.f32 %v2923_v12, %v2923_v12 }
 0x340   : > { %v914_v24 = vmul.f32 0.0078125, %v895_v30  ;;  %v897_v51 = vpop.xlane.xlu1 %896  ;;  %1856 = vmatprep.mubr.bf16.mxu1 %v1072_v25  ;;  %v974_v25 = vsub.f32 %v2777_v2, %v2887_v41  ;;  %v933_v30 = vmul.f32 %v2935_v1, %v2935_v1 }
 0x341   : > { %v915_v15 = vmul.f32 0.0078125, %v897_v51  ;;  %1857 = vmatmul.mubr.bf16.gmra.mrb[20].mxu1 %v1073_v31 }
 0x342   : > { %v2035_v17 = vpop.eup %2034  ;;  %v946_v13 = vsub.f32 %v914_v24, %v930_v23  ;;  %v975_v23 = vsub.f32 %v2780_v4, %v2893_v28 }
 0x343   : > { %v2037_v14 = vpop.eup %2036  ;;  %v947_v16 = vsub.f32 %v915_v15, %v931_v34  ;;  %v899_v27 = vpop.xlane.xlu0 %898  ;;  %v1024_v57 = vmul.f32 %v2035_v17, %v976_v36 }
 0x344   : > { %v962_v50 = vmax.f32 %v946_v13, 0.0  ;;  %v916_v55 = vmul.f32 0.0078125, %v899_v27  ;;  %v901_v18 = vpop.xlane.xlu1 %900  ;;  %v1025_v47 = vmul.f32 %v2037_v14, %v977_v32 }
 0x345   : > { %v963_v31 = vmax.f32 %v947_v16, 0.0  ;;  %v917_v61 = vmul.f32 0.0078125, %v901_v18  ;;  %v1044_v36 = vmul.f32 %v2857_v11, %v1024_v57 }
 0x346   : > { %v2039_v8 = vpop.eup %2038  ;;  %v994_v24 = vadd.f32 1e-05, %v962_v50  ;;  %v948_v51 = vsub.f32 %v916_v55, %v932_v20  ;;  %v1045_v13 = vmul.f32 %v2857_v11, %v1025_v47 }
 0x347   : > { %v2041_v34 = vpop.eup %2040  ;;  %v995_v15 = vadd.f32 1e-05, %v963_v31  ;;  %v949_v17 = vsub.f32 %v917_v61, %v933_v30  ;;  %v1022_v32 = vmul.f32 %v2039_v8, %v974_v25  ;;  %v2957_v57 = vadd.f32 %v2862_v62, %v1044_v36 }
 0x348   : > { %2042 = vrsqrt.f32 %v994_v24  ;;  %v964_v2 = vmax.f32 %v948_v51, 0.0  ;;  %v1023_v41 = vmul.f32 %v2041_v34, %v975_v23  ;;  %v2960_v50 = vadd.f32 %v2862_v62, %v1045_v13 }
 0x349   : > { %2044 = vrsqrt.f32 %v995_v15  ;;  %v965_v14 = vmax.f32 %v949_v17, 0.0  ;;  %v1042_v16 = vmul.f32 %v2857_v11, %v1022_v32  ;;  %v978_v25 = vsub.f32 %v2817_v26, %v2915_v5 }
 0x34a   : > { %v996_v27 = vadd.f32 1e-05, %v964_v2  ;;  %v1043_v4 = vmul.f32 %v2857_v11, %v1023_v41  ;;  %v1075_v47 = vpack.c.bf16 %v2960_v50, %v2957_v57  ;;  %v979_v31 = vsub.f32 %v2820_v7, %v2923_v12  ;;  %v2997_v2 = vld [vmem:[#allocation10 + $0x2] ss:$0 sm:$0xff] }
 0x34b   : > { %v997_v28 = vadd.f32 1e-05, %v965_v14  ;;  %v2954_v20 = vadd.f32 %v2862_v62, %v1042_v16  ;;  %v980_v24 = vsub.f32 %v2800_v44, %v2929_v43  ;;  %v981_v34 = vsub.f32 %v2811_v58, %v2935_v1 }
 0x34c   : > { %2046 = vrsqrt.f32 %v996_v27  ;;  %v2963_v55 = vadd.f32 %v2862_v62, %v1043_v4 }
 0x34d   : > { %2048 = vrsqrt.f32 %v997_v28 }
 0x34e   : > { %v1074_v18 = vpack.c.bf16 %v2963_v55, %v2954_v20 }
 0x350   : > { %1860 = vmatprep.mubr.bf16.mxu1 %v1074_v18 }
 0x351   : > { %1861 = vmatmul.mubr.bf16.gmra.mrb[24].mxu1 %v1075_v47 }
 0x352   : > { %v2043_v30 = vpop.eup %2042 }
 0x353   : > { %v2045_v61 = vpop.eup %2044  ;;  %v1026_v8 = vmul.f32 %v2043_v30, %v978_v25 }
 0x354   : > { %v1027_v23 = vmul.f32 %v2045_v61, %v979_v31 }
 0x355   : > { %v1046_v51 = vmul.f32 %v2857_v11, %v1026_v8 }
 0x356   : > { %v2047_v36 = vpop.eup %2046  ;;  %v1047_v15 = vmul.f32 %v2857_v11, %v1027_v23 }
 0x357   : > { %v2049_v26 = vpop.eup %2048  ;;  %v2980_v5 = vadd.f32 %v2862_v62, %v1046_v51  ;;  %v1028_v17 = vmul.f32 %v2047_v36, %v980_v24 }
 0x358   : > { %v2983_v7 = vadd.f32 %v2862_v62, %v1047_v15  ;;  %v1029_v12 = vmul.f32 %v2049_v26, %v981_v34 }
 0x359   : > { %v1048_v32 = vmul.f32 %v2857_v11, %v1028_v17 }
 0x35a   : > { %v1076_v44 = vpack.c.bf16 %v2983_v7, %v2980_v5  ;;  %v1049_v43 = vmul.f32 %v2857_v11, %v1029_v12 }
 0x35b   : > { %v2990_v58 = vadd.f32 %v2862_v62, %v1048_v32 }
 0x35c   : > { %1864 = vmatprep.mubr.bf16.mxu1 %v1076_v44  ;;  %v2993_v1 = vadd.f32 %v2862_v62, %v1049_v43 }
 0x35e   : > { %v1077_v13 = vpack.c.bf16 %v2993_v1, %v2990_v58 }
 0x360   : > { %1865 = vmatmul.mubr.bf16.gmra.mrb[28].mxu1 %v1077_v13 }
 0x403   : > { %v1854_v41 = vpop.f32.mrb[16].mxu1 }
 0x404   : > { %v1185_v14 = vadd.f32 %v1854_v41, %v2642_v42  ;;  %v1176_v16 = vpop.f32.mrb[17].mxu1 }
 0x405   : > { %v1177_v27 = vadd.f32 %v1176_v16, %v2638_v35  ;;  %v1855_v11 = vpop.f32.mrb[18].mxu1 }
 0x406   : > { %v1245_v4 = vadd.f32 %v2997_v2, %v1185_v14  ;;  %v1188_v28 = vadd.f32 %v1855_v11, %v2644_v46  ;;  %v1179_v18 = vpop.f32.mrb[19].mxu1 }
 0x407   : > { %v1243_v62 = vadd.f32 %v2997_v2, %v1177_v27  ;;  %v1180_v47 = vadd.f32 %v1179_v18, %v2640_v39 }
 0x408   : > { %v1672_v25 = vmul.f32 -1.442695, %v1245_v4  ;;  %v1246_v30 = vadd.f32 %v2997_v2, %v1188_v28 }
 0x409   : > { %v1670_v31 = vmul.f32 -1.442695, %v1243_v62  ;;  %v1244_v61 = vadd.f32 %v2997_v2, %v1180_v47  ;;  %v1358_v62 = vsub.f32 %v2869_v54, %v2681_v33 }
 0x40a   : > { %2050 = vpow2.f32 %v1672_v25  ;;  %v1673_v42 = vmul.f32 -1.442695, %v1246_v30  ;;  %v1356_v30 = vsub.f32 %v2866_v48, %v2693_v52 }
 0x40b   : > { %2052 = vpow2.f32 %v1670_v31  ;;  %v1671_v35 = vmul.f32 -1.442695, %v1244_v61 }
 0x40c   : > { %2054 = vpow2.f32 %v1673_v42 }
 0x40d   : > { %2056 = vpow2.f32 %v1671_v35 }
 0x414   : > { %v2051_v8 = vpop.eup %2050  ;;  %v1858_v23 = vpop.f32.mrb[20].mxu1 }
 0x415   : > { %v2053_v46 = vpop.eup %2052  ;;  %v1309_v24 = vadd.f32 1.0, %v2051_v8  ;;  %v1201_v51 = vadd.f32 %v1858_v23, %v2650_v56  ;;  %v1192_v36 = vpop.f32.mrb[21].mxu1 }
 0x416   : > { %v2055_v39 = vpop.eup %2054  ;;  %v1307_v34 = vadd.f32 1.0, %v2053_v46  ;;  %v1193_v15 = vadd.f32 %v1192_v36, %v2646_v49  ;;  %v1859_v26 = vpop.f32.mrb[22].mxu1 }
 0x417   : > { %v2057_v17 = vpop.eup %2056  ;;  %2058 = vrcp.f32 %v1309_v24  ;;  %v1310_v12 = vadd.f32 1.0, %v2055_v39  ;;  %v1249_v32 = vadd.f32 %v2997_v2, %v1201_v51  ;;  %v1204_v44 = vadd.f32 %v1859_v26, %v2652_v60  ;;  %v1195_v43 = vpop.f32.mrb[23].mxu1 }
 0x418   : > { %2060 = vrcp.f32 %v1307_v34  ;;  %v1308_v13 = vadd.f32 1.0, %v2057_v17  ;;  %v1247_v41 = vadd.f32 %v2997_v2, %v1193_v15  ;;  %v1196_v56 = vadd.f32 %v1195_v43, %v2648_v53 }
 0x419   : > { %2062 = vrcp.f32 %v1310_v12  ;;  %v1676_v14 = vmul.f32 -1.442695, %v1249_v32  ;;  %v1250_v16 = vadd.f32 %v2997_v2, %v1204_v44  ;;  %v1357_v60 = vsub.f32 %v2877_v21, %v2673_v37 }
 0x41a   : > { %2064 = vrcp.f32 %v1308_v13  ;;  %v1674_v49 = vmul.f32 -1.442695, %v1247_v41  ;;  %v1248_v27 = vadd.f32 %v2997_v2, %v1196_v56  ;;  %v1355_v53 = vsub.f32 %v2872_v29, %v2676_v38 }
 0x41b   : > { %2066 = vpow2.f32 %v1676_v14  ;;  %v1677_v11 = vmul.f32 -1.442695, %v1250_v16  ;;  %v1361_v16 = vsub.f32 %v2913_v40, %v2709_v22 }
 0x41c   : > { %2068 = vpow2.f32 %v1674_v49  ;;  %v1675_v4 = vmul.f32 -1.442695, %v1248_v27  ;;  %v1359_v27 = vsub.f32 %v2910_v19, %v2724_v9 }
 0x41d   : > { %2070 = vpow2.f32 %v1677_v11 }
 0x41e   : > { %2072 = vpow2.f32 %v1675_v4 }
 0x421   : > { %v2059_v28 = vpop.eup %2058 }
 0x422   : > { %v2061_v18 = vpop.eup %2060  ;;  %v1373_v47 = vmul.f32 %v2059_v28, %v1357_v60 }
 0x423   : > { %v2063_v25 = vpop.eup %2062  ;;  %v1371_v31 = vmul.f32 %v2061_v18, %v1355_v53  ;;  %v3196_v53 = vld [vmem:[#allocation20_spill] sm:$0xff] }
 0x424   : > { %v2065_v61 = vpop.eup %2064  ;;  %v1374_v42 = vmul.f32 %v2063_v25, %v1358_v62  ;;  %v1862_v35 = vpop.f32.mrb[24].mxu1  ;;  %v1389_v21 = vadd.f32 %v1373_v47, %v2673_v37  ;;  %v1360_v18 = vsub.f32 %v2918_v59, %v3196_v53  ;;  %v3197_v47 = vld [vmem:[#allocation18_spill] sm:$0xff] }
 0x425   : > { %v2067_v8 = vpop.eup %2066  ;;  %v1372_v23 = vmul.f32 %v2065_v61, %v1356_v30  ;;  %v1217_v46 = vadd.f32 %v1862_v35, %v2658_v6  ;;  %v1208_v29 = vpop.f32.mrb[25].mxu1  ;;  %v1387_v51 = vadd.f32 %v1371_v31, %v2676_v38 }
 0x426   : > { %v2069_v24 = vpop.eup %2068  ;;  %v1390_v54 = vadd.f32 %v1374_v42, %v2681_v33  ;;  %v1313_v36 = vadd.f32 1.0, %v2067_v8  ;;  %v1209_v39 = vadd.f32 %v1208_v29, %v2654_v63  ;;  %v1863_v48 = vpop.f32.mrb[26].mxu1  ;;  %v3198_v42 = vld [vmem:[#allocation16_spill] sm:$0xff] }
 0x427   : > { %v2071_v34 = vpop.eup %2070  ;;  %v1388_v15 = vadd.f32 %v1372_v23, %v2693_v52  ;;  %v1311_v26 = vadd.f32 1.0, %v2069_v24  ;;  %v1253_v37 = vadd.f32 %v2997_v2, %v1217_v46  ;;  %v1220_v17 = vadd.f32 %v1863_v48, %v2660_v10  ;;  %v1211_v6 = vpop.f32.mrb[27].mxu1  ;;  %v3199_v46 = vld [vmem:[#allocation19_spill] sm:$0xff] }
 0x428   : > { %v2073_v12 = vpop.eup %2072  ;;  %v1733_v32 = vpack.c.bf16 %v1390_v54, %v1389_v21  ;;  %2074 = vrcp.f32 %v1313_v36  ;;  %v1314_v38 = vadd.f32 1.0, %v2071_v34  ;;  %v1251_v33 = vadd.f32 %v2997_v2, %v1209_v39  ;;  %v3200_v36 = vld [vmem:[#allocation17_spill] sm:$0xff] }
 0x429   : > { %v1728_v44 = vpack.c.bf16 %v1388_v15, %v1387_v51  ;;  %2076 = vrcp.f32 %v1311_v26  ;;  %v1312_v63 = vadd.f32 1.0, %v2073_v12  ;;  %v1680_v43 = vmul.f32 -1.442695, %v1253_v37 }
 0x42a   : > { %1765 = vst [vmem:[%s3034_s24 + $0x8] sm:$0xff] %v1733_v32   ;;  %2078 = vrcp.f32 %v1314_v38  ;;  %v1678_v52 = vmul.f32 -1.442695, %v1251_v33  ;;  %v1254_v10 = vadd.f32 %v2997_v2, %v1220_v17  ;;  %v1212_v13 = vadd.f32 %v1211_v6, %v2656_v3 }
 0x42b   : > { %1729 = vst [vmem:[%s3034_s24] sm:$0xff] %v1728_v44   ;;  %2080 = vrcp.f32 %v1312_v63  ;;  %v1362_v3 = vsub.f32 %v2921_v45, %v2716_v0  ;;  %v3201_v63 = vld [vmem:[#allocation21_spill] sm:$0xff] }
 0x42c   : > { %2082 = vpow2.f32 %v1680_v43  ;;  %v1681_v41 = vmul.f32 -1.442695, %v1254_v10  ;;  %v1252_v56 = vadd.f32 %v2997_v2, %v1212_v13  ;;  %v1365_v43 = vsub.f32 %v2957_v57, %v3201_v63  ;;  %v3202_v10 = vld [vmem:[#allocation23_spill] sm:$0xff] }
 0x42d   : > { %2084 = vpow2.f32 %v1678_v52  ;;  %v1363_v13 = vsub.f32 %v2954_v20, %v3202_v10 }
 0x42e   : > { %2086 = vpow2.f32 %v1681_v41  ;;  %v1679_v14 = vmul.f32 -1.442695, %v1252_v56 }
 0x430   : > { %2088 = vpow2.f32 %v1679_v14 }
 0x432   : > { %v2075_v49 = vpop.eup %2074 }
 0x433   : > { %v2077_v11 = vpop.eup %2076  ;;  %v1377_v4 = vmul.f32 %v2075_v49, %v1361_v16  ;;  %v1866_v60 = vpop.f32.mrb[28].mxu1 }
 0x434   : > { %v2079_v28 = vpop.eup %2078  ;;  %v1375_v62 = vmul.f32 %v2077_v11, %v1359_v27  ;;  %v1233_v25 = vadd.f32 %v1866_v60, %v3197_v47  ;;  %v1224_v30 = vpop.f32.mrb[29].mxu1  ;;  %v3204_v11 = vld [vmem:[#allocation24_spill] sm:$0xff] }
 0x435   : > { %v2081_v31 = vpop.eup %2080  ;;  %v1393_v40 = vadd.f32 %v1377_v4, %v2709_v22  ;;  %v1378_v61 = vmul.f32 %v2079_v28, %v1362_v3  ;;  %v1225_v19 = vadd.f32 %v1224_v30, %v3198_v42  ;;  %v1867_v35 = vpop.f32.mrb[30].mxu1  ;;  %v1364_v3 = vsub.f32 %v2963_v55, %v3204_v11  ;;  %v3205_v42 = vld [vmem:[#allocation25_spill] sm:$0xff] }
 0x436   : > { %v2083_v8 = vpop.eup %2082  ;;  %v1391_v45 = vadd.f32 %v1375_v62, %v2724_v9  ;;  %v1376_v21 = vmul.f32 %v2081_v31, %v1360_v18  ;;  %v1257_v23 = vadd.f32 %v2997_v2, %v1233_v25  ;;  %v1236_v29 = vadd.f32 %v1867_v35, %v3199_v46  ;;  %v1227_v59 = vpop.f32.mrb[31].mxu1  ;;  %v3207_v46 = vld [vmem:[#allocation26_spill] sm:$0xff] }
 0x437   : > { %v2085_v24 = vpop.eup %2084  ;;  %v1394_v51 = vadd.f32 %v1378_v61, %v2716_v0  ;;  %v1317_v54 = vadd.f32 1.0, %v2083_v8  ;;  %v1255_v22 = vadd.f32 %v2997_v2, %v1225_v19  ;;  %v1228_v39 = vadd.f32 %v1227_v59, %v3200_v36  ;;  %v3206_v8 = vld [vmem:[#allocation27_spill] sm:$0xff] }
 0x438   : > { %v2087_v48 = vpop.eup %2086  ;;  %v1392_v34 = vadd.f32 %v1376_v21, %v3196_v53  ;;  %v1315_v9 = vadd.f32 1.0, %v2085_v24  ;;  %v1684_v15 = vmul.f32 -1.442695, %v1257_v23  ;;  %v1258_v26 = vadd.f32 %v2997_v2, %v1236_v29  ;;  %v3208_v24 = vld [vmem:[#allocation28_spill] sm:$0xff] }
 0x439   : > { %v1743_v37 = vpack.c.bf16 %v1394_v51, %v1393_v40  ;;  %2090 = vrcp.f32 %v1317_v54  ;;  %v1318_v17 = vadd.f32 1.0, %v2087_v48  ;;  %v1682_v0 = vmul.f32 -1.442695, %v1255_v22 }
 0x43a   : > { %v2089_v6 = vpop.eup %2088  ;;  %v1738_v12 = vpack.c.bf16 %v1392_v34, %v1391_v45  ;;  %2092 = vrcp.f32 %v1315_v9  ;;  %v1256_v32 = vadd.f32 %v2997_v2, %v1228_v39  ;;  %v1685_v33 = vmul.f32 -1.442695, %v1258_v26  ;;  %v3203_v2 = vld [vmem:[#allocation22_spill] sm:$0xff] }
 0x43b   : > { %1767 = vst [vmem:[%s3034_s24 + $0x18] sm:$0xff] %v1743_v37   ;;  %2094 = vrcp.f32 %v1318_v17  ;;  %v1316_v38 = vadd.f32 1.0, %v2089_v6  ;;  %v1366_v56 = vsub.f32 %v2960_v50, %v3203_v2  ;;  %v1369_v19 = vsub.f32 %v2990_v58, %v3205_v42 }
 0x43c   : > { %1766 = vst [vmem:[%s3034_s24 + $0x10] sm:$0xff] %v1738_v12   ;;  %2096 = vpow2.f32 %v1684_v15  ;;  %v1683_v44 = vmul.f32 -1.442695, %v1256_v32  ;;  %v1367_v45 = vsub.f32 %v2980_v5, %v3206_v8  ;;  %v1370_v29 = vsub.f32 %v2993_v1, %v3207_v46 }
 0x43d   : > { %2098 = vrcp.f32 %v1316_v38  ;;  %v1368_v51 = vsub.f32 %v2983_v7, %v3208_v24 }
 0x43e   : > { %2100 = vpow2.f32 %v1682_v0 }
 0x43f   : > { %2102 = vpow2.f32 %v1685_v33 }
 0x440   : > { %2104 = vpow2.f32 %v1683_v44 }
 0x443   : > { %v2091_v52 = vpop.eup %2090 }
 0x444   : > { %v2093_v41 = vpop.eup %2092  ;;  %v1381_v14 = vmul.f32 %v2091_v52, %v1365_v43 }
 0x445   : > { %v2095_v16 = vpop.eup %2094  ;;  %v1379_v49 = vmul.f32 %v2093_v41, %v1363_v13 }
 0x446   : > { %v2097_v27 = vpop.eup %2096  ;;  %v1382_v4 = vmul.f32 %v2095_v16, %v1366_v56  ;;  %v1397_v53 = vadd.f32 %v1381_v14, %v3201_v63 }
 0x447   : > { %v2099_v60 = vpop.eup %2098  ;;  %v1321_v28 = vadd.f32 1.0, %v2097_v27  ;;  %v1395_v25 = vadd.f32 %v1379_v49, %v3202_v10 }
 0x448   : > { %v2101_v57 = vpop.eup %2100  ;;  %v1398_v20 = vadd.f32 %v1382_v4, %v3203_v2  ;;  %v1380_v18 = vmul.f32 %v2099_v60, %v1364_v3 }
 0x449   : > { %v2103_v62 = vpop.eup %2102  ;;  %2106 = vrcp.f32 %v1321_v28  ;;  %v1319_v50 = vadd.f32 1.0, %v2101_v57 }
 0x44a   : > { %v2105_v47 = vpop.eup %2104  ;;  %v1753_v30 = vpack.c.bf16 %v1398_v20, %v1397_v53  ;;  %v1396_v55 = vadd.f32 %v1380_v18, %v3204_v11  ;;  %v1322_v31 = vadd.f32 1.0, %v2103_v62 }
 0x44b   : > { %2108 = vrcp.f32 %v1319_v50  ;;  %v1320_v40 = vadd.f32 1.0, %v2105_v47 }
 0x44c   : > { %1769 = vst [vmem:[%s3034_s24 + $0x28] sm:$0xff] %v1753_v30   ;;  %v1748_v61 = vpack.c.bf16 %v1396_v55, %v1395_v25  ;;  %2110 = vrcp.f32 %v1322_v31 }
 0x44d   : > { %2112 = vrcp.f32 %v1320_v40 }
 0x44e   : > { %1768 = vst [vmem:[%s3034_s24 + $0x20] sm:$0xff] %v1748_v61  }
 0x453   : > { %v2107_v35 = vpop.eup %2106 }
 0x454   : > { %v1385_v21 = vmul.f32 %v2107_v35, %v1369_v19 }
 0x455   : > { %v2109_v23 = vpop.eup %2108 }
 0x456   : > { %v2111_v59 = vpop.eup %2110  ;;  %v1383_v54 = vmul.f32 %v2109_v23, %v1367_v45  ;;  %v1401_v5 = vadd.f32 %v1385_v21, %v3205_v42 }
 0x457   : > { %v2113_v22 = vpop.eup %2112  ;;  %v1386_v36 = vmul.f32 %v2111_v59, %v1370_v29 }
 0x458   : > { %v1384_v58 = vmul.f32 %v2113_v22, %v1368_v51  ;;  %v1399_v1 = vadd.f32 %v1383_v54, %v3206_v8 }
 0x459   : > { %v1402_v39 = vadd.f32 %v1386_v36, %v3207_v46 }
 0x45a   : > { %v1400_v48 = vadd.f32 %v1384_v58, %v3208_v24 }
 0x45b   : > { %v1763_v34 = vpack.c.bf16 %v1402_v39, %v1401_v5 }
 0x45c   : > { %v1758_v7 = vpack.c.bf16 %v1400_v48, %v1399_v1 }
 0x45d   : > { %1771 = vst [vmem:[%s3034_s24 + $0x38] sm:$0xff] %v1763_v34  }
 0x45e   : > { %1770 = vst [vmem:[%s3034_s24 + $0x30] sm:$0xff] %v1758_v7  }
 0x45f   : > { %2269 = shalt.err (!%p2266_p13)
}
 0x460   : > { %s2270_s29 = scalar_lea.hbm %s3094_s7, 1024  ;;  %s2274_s10 = scalar_lea.hbm %s3147_s5, 2048 }
 0x461   : > { %p2271_p0 = scmp.ne.s32.totalorder %s3094_s7, %s2270_s29  ;;  %p2275_p1 = scmp.lt.u32.totalorder %s3094_s7, %s3147_s5 }
 0x462   : > { %p2276_p2 = scmp.lt.u32.totalorder %s2274_s10, %s2270_s29  ;;  %p2278_p8 = scmp.lt.u32.totalorder %s2270_s29, %s3094_s7 }
 0x463   : > { %p2272_p5 = pnand %p2271_p0, %p2523_p6 }
 0x464   : > { %p2277_p4 = por %p2276_p2, %p2275_p1 }
 0x465   : > { %p2273_p11 = pneg %p2272_p5 }
 0x466   : > { %p2279_p10 = por %p2278_p8, %p2277_p4 }
 0x468   : > { %p2280_p12 = pnand %p2279_p10, %p2273_p11 }
 0x46a   : > { %2283 = shalt.err (!%p2280_p12)
}
 0x46b   : > { %s2343_s26 = smov 64   ;;  %s2344_s17 = smov 4  }
 0x46c   : > { %1886 = dma.vmem_to_hbm [thread:$0]  (%p2523_p6), %s3096_s16, 1024, %s3094_s7, %s1484_s22, %s2343_s26, %s2343_s26, %s2344_s17  }
 0x46d PF: > { %s1512_s13 = sand.u32 1, %s2318_s18   ;;  %p3209_p3 = scmp.ne.s32.totalorder %s3170_s25, 0 }
 0x46e   : > { %p3210_p7 = scmp.ge.s32.totalorder %s2330_s21, 2  ;;  %s1513_s6 = scalar_lea.sflag [#allocation4], %s1512_s13 }
 0x470   : > { %p1906_p9 = pnand %p3210_p7, %p3209_p3 }
 0x472   : > { %2313 = dma.done.wait (!%p1906_p9), %s1513_s6, 1024  }
 0x473   : > { %2315 = vsyncadd (!%p1906_p9), %s1513_s6, 4294966272  ;;  %p20_p13 = scmp.ge.s32.totalorder %s2513_s12, 4   ;;  %s3211_s18 = smov %s2322_s19 }
 0x474   : > { %s3212_s19 = smov %s2326_s20  ;;  %s3213_s20 = smov %s2529_s30 }
 0x475   : > { %s3214_s21 = smov %s2513_s12  ;;  %22 = sbr.rel (!%p20_p13) target bundleno = 7 (0x7), region = 101 }
 0x47c   :  { %1518 = vsyncpa [#allocation3], 1 }
 0x47d   :  { %1520 = vsyncpa [#allocation3 + $0x1], 1 }
 0x47e   :  { %1521 = vsyncpa [#allocation6], 1 }
 0x47f   :  { %1522 = vsyncpa [#allocation9], 1 }
 0x480   :  { %1523 = vsyncpa [#allocation4], 1 }
 0x481   :  { %1525 = vsyncpa [#allocation4 + $0x1], 1 }

// kernel: tpu_custom_call.1
= control target key start
LH: loop header
LB: loop body
LE: loop exit
PB: predicated region body
PF: predicated region fallthrough
CT: control target
= control target key end

     0   :  { %10 = vsyncpa [#allocation3], 0  ;;  %s3142_s0 = inlined_call_operand.hbm [shape: bf16[256,128], index: 0, kind: input, shape index: {}]   ;;  %s3143_s1 = inlined_call_operand.hbm [shape: bf16[128,256], index: 1, kind: input, shape index: {}]   ;;  %s3144_s2 = inlined_call_operand.hbm [shape: bf16[128,128], index: 2, kind: input, shape index: {}]   ;;  %s3145_s3 = inlined_call_operand.hbm [shape: bf16[128,128], index: 3, kind: input, shape index: {}]   ;;  %s3146_s4 = inlined_call_operand.hbm [shape: f32[8,128], index: 4, kind: input, shape index: {}]   ;;  %s3147_s5 = inlined_call_operand.hbm [shape: bf16[256,128], index: 5, kind: output, shape index: {}]  }
   0x1   :  { %12 = vsyncpa [#allocation3 + $0x1], 0 }
   0x2   :  { %13 = vsyncpa [#allocation6], 0 }
   0x3   :  { %14 = vsyncpa [#allocation9], 0 }
   0x4   :  { %15 = vsyncpa [#allocation4], 0 }
   0x5   :  { %17 = vsyncpa [#allocation4 + $0x1], 0  ;;  %s2375_s18 = smov 0   ;;  %s2377_s19 = smov 0  }
   0x6   :  { %s2379_s20 = smov 0   ;;  %s2381_s21 = smov 0  }
   0x7 LB: > { %s2396_s22 = sadd.s32 4294967295, %s2330_s21   ;;  %s1608_s23 = sadd.s32 4294967294, %s2330_s21   ;;  %s2330_s21 = sphi %s2381_s21, %s3214_s21   ;;  %s2326_s20 = sphi %s2379_s20, %s3213_s20   ;;  %s2322_s19 = sphi %s2377_s19, %s3212_s19   ;;  %s2318_s18 = sphi %s2375_s18, %s3211_s18  }
   0x8   : > { %p43_p0 = scmp.ne.s32.totalorder %s2322_s19, %s2318_s18  ;;  %p3148_p1 = scmp.eq.s32.totalorder %s2396_s22, 0 }
   0x9   : > { %p157_p3 = scmp.eq.s32.totalorder %s1608_s23, 1  ;;  %p1609_p5 = scmp.ge.s32.totalorder %s2330_s21, 1 }
   0xa   : > { %p2405_p4 = por %p3148_p1, %p43_p0  ;;  %p164_p7 = scmp.lt.s32.totalorder %s2330_s21, 3 }
   0xb   : > { %p2410_p6 = por %p157_p3, %p43_p0  ;;  %s2332_s27 = smov [#allocation5]  }
   0xc   : > { %s3169_s24 = scalar_select %p2405_p4, 1, 0 }
   0xd   : > { %s3170_s25 = scalar_select %p2410_p6, 1, 0 }
   0xe   : > { %p2415_p8 = pnand %p1609_p5, %p164_p7  ;;  %s176_s28 = sshll.u32 %s2332_s27, 4  ;;  %s177_s28 = int_to_ptr.vmem [resolvable:$true] %s176_s28 }
   0xf   : > { %s2333_s30 = smov [#allocation8]   ;;  %s2114_s9 = scalar_lea.hbm %s3143_s1, 2048 }
  0x10   : > { %s3171_s26 = scalar_select %p2415_p8, 1, 0 }
  0x11   : > { %p1888_p9 = pneg %p2415_p8  ;;  %s202_s6 = sshll.u32 %s2333_s30, 4  ;;  %s203_s6 = int_to_ptr.vmem [resolvable:$true] %s202_s6 }
  0x12   : > { %p2115_p12 = scmp.ne.s32.totalorder %s3143_s1, %s2114_s9  ;;  %p2121_p5 = scmp.lt.u32.totalorder %s2114_s9, %s3143_s1 }
  0x13   : > { %p2424_p11 = pnand %p1888_p9, %p3148_p1 }
  0x15   : > { %p2436_p13 = pneg %p2424_p11 }
  0x17   : > { %p2117_p0 = pnand %p2436_p13, %p2115_p12 }
  0x19   : > { %p2118_p3 = pneg %p2117_p0 }
  0x1b   : > { %p2123_p7 = pnand %p2121_p5, %p2118_p3 }
  0x1d   : > { %2126 = shalt.err (!%p2123_p7)
}
  0x1e   : > { %s2127_s15 = scalar_lea.vmem %s177_s28, 2048  ;;  %p2135_p2 = scmp.lt.s32.totalorder %s177_s28, %s177_s28 }
  0x1f   : > { %p2128_p9 = scmp.ne.s32.totalorder %s177_s28, %s2127_s15  ;;  %p2136_p6 = scmp.lt.s32.totalorder %s2127_s15, %s2127_s15 }
  0x21   : > { %p2130_p10 = pnand %p2128_p9, %p2436_p13  ;;  %p2137_p4 = por %p2136_p6, %p2135_p2 }
  0x23   : > { %p2131_p1 = pneg %p2130_p10 }
  0x25   : > { %p2138_p8 = pnand %p2137_p4, %p2131_p1 }
  0x27   : > { %2141 = shalt.err (!%p2138_p8)
}
  0x28   : > { %s2334_s16 = smov 128   ;;  %s2335_s17 = smov 8  }
  0x29   : > { %1891 = dma.hbm_to_vmem [thread:$0]  (!%p2424_p11), %s3143_s1, 2048, %s177_s28, [#allocation6], %s2334_s16, %s2334_s16, %s2335_s17  }
  0x2a   : > { %s2336_s30 = smov [#allocation7]   ;;  %s2142_s10 = scalar_lea.hbm %s3145_s3, 1024 }
  0x2b   : > { %s189_s7 = sshll.u32 %s2336_s30, 4  ;;  %p2143_p1 = scmp.ne.s32.totalorder %s3145_s3, %s2142_s10  ;;  %s190_s7 = int_to_ptr.vmem [resolvable:$true] %s189_s7 }
  0x2c   : > { %p2149_p6 = scmp.lt.u32.totalorder %s2142_s10, %s3145_s3 }
  0x2d   : > { %p2145_p2 = pnand %p2143_p1, %p2436_p13 }
  0x2f   : > { %p2146_p4 = pneg %p2145_p2 }
  0x31   : > { %p2151_p8 = pnand %p2149_p6, %p2146_p4 }
  0x33   : > { %2154 = shalt.err (!%p2151_p8)
}
  0x34   : > { %s2155_s28 = scalar_lea.vmem %s203_s6, 1024  ;;  %p2163_p3 = scmp.lt.s32.totalorder %s203_s6, %s203_s6 }
  0x35   : > { %p2156_p10 = scmp.ne.s32.totalorder %s203_s6, %s2155_s28  ;;  %p2164_p5 = scmp.lt.s32.totalorder %s2155_s28, %s2155_s28 }
  0x37   : > { %p2158_p12 = pnand %p2156_p10, %p2436_p13  ;;  %p2165_p7 = por %p2164_p5, %p2163_p3 }
  0x39   : > { %p2159_p0 = pneg %p2158_p12 }
  0x3b   : > { %p2166_p9 = pnand %p2165_p7, %p2159_p0 }
  0x3d   : > { %2169 = shalt.err (!%p2166_p9)
}
  0x3e   : > { %s2337_s16 = smov 64   ;;  %s2338_s17 = smov 4  }
  0x3f   : > { %1897 = dma.hbm_to_vmem [thread:$0]  (!%p2424_p11), %s3145_s3, 1024, %s203_s6, [#allocation9], %s2337_s16, %s2337_s16, %s2338_s17  }
  0x40   : > { %s2170_s9 = scalar_lea.hbm %s3144_s2, 1024 }
  0x41   : > { %p2171_p1 = scmp.ne.s32.totalorder %s3144_s2, %s2170_s9  ;;  %p2177_p6 = scmp.lt.u32.totalorder %s2170_s9, %s3144_s2 }
  0x43   : > { %p2173_p2 = pnand %p2171_p1, %p2436_p13 }
  0x45   : > { %p2174_p4 = pneg %p2173_p2 }
  0x47   : > { %p2179_p8 = pnand %p2177_p6, %p2174_p4 }
  0x49   : > { %2182 = shalt.err (!%p2179_p8)
}
  0x4a   : > { %s2183_s15 = scalar_lea.vmem %s190_s7, 1024  ;;  %p2191_p3 = scmp.lt.s32.totalorder %s190_s7, %s190_s7 }
  0x4b   : > { %p2184_p10 = scmp.ne.s32.totalorder %s190_s7, %s2183_s15  ;;  %p2192_p5 = scmp.lt.s32.totalorder %s2183_s15, %s2183_s15 }
  0x4d   : > { %p2186_p12 = pnand %p2184_p10, %p2436_p13  ;;  %p2193_p7 = por %p2192_p5, %p2191_p3 }
  0x4f   : > { %p2187_p0 = pneg %p2186_p12 }
  0x51   : > { %p2194_p9 = pnand %p2193_p7, %p2187_p0 }
  0x53   : > { %2197 = shalt.err (!%p2194_p9)
}
  0x54   : > { %1894 = dma.hbm_to_vmem [thread:$0]  (!%p2424_p11), %s3144_s2, 1024, %s190_s7, [#allocation6], %s2337_s16, %s2337_s16, %s2338_s17  }
  0x55   : > { %s2339_s23 = smov [#allocation10]   ;;  %s2198_s9 = scalar_lea.hbm %s3146_s4, 128 }
  0x56   : > { %s216_s27 = sshll.u32 %s2339_s23, 4  ;;  %p2199_p1 = scmp.ne.s32.totalorder %s3146_s4, %s2198_s9  ;;  %s217_s27 = int_to_ptr.vmem [resolvable:$true] %s216_s27 }
  0x57   : > { %p2205_p6 = scmp.lt.u32.totalorder %s2198_s9, %s3146_s4 }
  0x58   : > { %p2201_p2 = pnand %p2199_p1, %p2436_p13 }
  0x5a   : > { %p2202_p4 = pneg %p2201_p2 }
  0x5c   : > { %p2207_p8 = pnand %p2205_p6, %p2202_p4 }
  0x5e   : > { %2210 = shalt.err (!%p2207_p8)
}
  0x5f   : > { %s2211_s7 = scalar_lea.vmem %s217_s27, 128  ;;  %p2219_p3 = scmp.lt.s32.totalorder %s217_s27, %s217_s27 }
  0x60   : > { %p2212_p10 = scmp.ne.s32.totalorder %s217_s27, %s2211_s7  ;;  %p2220_p5 = scmp.lt.s32.totalorder %s2211_s7, %s2211_s7 }
  0x62   : > { %p2214_p12 = pnand %p2212_p10, %p2436_p13  ;;  %p2221_p7 = por %p2220_p5, %p2219_p3 }
  0x64   : > { %p2215_p0 = pneg %p2214_p12 }
  0x66   : > { %p2222_p9 = pnand %p2221_p7, %p2215_p0 }
  0x68   : > { %2225 = shalt.err (!%p2222_p9)
}
  0x69   : > { %1900 = dma.hbm_to_vmem [thread:$0]  (!%p2424_p11), %s3146_s4, 128, %s217_s27, [#allocation9]  }
  0x6a   : > { %s2513_s12 = sadd.s32 1, %s2330_s21   ;;  %s30_s28 = sadd.s32 1, %s2326_s20 }
  0x6b   : > { %s27_s29 = ssub.s32 %s2330_s21, %s2513_s12  ;;  %p37_p13 = scmp.ne.s32.totalorder %s2326_s20, %s2322_s19 }
  0x6c   : > { %p28_p1 = scmp.eq.s32.totalorder %s27_s29, 0  ;;  %p38_p2 = scmp.eq.s32.totalorder %s2330_s21, 0 }
  0x6d   : > { %p3174_p4 = scmp.eq.s32.totalorder %s2396_s22, 1  ;;  %p1913_p8 = scmp.lt.s32.totalorder %s2330_s21, 2 }
  0x6e   : > { %s2529_s30 = scalar_select %p28_p1, %s2326_s20, %s30_s28  }
  0x6f   : > { %p2523_p6 = por %p3174_p4, %p37_p13  ;;  %p39_p10 = por %p38_p2, %p37_p13 }
  0x70   : > { %s227_s8 = sand.u32 1, %s2326_s20   ;;  %s1707_s27 = sshll.u32 %s2330_s21, 10 }
  0x71   : > { %s1615_s9 = sshll.u32 %s227_s8, 6  ;;  %s2536_s13 = scalar_lea.hbm %s3142_s0, %s1707_s27 }
  0x72   : > { %s231_s14 = scalar_lea.vmem [#allocation2], %s1615_s9  ;;  %p2540_p11 = pnand %p1913_p8, %p39_p10 }
  0x73   : > { %s238_s7 = sshll.u32 %s231_s14, 4  ;;  %s2544_s6 = scalar_lea.sflag [#allocation3], %s227_s8  ;;  %s2538_s7 = int_to_ptr.vmem [resolvable:$true] %s238_s7 }
  0x74   : > { %s2226_s28 = scalar_lea.hbm %s2536_s13, 1024  ;;  %p2228_p0 = pneg %p2540_p11 }
  0x75   : > { %p2227_p12 = scmp.ne.s32.totalorder %s2536_s13, %s2226_s28  ;;  %s2231_s27 = scalar_lea.hbm %s3142_s0, 2048 }
  0x76   : > { %p2232_p7 = scmp.lt.u32.totalorder %s2536_s13, %s3142_s0  ;;  %p2233_p9 = scmp.lt.u32.totalorder %s2231_s27, %s2226_s28 }
  0x77   : > { %p2229_p3 = pnand %p2228_p0, %p2227_p12  ;;  %p2235_p1 = scmp.lt.u32.totalorder %s2226_s28, %s2536_s13 }
  0x78   : > { %p2234_p13 = por %p2233_p9, %p2232_p7 }
  0x79   : > { %p2230_p5 = pneg %p2229_p3 }
  0x7a   : > { %p2236_p2 = por %p2235_p1, %p2234_p13 }
  0x7c   : > { %p2237_p4 = pnand %p2236_p2, %p2230_p5 }
  0x7e   : > { %2240 = shalt.err (!%p2237_p4)
}
  0x7f   : > { %s2241_s8 = scalar_lea.vmem %s2538_s7, 1024  ;;  %s2340_s14 = smov [#allocation2]  }
  0x80   : > { %p2242_p8 = scmp.ne.s32.totalorder %s2538_s7, %s2241_s8  ;;  %s2246_s29 = sshll.u32 %s2340_s14, 4  ;;  %s2247_s29 = int_to_ptr.vmem [resolvable:$false] %s2246_s29 }
  0x81   : > { %s2248_s9 = scalar_lea.vmem %s2247_s29, 2048  ;;  %p2249_p3 = scmp.lt.s32.totalorder %s2538_s7, %s2247_s29 }
  0x82   : > { %p2244_p10 = pnand %p2242_p8, %p2228_p0  ;;  %p2250_p7 = scmp.lt.s32.totalorder %s2248_s9, %s2241_s8 }
  0x84   : > { %p2245_p12 = pneg %p2244_p10  ;;  %p2251_p9 = por %p2250_p7, %p2249_p3 }
  0x86   : > { %p2252_p13 = pnand %p2251_p9, %p2245_p12 }
  0x88   : > { %2255 = shalt.err (!%p2252_p13)
}
  0x89   : > { %1904 = dma.hbm_to_vmem [thread:$0]  (!%p2540_p11), %s2536_s13, 1024, %s2538_s7, %s2544_s6, %s2337_s16, %s2337_s16, %s2338_s17  }
  0x8a   : > { %p3177_p0 = scmp.ne.s32.totalorder %s3171_s26, 0 }
  0x8c   : > { %250 = sbr.rel (%p3177_p0) target bundleno = 1133 (0x46d), region = 40 }
  0x93   : > { %s2578_s28 = sand.u32 1, %s2322_s19   ;;  %p3178_p5 = scmp.ne.s32.totalorder %s3169_s24, 0 }
  0x94   : > { %s1619_s27 = sshll.u32 %s2578_s28, 6  ;;  %s253_s10 = scalar_lea.sflag [#allocation3], %s2578_s28 }
  0x95   : > { %s2584_s15 = scalar_lea.vmem [#allocation2], %s1619_s27 }
  0x96   : > { %2301 = dma.done.wait (%p3178_p5), %s253_s10, 1024  }
  0x97   : > { %2303 = vsyncadd (%p3178_p5), %s253_s10, 4294966272  ;;  %p3179_p11 = scmp.eq.s32.totalorder %s2396_s22, 0 }
  0x99   : > { %2305 = dma.done.wait (%p3179_p11), [#allocation6], 3072   ;;  %p3180_p1 = pmov %p3179_p11 }
  0x9b   : > { %2307 = vsyncadd (%p3180_p1), [#allocation6], 4294964224  ;;  %p3181_p2 = pmov %p3180_p1 }
  0x9c   : > { %p3182_p4 = pmov %p3180_p1 }
  0x9d   : > { %2309 = dma.done.wait (%p3181_p2), [#allocation9], 1152  }
  0x9e   : > { %2311 = vsyncadd (%p3182_p4), [#allocation9], 4294966144  ;;  %v2341_v0 = vmov 0   ;;  %v1962_v1 = vld [vmem:[#allocation5 + $0x4] ss:$8 sps:$4 sm:$0xff]   ;;  %v1996_v16 = vld [vmem:[#allocation7 + $0x10] sm:$0xff]  }
  0x9f   : > { %515 = vmatprep.mubr.bf16.mxu0 %v2341_v0  ;;  %v1964_v2 = vld [vmem:[#allocation5] ss:$8 sps:$4 sm:$0xff]   ;;  %483 = vmatprep.subr.bf16.mxu0 %v1962_v1  ;;  %v1965_v3 = vld [vmem:[#allocation5 + $0x14] ss:$8 sps:$4 sm:$0xff]   ;;  %v1967_v4 = vld [vmem:[#allocation5 + $0x10] ss:$8 sps:$4 sm:$0xff]  }
  0xa0   : > { %484 = vmatpush1.bf16.msra.mxu0 %v1964_v2  ;;  %v1968_v5 = vld [vmem:[#allocation5 + $0x24] ss:$8 sps:$4 sm:$0xff]   ;;  %v1970_v6 = vld [vmem:[#allocation5 + $0x20] ss:$8 sps:$4 sm:$0xff]   ;;  %v1971_v7 = vld [vmem:[#allocation5 + $0x34] ss:$8 sps:$4 sm:$0xff]  }
  0xa1   : > { %485 = vmatprep.subr.bf16.mxu0 %v1965_v3  ;;  %v1973_v8 = vld [vmem:[#allocation5 + $0x30] ss:$8 sps:$4 sm:$0xff]   ;;  %v1974_v9 = vld [vmem:[#allocation5 + $0x44] ss:$8 sps:$4 sm:$0xff]   ;;  %v1976_v10 = vld [vmem:[#allocation5 + $0x40] ss:$8 sps:$4 sm:$0xff]  }
  0xa2   : > { %v1994_v11 = vld [vmem:[#allocation7] sm:$0xff]   ;;  %v1995_v12 = vld [vmem:[#allocation7 + $0x8] sm:$0xff]   ;;  %v1977_v13 = vld [vmem:[#allocation5 + $0x54] ss:$8 sps:$4 sm:$0xff]   ;;  %s3034_s24 = scalar_lea.vmem [#allocation11], %s1619_s27  ;;  %s1724_s26 = sshll.u32 %s2396_s22, 10 }
  0xa3   : > { %1804 = vmatprep.subr.bf16.mxu1 %v1994_v11  ;;  %v1979_v14 = vld [vmem:[#allocation5 + $0x50] ss:$8 sps:$4 sm:$0xff]   ;;  %v1980_v15 = vld [vmem:[#allocation5 + $0x64] ss:$8 sps:$4 sm:$0xff]   ;;  %v1982_v18 = vld [vmem:[#allocation5 + $0x60] ss:$8 sps:$4 sm:$0xff]   ;;  %s3094_s7 = scalar_lea.hbm %s3147_s5, %s1724_s26 }
  0xa4   : > { %486 = vmatpush1.bf16.msra.mxu0 %v1967_v4  ;;  %1805 = vmatpush3.bf16.msra.mxu1 %v1994_v11  ;;  %v1997_v17 = vld [vmem:[#allocation7 + $0x18] sm:$0xff]   ;;  %v1998_v20 = vld [vmem:[#allocation7 + $0x20] sm:$0xff]   ;;  %v2605_v23 = vld [vmem:[%s2584_s15 + $0x8] sm:$0xff]   ;;  %s1497_s16 = sshll.u32 %s3034_s24, 4  ;;  %s1484_s22 = scalar_lea.sflag [#allocation4], %s2578_s28  ;;  %s3096_s16 = int_to_ptr.vmem [resolvable:$true] %s1497_s16 }
  0xa5   : > { %487 = vmatprep.subr.bf16.mxu0 %v1968_v5  ;;  %1806 = vmatprep.subr.bf16.mxu1 %v1995_v12  ;;  %v1983_v19 = vld [vmem:[#allocation5 + $0x74] ss:$8 sps:$4 sm:$0xff]   ;;  %v1985_v21 = vld [vmem:[#allocation5 + $0x70] ss:$8 sps:$4 sm:$0xff]   ;;  %v2600_v22 = vld [vmem:[%s2584_s15] sm:$0xff]   ;;  %s2256_s6 = scalar_lea.vmem %s3096_s16, 1024 }
  0xa6   : > { %v2610_v24 = vld [vmem:[%s2584_s15 + $0x10] sm:$0xff]   ;;  %v2615_v25 = vld [vmem:[%s2584_s15 + $0x18] sm:$0xff]   ;;  %v2620_v26 = vld [vmem:[%s2584_s15 + $0x20] sm:$0xff]   ;;  %p2257_p8 = scmp.ne.s32.totalorder %s3096_s16, %s2256_s6  ;;  %s2342_s11 = smov [#allocation11]  }
  0xa7   : > { %v2625_v27 = vld [vmem:[%s2584_s15 + $0x28] sm:$0xff]   ;;  %v2630_v28 = vld [vmem:[%s2584_s15 + $0x30] sm:$0xff]   ;;  %v2635_v29 = vld [vmem:[%s2584_s15 + $0x38] sm:$0xff]   ;;  %s2260_s8 = sshll.u32 %s2342_s11, 4  ;;  %s2261_s8 = int_to_ptr.vmem [resolvable:$false] %s2260_s8 }
  0xa8   : > { %488 = vmatpush1.bf16.msra.mxu0 %v1970_v6  ;;  %1807 = vmatpush3.bf16.msra.mxu1 %v1995_v12  ;;  %v1999_v30 = vld [vmem:[#allocation7 + $0x28] sm:$0xff]   ;;  %v2000_v31 = vld [vmem:[#allocation7 + $0x30] sm:$0xff]   ;;  %v2001_v32 = vld [vmem:[#allocation7 + $0x38] sm:$0xff]   ;;  %p2258_p10 = pnand %p2257_p8, %p2523_p6  ;;  %s2262_s14 = scalar_lea.vmem %s2261_s8, 2048 }
  0xa9   : > { %489 = vmatprep.subr.bf16.mxu0 %v1971_v7  ;;  %1808 = vmatprep.subr.bf16.mxu1 %v1996_v16  ;;  %v1649_v33 = vld [vmem:[#allocation10] ss:$0 sm:$0xff]  ;;  %p2263_p3 = scmp.lt.s32.totalorder %s3096_s16, %s2261_s8  ;;  %p2264_p7 = scmp.lt.s32.totalorder %s2262_s14, %s2256_s6 }
  0xaa   : > { %p2259_p12 = pneg %p2258_p10 }
  0xab   : > { %p2265_p9 = por %p2264_p7, %p2263_p3 }
  0xac   : > { %490 = vmatpush1.bf16.msra.mxu0 %v1973_v8  ;;  %1809 = vmatpush3.bf16.msra.mxu1 %v1996_v16 }
  0xad   : > { %491 = vmatprep.subr.bf16.mxu0 %v1974_v9  ;;  %1810 = vmatprep.subr.bf16.mxu1 %v1997_v17  ;;  %p2266_p13 = pnand %p2265_p9, %p2259_p12 }
  0xb0   : > { %492 = vmatpush1.bf16.msra.mxu0 %v1976_v10  ;;  %1811 = vmatpush3.bf16.msra.mxu1 %v1997_v17 }
  0xb1   : > { %493 = vmatprep.subr.bf16.mxu0 %v1977_v13  ;;  %1812 = vmatprep.subr.bf16.mxu1 %v1998_v20 }
  0xb4   : > { %494 = vmatpush1.bf16.msra.mxu0 %v1979_v14  ;;  %1813 = vmatpush3.bf16.msra.mxu1 %v1998_v20 }
  0xb5   : > { %495 = vmatprep.subr.bf16.mxu0 %v1980_v15  ;;  %1814 = vmatprep.subr.bf16.mxu1 %v1999_v30 }
  0xb8   : > { %496 = vmatpush1.bf16.msra.mxu0 %v1982_v18  ;;  %1815 = vmatpush3.bf16.msra.mxu1 %v1999_v30 }
  0xb9   : > { %497 = vmatprep.subr.bf16.mxu0 %v1983_v19  ;;  %1816 = vmatprep.subr.bf16.mxu1 %v2000_v31 }
  0xbc   : > { %498 = vmatpush1.bf16.msra.mxu0 %v1985_v21  ;;  %1817 = vmatpush3.bf16.msra.mxu1 %v2000_v31 }
  0xbd   : > { %1818 = vmatprep.subr.bf16.mxu1 %v2001_v32 }
  0xbf   : > { %516 = vmatmul.mubr.bf16.vlgmr.msra.gmra.mrb[0].mxu0 %v2600_v22 }
  0xc0   : > { %525 = vmatprep.mubr.bf16.mxu0 %v2341_v0  ;;  %1819 = vmatpush3.bf16.msra.mxu1 %v2001_v32 }
  0xc7   : > { %526 = vmatmul.mubr.bf16.gmra.mrb[4].mxu0 %v2605_v23 }
  0xc8   : > { %535 = vmatprep.mubr.bf16.mxu0 %v2341_v0 }
  0xcf   : > { %536 = vmatmul.mubr.bf16.gmra.mrb[8].mxu0 %v2610_v24 }
  0xd0   : > { %545 = vmatprep.mubr.bf16.mxu0 %v2341_v0 }
  0xd7   : > { %546 = vmatmul.mubr.bf16.gmra.mrb[12].mxu0 %v2615_v25 }
  0xd8   : > { %555 = vmatprep.mubr.bf16.mxu0 %v2341_v0 }
  0xdf   : > { %556 = vmatmul.mubr.bf16.gmra.mrb[16].mxu0 %v2620_v26 }
  0xe0   : > { %565 = vmatprep.mubr.bf16.mxu0 %v2341_v0 }
  0xe7   : > { %566 = vmatmul.mubr.bf16.gmra.mrb[20].mxu0 %v2625_v27 }
  0xe8   : > { %575 = vmatprep.mubr.bf16.mxu0 %v2341_v0 }
  0xef   : > { %576 = vmatmul.mubr.bf16.gmra.mrb[24].mxu0 %v2630_v28 }
  0xf0   : > { %585 = vmatprep.mubr.bf16.mxu0 %v2341_v0 }
  0xf7   : > { %586 = vmatmul.mubr.bf16.gmra.mrb[28].mxu0 %v2635_v29 }
 0x192   : > { %v517_v34 = vpop.f32.mrb[0].mxu0 }
 0x193   : > { %v2638_v35 = vpop.f32.mrb[1].mxu0  ;;  %v600_v37 = vadd.f32 %v1649_v33, %v517_v34 }
 0x194   : > { %v521_v36 = vpop.f32.mrb[2].mxu0 }
 0x195   : > { %v601_v38 = vadd.f32 %v1649_v33, %v521_v36  ;;  %v2640_v39 = vpop.f32.mrb[3].mxu0  ;;  %v2670_v36 = vld [vmem:[#allocation10 + $0x1] ss:$0 sm:$0xff] }
 0x197   : > { %v616_v40 = vpack.c.bf16 %v601_v38, %v600_v37  ;;  %v2673_v37 = vunpack.c.l.bf16 %v2605_v23  ;;  %v2676_v38 = vunpack.c.l.bf16 %v2600_v22 }
 0x199   : > { %1820 = vmatprep.mubr.bf16.mxu1 %v616_v40 }
 0x19a   : > { %v527_v41 = vpop.f32.mrb[4].mxu0 }
 0x19b   : > { %v2642_v42 = vpop.f32.mrb[5].mxu0  ;;  %v602_v44 = vadd.f32 %v1649_v33, %v527_v41 }
 0x19c   : > { %v531_v43 = vpop.f32.mrb[6].mxu0 }
 0x19d   : > { %v603_v45 = vadd.f32 %v1649_v33, %v531_v43  ;;  %v2644_v46 = vpop.f32.mrb[7].mxu0 }
 0x19f   : > { %v617_v47 = vpack.c.bf16 %v603_v45, %v602_v44 }
 0x1a1   : > { %1821 = vmatmul.mubr.bf16.vlgmr.msra.gmra.mrb[0].mxu1 %v617_v47 }
 0x1a2   : > { %v537_v48 = vpop.f32.mrb[8].mxu0 }
 0x1a3   : > { %v2646_v49 = vpop.f32.mrb[9].mxu0  ;;  %v604_v51 = vadd.f32 %v1649_v33, %v537_v48 }
 0x1a4   : > { %v541_v50 = vpop.f32.mrb[10].mxu0 }
 0x1a5   : > { %v605_v52 = vadd.f32 %v1649_v33, %v541_v50  ;;  %v2648_v53 = vpop.f32.mrb[11].mxu0 }
 0x1a7   : > { %v618_v54 = vpack.c.bf16 %v605_v52, %v604_v51  ;;  %v2693_v52 = vunpack.c.h.bf16 %v2600_v22  ;;  %v2709_v22 = vunpack.c.l.bf16 %v2615_v25 }
 0x1a9   : > { %1824 = vmatprep.mubr.bf16.mxu1 %v618_v54 }
 0x1aa   : > { %v547_v55 = vpop.f32.mrb[12].mxu0 }
 0x1ab   : > { %v2650_v56 = vpop.f32.mrb[13].mxu0  ;;  %v606_v58 = vadd.f32 %v1649_v33, %v547_v55 }
 0x1ac   : > { %v551_v57 = vpop.f32.mrb[14].mxu0 }
 0x1ad   : > { %v607_v59 = vadd.f32 %v1649_v33, %v551_v57  ;;  %v2652_v60 = vpop.f32.mrb[15].mxu0 }
 0x1af   : > { %v619_v61 = vpack.c.bf16 %v607_v59, %v606_v58 }
 0x1b1   : > { %1825 = vmatmul.mubr.bf16.gmra.mrb[4].mxu1 %v619_v61 }
 0x1b2   : > { %v557_v62 = vpop.f32.mrb[16].mxu0 }
 0x1b3   : > { %v2654_v63 = vpop.f32.mrb[17].mxu0  ;;  %v608_v1 = vadd.f32 %v1649_v33, %v557_v62 }
 0x1b4   : > { %v561_v0 = vpop.f32.mrb[18].mxu0 }
 0x1b5   : > { %v609_v2 = vadd.f32 %v1649_v33, %v561_v0  ;;  %v2656_v3 = vpop.f32.mrb[19].mxu0  ;;  %v2716_v0 = vunpack.c.h.bf16 %v2615_v25  ;;  %v2728_v25 = vunpack.c.h.bf16 %v2610_v24 }
 0x1b7   : > { %v620_v4 = vpack.c.bf16 %v609_v2, %v608_v1  ;;  %3187 = vst [vmem:[#allocation20_spill] sm:$0xff] %v2728_v25 }
 0x1b9   : > { %1828 = vmatprep.mubr.bf16.mxu1 %v620_v4 }
 0x1ba   : > { %v567_v5 = vpop.f32.mrb[20].mxu0 }
 0x1bb   : > { %v2658_v6 = vpop.f32.mrb[21].mxu0  ;;  %v610_v8 = vadd.f32 %v1649_v33, %v567_v5 }
 0x1bc   : > { %v571_v7 = vpop.f32.mrb[22].mxu0 }
 0x1bd   : > { %v611_v9 = vadd.f32 %v1649_v33, %v571_v7  ;;  %v2660_v10 = vpop.f32.mrb[23].mxu0 }
 0x1bf   : > { %v621_v11 = vpack.c.bf16 %v611_v9, %v610_v8  ;;  %v2724_v9 = vunpack.c.l.bf16 %v2610_v24 }
 0x1c1   : > { %1829 = vmatmul.mubr.bf16.gmra.mrb[8].mxu1 %v621_v11 }
 0x1c2   : > { %v577_v12 = vpop.f32.mrb[24].mxu0 }
 0x1c3   : > { %v2662_v13 = vpop.f32.mrb[25].mxu0  ;;  %v612_v15 = vadd.f32 %v1649_v33, %v577_v12 }
 0x1c4   : > { %3183 = vst [vmem:[#allocation16_spill] sm:$0xff] %v2662_v13  ;;  %v581_v14 = vpop.f32.mrb[26].mxu0 }
 0x1c5   : > { %v613_v16 = vadd.f32 %v1649_v33, %v581_v14  ;;  %v2664_v17 = vpop.f32.mrb[27].mxu0 }
 0x1c6   : > { %3184 = vst [vmem:[#allocation17_spill] sm:$0xff] %v2664_v17 }
 0x1c7   : > { %v622_v18 = vpack.c.bf16 %v613_v16, %v612_v15 }
 0x1c9   : > { %1832 = vmatprep.mubr.bf16.mxu1 %v622_v18  ;;  %v2002_v18 = vld [vmem:[#allocation8] sm:$0xff]  }
 0x1ca   : > { %v587_v19 = vpop.f32.mrb[28].mxu0  ;;  %1836 = vmatprep.subr.bf16.mxu1 %v2002_v18 }
 0x1cb   : > { %v2666_v20 = vpop.f32.mrb[29].mxu0  ;;  %v614_v30 = vadd.f32 %v1649_v33, %v587_v19  ;;  %1837 = vmatpush3.bf16.msra.mxu1 %v2002_v18 }
 0x1cc   : > { %3185 = vst [vmem:[#allocation18_spill] sm:$0xff] %v2666_v20  ;;  %v591_v21 = vpop.f32.mrb[30].mxu0 }
 0x1cd   : > { %v615_v31 = vadd.f32 %v1649_v33, %v591_v21  ;;  %v2668_v32 = vpop.f32.mrb[31].mxu0  ;;  %v2681_v33 = vunpack.c.h.bf16 %v2605_v23  ;;  %v2003_v21 = vld [vmem:[#allocation8 + $0x8] sm:$0xff]  }
 0x1ce   : > { %3186 = vst [vmem:[#allocation19_spill] sm:$0xff] %v2668_v32  ;;  %1838 = vmatprep.subr.bf16.mxu1 %v2003_v21 }
 0x1cf   : > { %v623_v34 = vpack.c.bf16 %v615_v31, %v614_v30  ;;  %v2749_v30 = vunpack.c.l.bf16 %v2625_v27  ;;  %1839 = vmatpush3.bf16.msra.mxu1 %v2003_v21 }
 0x1d1   : > { %1833 = vmatmul.mubr.bf16.gmra.mrb[12].mxu1 %v623_v34  ;;  %3188 = vst [vmem:[#allocation21_spill] sm:$0xff] %v2749_v30 }
 0x274   : > { %v1822_v40 = vpop.f32.mrb[0].mxu1 }
 0x275   : > { %v735_v41 = vadd.f32 %v1822_v40, %v2670_v36  ;;  %v726_v43 = vpop.f32.mrb[1].mxu1  ;;  %v2754_v40 = vunpack.c.h.bf16 %v2625_v27  ;;  %v2764_v27 = vunpack.c.l.bf16 %v2620_v26 }
 0x276   : > { %v727_v44 = vadd.f32 %v2670_v36, %v726_v43  ;;  %v1823_v45 = vpop.f32.mrb[2].mxu1 }
 0x277   : > { %v2684_v47 = vadd.f32 %v735_v41, %v2673_v37  ;;  %v738_v48 = vadd.f32 %v1823_v45, %v2670_v36  ;;  %v729_v50 = vpop.f32.mrb[3].mxu1  ;;  %3189 = vst [vmem:[#allocation22_spill] sm:$0xff] %v2754_v40  ;;  %3190 = vst [vmem:[#allocation23_spill] sm:$0xff] %v2764_v27 }
 0x278   : > { %v2688_v51 = vadd.f32 %v727_v44, %v2676_v38  ;;  %v730_v23 = vadd.f32 %v2670_v36, %v729_v50 }
 0x279   : > { %809 = vadd.xlane.f32.xlu1 %v2684_v47  ;;  %v2696_v54 = vadd.f32 %v738_v48, %v2681_v33  ;;  %v856_v55 = vmul.f32 %v2684_v47, %v2684_v47  ;;  %v2004_v48 = vld [vmem:[#allocation8 + $0x10] sm:$0xff]  }
 0x27a   : > { %805 = vadd.xlane.f32.xlu0 %v2688_v51  ;;  %v2703_v57 = vadd.f32 %v730_v23, %v2693_v52  ;;  %v854_v62 = vmul.f32 %v2688_v51, %v2688_v51  ;;  %1840 = vmatprep.subr.bf16.mxu1 %v2004_v48 }
 0x27b   : > { %v857_v58 = vmul.f32 %v2696_v54, %v2696_v54  ;;  %1841 = vmatpush3.bf16.msra.mxu1 %v2004_v48 }
 0x27c   : > { %v855_v59 = vmul.f32 %v2703_v57, %v2703_v57 }
 0x27d   : > { %811 = vadd.xlane.f32.xlu1 %v2696_v54 }
 0x27e   : > { %874 = vadd.xlane.f32.xlu0 %v856_v55 }
 0x281   : > { %876 = vadd.xlane.f32.xlu1 %v857_v58 }
 0x282   : > { %807 = vadd.xlane.f32.xlu0 %v2703_v57 }
 0x284   : > { %v1826_v61 = vpop.f32.mrb[4].mxu1 }
 0x285   : > { %v751_v1 = vadd.f32 %v1826_v61, %v2670_v36  ;;  %872 = vadd.xlane.f32.xlu1 %v855_v59  ;;  %v742_v2 = vpop.f32.mrb[5].mxu1  ;;  %v2768_v59 = vunpack.c.h.bf16 %v2620_v26  ;;  %v2006_v26 = vld [vmem:[#allocation8 + $0x20] sm:$0xff]  }
 0x286   : > { %v1827_v4 = vpop.f32.mrb[6].mxu1  ;;  %870 = vadd.xlane.f32.xlu0 %v854_v62  ;;  %v743_v11 = vadd.f32 %v2670_v36, %v742_v2 }
 0x287   : > { %v2720_v5 = vadd.f32 %v751_v1, %v2709_v22  ;;  %v754_v7 = vadd.f32 %v1827_v4, %v2670_v36  ;;  %v745_v8 = vpop.f32.mrb[7].mxu1  ;;  %3191 = vst [vmem:[#allocation24_spill] sm:$0xff] %v2768_v59  ;;  %v2005_v1 = vld [vmem:[#allocation8 + $0x18] sm:$0xff]  }
 0x288   : > { %v746_v14 = vadd.f32 %v2670_v36, %v745_v8  ;;  %v2737_v15 = vadd.f32 %v743_v11, %v2724_v9  ;;  %1842 = vmatprep.subr.bf16.mxu1 %v2005_v1  ;;  %v2007_v11 = vld [vmem:[#allocation8 + $0x28] sm:$0xff]  }
 0x289   : > { %v2731_v12 = vadd.f32 %v754_v7, %v2716_v0  ;;  %v860_v24 = vmul.f32 %v2720_v5, %v2720_v5  ;;  %1843 = vmatpush3.bf16.msra.mxu1 %v2005_v1  ;;  %v2009_v1 = vld [vmem:[#allocation8 + $0x38] sm:$0xff]  }
 0x28a   : > { %817 = vadd.xlane.f32.xlu0 %v2720_v5  ;;  %v2740_v16 = vadd.f32 %v746_v14, %v2728_v25  ;;  %v858_v34 = vmul.f32 %v2737_v15, %v2737_v15  ;;  %1844 = vmatprep.subr.bf16.mxu1 %v2006_v26  ;;  %v2789_v14 = vunpack.c.l.bf16 %v2635_v29 }
 0x28b   : > { %819 = vadd.xlane.f32.xlu1 %v2731_v12  ;;  %v861_v19 = vmul.f32 %v2731_v12, %v2731_v12 }
 0x28c   : > { %v859_v44 = vmul.f32 %v2740_v16, %v2740_v16  ;;  %3192 = vst [vmem:[#allocation25_spill] sm:$0xff] %v2789_v14 }
 0x28d   : > { %1845 = vmatpush3.bf16.msra.mxu1 %v2006_v26 }
 0x28e   : > { %813 = vadd.xlane.f32.xlu0 %v2737_v15  ;;  %1846 = vmatprep.subr.bf16.mxu1 %v2007_v11 }
 0x28f   : > { %815 = vadd.xlane.f32.xlu1 %v2740_v16 }
 0x291   : > { %1847 = vmatpush3.bf16.msra.mxu1 %v2007_v11 }
 0x292   : > { %882 = vadd.xlane.f32.xlu0 %v860_v24 }
 0x293   : > { %884 = vadd.xlane.f32.xlu1 %v861_v19  ;;  %v2794_v19 = vunpack.c.h.bf16 %v2635_v29  ;;  %v2804_v29 = vunpack.c.l.bf16 %v2630_v28 }
 0x294   : > { %v1830_v31 = vpop.f32.mrb[8].mxu1 }
 0x295   : > { %v767_v41 = vadd.f32 %v1830_v31, %v2670_v36  ;;  %v758_v43 = vpop.f32.mrb[9].mxu1  ;;  %3193 = vst [vmem:[#allocation26_spill] sm:$0xff] %v2794_v19  ;;  %3194 = vst [vmem:[#allocation27_spill] sm:$0xff] %v2804_v29 }
 0x296   : > { %v1831_v45 = vpop.f32.mrb[10].mxu1  ;;  %878 = vadd.xlane.f32.xlu0 %v858_v34  ;;  %v759_v58 = vadd.f32 %v2670_v36, %v758_v43  ;;  %v2008_v43 = vld [vmem:[#allocation8 + $0x30] sm:$0xff]  }
 0x297   : > { %v2760_v50 = vadd.f32 %v767_v41, %v2749_v30  ;;  %v770_v23 = vadd.f32 %v1831_v45, %v2670_v36  ;;  %880 = vadd.xlane.f32.xlu1 %v859_v44  ;;  %v761_v55 = vpop.f32.mrb[11].mxu1  ;;  %1848 = vmatprep.subr.bf16.mxu1 %v2008_v43 }
 0x298   : > { %v762_v62 = vadd.f32 %v2670_v36, %v761_v55  ;;  %v2777_v2 = vadd.f32 %v759_v58, %v2764_v27  ;;  %v2808_v55 = vunpack.c.h.bf16 %v2630_v28  ;;  %1849 = vmatpush3.bf16.msra.mxu1 %v2008_v43 }
 0x299   : > { %v2771_v61 = vadd.f32 %v770_v23, %v2754_v40  ;;  %v864_v7 = vmul.f32 %v2760_v50, %v2760_v50  ;;  %1850 = vmatprep.subr.bf16.mxu1 %v2009_v1 }
 0x29a   : > { %825 = vadd.xlane.f32.xlu0 %v2760_v50  ;;  %v2780_v4 = vadd.f32 %v762_v62, %v2768_v59  ;;  %v862_v24 = vmul.f32 %v2777_v2, %v2777_v2  ;;  %3195 = vst [vmem:[#allocation28_spill] sm:$0xff] %v2808_v55 }
 0x29b   : > { %827 = vadd.xlane.f32.xlu1 %v2771_v61  ;;  %v865_v8 = vmul.f32 %v2771_v61, %v2771_v61 }
 0x29c   : > { %v863_v34 = vmul.f32 %v2780_v4, %v2780_v4  ;;  %1851 = vmatpush3.bf16.msra.mxu1 %v2009_v1 }
 0x29e   : > { %821 = vadd.xlane.f32.xlu0 %v2777_v2 }
 0x29f   : > { %823 = vadd.xlane.f32.xlu1 %v2780_v4 }
 0x2a2   : > { %890 = vadd.xlane.f32.xlu0 %v864_v7 }
 0x2a3   : > { %892 = vadd.xlane.f32.xlu1 %v865_v8 }
 0x2a4   : > { %v1834_v18 = vpop.f32.mrb[12].mxu1 }
 0x2a5   : > { %v783_v21 = vadd.f32 %v1834_v18, %v2670_v36  ;;  %v774_v31 = vpop.f32.mrb[13].mxu1 }
 0x2a6   : > { %v1835_v41 = vpop.f32.mrb[14].mxu1  ;;  %886 = vadd.xlane.f32.xlu0 %v862_v24  ;;  %v775_v23 = vadd.f32 %v2670_v36, %v774_v31 }
 0x2a7   : > { %v2800_v44 = vadd.f32 %v783_v21, %v2789_v14  ;;  %v786_v45 = vadd.f32 %v1835_v41, %v2670_v36  ;;  %888 = vadd.xlane.f32.xlu1 %v863_v34  ;;  %v777_v48 = vpop.f32.mrb[15].mxu1 }
 0x2a8   : > { %v778_v62 = vadd.f32 %v2670_v36, %v777_v48  ;;  %v2817_v26 = vadd.f32 %v775_v23, %v2804_v29 }
 0x2a9   : > { %v2811_v58 = vadd.f32 %v786_v45, %v2794_v19  ;;  %v868_v8 = vmul.f32 %v2800_v44, %v2800_v44 }
 0x2aa   : > { %833 = vadd.xlane.f32.xlu0 %v2800_v44  ;;  %v2820_v7 = vadd.f32 %v778_v62, %v2808_v55  ;;  %v866_v28 = vmul.f32 %v2817_v26, %v2817_v26 }
 0x2ab   : > { %835 = vadd.xlane.f32.xlu1 %v2811_v58  ;;  %v869_v11 = vmul.f32 %v2811_v58, %v2811_v58 }
 0x2ac   : > { %v867_v36 = vmul.f32 %v2820_v7, %v2820_v7 }
 0x2ae   : > { %829 = vadd.xlane.f32.xlu0 %v2817_v26 }
 0x2af   : > { %831 = vadd.xlane.f32.xlu1 %v2820_v7 }
 0x2b2   : > { %894 = vadd.xlane.f32.xlu0 %v866_v28 }
 0x2b3   : > { %896 = vadd.xlane.f32.xlu1 %v867_v36 }
 0x2b6   : > { %898 = vadd.xlane.f32.xlu0 %v868_v8 }
 0x2b7   : > { %900 = vadd.xlane.f32.xlu1 %v869_v11 }
 0x306   : > { %v810_v18 = vpop.xlane.xlu1 %809 }
 0x307   : > { %v806_v24 = vpop.xlane.xlu0 %805  ;;  %v840_v21 = vmul.f32 0.0078125, %v810_v18 }
 0x308   : > { %v2832_v36 = vmul.f32 0.0078125, %v806_v24 }
 0x309   : > { %v920_v43 = vmul.f32 %v840_v21, %v840_v21 }
 0x30a   : > { %v812_v31 = vpop.xlane.xlu1 %811 }
 0x30b   : > { %v841_v34 = vmul.f32 0.0078125, %v812_v31  ;;  %v875_v41 = vpop.xlane.xlu0 %874  ;;  %v918_v31 = vmul.f32 %v2832_v36, %v2832_v36 }
 0x30c   : > { %v904_v45 = vmul.f32 0.0078125, %v875_v41 }
 0x30d   : > { %v921_v62 = vmul.f32 %v841_v34, %v841_v34 }
 0x30e   : > { %v936_v48 = vsub.f32 %v904_v45, %v920_v43  ;;  %v877_v23 = vpop.xlane.xlu1 %876 }
 0x30f   : > { %v905_v1 = vmul.f32 0.0078125, %v877_v23  ;;  %v808_v28 = vpop.xlane.xlu0 %807 }
 0x310   : > { %v952_v55 = vmax.f32 %v936_v48, 0.0  ;;  %v839_v19 = vmul.f32 0.0078125, %v808_v28 }
 0x311   : > { %v937_v29 = vsub.f32 %v905_v1, %v921_v62 }
 0x312   : > { %v984_v8 = vadd.f32 1e-05, %v952_v55  ;;  %v919_v11 = vmul.f32 %v839_v19, %v839_v19  ;;  %v873_v14 = vpop.xlane.xlu1 %872 }
 0x313   : > { %v953_v59 = vmax.f32 %v937_v29, 0.0  ;;  %v903_v18 = vmul.f32 0.0078125, %v873_v14  ;;  %v871_v40 = vpop.xlane.xlu0 %870 }
 0x314   : > { %v902_v41 = vmul.f32 0.0078125, %v871_v40  ;;  %2018 = vrsqrt.f32 %v984_v8  ;;  %v969_v8 = vsub.f32 %v2696_v54, %v841_v34  ;;  %v967_v54 = vsub.f32 %v2703_v57, %v839_v19 }
 0x315   : > { %v985_v43 = vadd.f32 1e-05, %v953_v59  ;;  %v935_v45 = vsub.f32 %v903_v18, %v919_v11 }
 0x316   : > { %v934_v23 = vsub.f32 %v902_v41, %v918_v31 }
 0x317   : > { %2020 = vrsqrt.f32 %v985_v43  ;;  %v951_v24 = vmax.f32 %v935_v45, 0.0  ;;  %v818_v27 = vpop.xlane.xlu0 %817 }
 0x318   : > { %v950_v48 = vmax.f32 %v934_v23, 0.0  ;;  %v820_v28 = vpop.xlane.xlu1 %819  ;;  %v2836_v14 = vmul.f32 0.0078125, %v818_v27 }
 0x319   : > { %v983_v62 = vadd.f32 1e-05, %v951_v24  ;;  %v2838_v30 = vmul.f32 0.0078125, %v820_v28  ;;  %v968_v24 = vsub.f32 %v2684_v47, %v840_v21 }
 0x31a   : > { %v982_v55 = vadd.f32 1e-05, %v950_v48  ;;  %v924_v11 = vmul.f32 %v2836_v14, %v2836_v14 }
 0x31b   : > { %2022 = vrsqrt.f32 %v983_v62  ;;  %v814_v1 = vpop.xlane.xlu0 %813  ;;  %v925_v45 = vmul.f32 %v2838_v30, %v2838_v30 }
 0x31c   : > { %2024 = vrsqrt.f32 %v982_v55  ;;  %v816_v29 = vpop.xlane.xlu1 %815  ;;  %v2843_v18 = vmul.f32 0.0078125, %v814_v1 }
 0x31d   : > { %v2847_v27 = vmul.f32 0.0078125, %v816_v29  ;;  %v966_v29 = vsub.f32 %v2688_v51, %v2832_v36 }
 0x31e   : > { %v2019_v59 = vpop.eup %2018  ;;  %v922_v1 = vmul.f32 %v2843_v18, %v2843_v18 }
 0x31f   : > { %v883_v40 = vpop.xlane.xlu0 %882  ;;  %v1016_v55 = vmul.f32 %v2019_v59, %v968_v24  ;;  %v923_v47 = vmul.f32 %v2847_v27, %v2847_v27 }
 0x320   : > { %v908_v31 = vmul.f32 0.0078125, %v883_v40  ;;  %v885_v41 = vpop.xlane.xlu1 %884 }
 0x321   : > { %v2021_v43 = vpop.eup %2020  ;;  %v909_v23 = vmul.f32 0.0078125, %v885_v41 }
 0x322   : > { %v1017_v48 = vmul.f32 %v2021_v43, %v969_v8  ;;  %v940_v28 = vsub.f32 %v908_v31, %v924_v11  ;;  %v2857_v11 = vld [vmem:[#allocation10 + $0x3] ss:$0 sm:$0xff] }
 0x323   : > { %v941_v34 = vsub.f32 %v909_v23, %v925_v45  ;;  %v879_v62 = vpop.xlane.xlu0 %878 }
 0x324   : > { %v956_v40 = vmax.f32 %v940_v28, 0.0  ;;  %v906_v17 = vmul.f32 0.0078125, %v879_v62  ;;  %v881_v32 = vpop.xlane.xlu1 %880  ;;  %v1037_v41 = vmul.f32 %v2857_v11, %v1017_v48  ;;  %v2862_v62 = vld [vmem:[#allocation10 + $0x4] ss:$0 sm:$0xff] }
 0x325   : > { %v2023_v13 = vpop.eup %2022  ;;  %v957_v21 = vmax.f32 %v941_v34, 0.0  ;;  %v907_v8 = vmul.f32 0.0078125, %v881_v32  ;;  %v1036_v34 = vmul.f32 %v2857_v11, %v1016_v55 }
 0x326   : > { %v2025_v57 = vpop.eup %2024  ;;  %v988_v19 = vadd.f32 1e-05, %v956_v40  ;;  %v938_v59 = vsub.f32 %v906_v17, %v922_v1  ;;  %v1015_v31 = vmul.f32 %v2023_v13, %v967_v54  ;;  %v2869_v54 = vadd.f32 %v2862_v62, %v1037_v41 }
 0x327   : > { %v989_v43 = vadd.f32 1e-05, %v957_v21  ;;  %v939_v45 = vsub.f32 %v907_v8, %v923_v47  ;;  %v826_v23 = vpop.xlane.xlu0 %825  ;;  %v1014_v24 = vmul.f32 %v2025_v57, %v966_v29  ;;  %v2877_v21 = vadd.f32 %v2862_v62, %v1036_v34 }
 0x328   : > { %2026 = vrsqrt.f32 %v988_v19  ;;  %v954_v28 = vmax.f32 %v938_v59, 0.0  ;;  %v828_v51 = vpop.xlane.xlu1 %827  ;;  %v1035_v36 = vmul.f32 %v2857_v11, %v1015_v31  ;;  %v2874_v55 = vmul.f32 0.0078125, %v826_v23 }
 0x329   : > { %2028 = vrsqrt.f32 %v989_v43  ;;  %v955_v32 = vmax.f32 %v939_v45, 0.0  ;;  %v1034_v17 = vmul.f32 %v2857_v11, %v1014_v24  ;;  %v2879_v8 = vmul.f32 0.0078125, %v828_v51 }
 0x32a   : > { %v986_v13 = vadd.f32 1e-05, %v954_v28  ;;  %v2866_v48 = vadd.f32 %v2862_v62, %v1035_v36  ;;  %v1071_v19 = vpack.c.bf16 %v2869_v54, %v2877_v21  ;;  %v928_v31 = vmul.f32 %v2874_v55, %v2874_v55 }
 0x32b   : > { %v987_v1 = vadd.f32 1e-05, %v955_v32  ;;  %v822_v40 = vpop.xlane.xlu0 %821  ;;  %v2872_v29 = vadd.f32 %v2862_v62, %v1034_v17  ;;  %v972_v23 = vsub.f32 %v2720_v5, %v2836_v14  ;;  %v929_v24 = vmul.f32 %v2879_v8, %v2879_v8 }
 0x32c   : > { %2030 = vrsqrt.f32 %v986_v13  ;;  %v824_v47 = vpop.xlane.xlu1 %823  ;;  %v2887_v41 = vmul.f32 0.0078125, %v822_v40  ;;  %v973_v34 = vsub.f32 %v2731_v12, %v2838_v30 }
 0x32d   : > { %2032 = vrsqrt.f32 %v987_v1  ;;  %v1070_v57 = vpack.c.bf16 %v2866_v48, %v2872_v29  ;;  %v2893_v28 = vmul.f32 0.0078125, %v824_v47  ;;  %v970_v47 = vsub.f32 %v2737_v15, %v2843_v18 }
 0x32f   : > { %1852 = vmatprep.mubr.bf16.mxu1 %v1070_v57  ;;  %v891_v59 = vpop.xlane.xlu0 %890  ;;  %v926_v57 = vmul.f32 %v2887_v41, %v2887_v41 }
 0x330   : > { %v912_v43 = vmul.f32 0.0078125, %v891_v59  ;;  %v893_v45 = vpop.xlane.xlu1 %892  ;;  %1853 = vmatmul.mubr.bf16.vlgmr.msra.gmra.mrb[16].mxu1 %v1071_v19 }
 0x331   : > { %v913_v51 = vmul.f32 0.0078125, %v893_v45  ;;  %v927_v45 = vmul.f32 %v2893_v28, %v2893_v28 }
 0x332   : > { %v2027_v36 = vpop.eup %2026  ;;  %v944_v32 = vsub.f32 %v912_v43, %v928_v31  ;;  %v971_v31 = vsub.f32 %v2740_v16, %v2847_v27 }
 0x333   : > { %v2029_v17 = vpop.eup %2028  ;;  %v945_v13 = vsub.f32 %v913_v51, %v929_v24  ;;  %v887_v1 = vpop.xlane.xlu0 %886  ;;  %v1020_v40 = vmul.f32 %v2027_v36, %v972_v23 }
 0x334   : > { %v960_v19 = vmax.f32 %v944_v32, 0.0  ;;  %v910_v5 = vmul.f32 0.0078125, %v887_v1  ;;  %v889_v14 = vpop.xlane.xlu1 %888  ;;  %v1021_v59 = vmul.f32 %v2029_v17, %v973_v34 }
 0x335   : > { %v961_v20 = vmax.f32 %v945_v13, 0.0  ;;  %v911_v12 = vmul.f32 0.0078125, %v889_v14  ;;  %v1040_v34 = vmul.f32 %v2857_v11, %v1020_v40 }
 0x336   : > { %v2031_v30 = vpop.eup %2030  ;;  %v992_v43 = vadd.f32 1e-05, %v960_v19  ;;  %v942_v23 = vsub.f32 %v910_v5, %v926_v57  ;;  %v1041_v13 = vmul.f32 %v2857_v11, %v1021_v59 }
 0x337   : > { %v2033_v24 = vpop.eup %2032  ;;  %v993_v51 = vadd.f32 1e-05, %v961_v20  ;;  %v943_v36 = vsub.f32 %v911_v12, %v927_v45  ;;  %v834_v32 = vpop.xlane.xlu0 %833  ;;  %v1018_v1 = vmul.f32 %v2031_v30, %v970_v47  ;;  %v2913_v40 = vadd.f32 %v2862_v62, %v1040_v34 }
 0x338   : > { %2034 = vrsqrt.f32 %v992_v43  ;;  %v958_v15 = vmax.f32 %v942_v23, 0.0  ;;  %v836_v18 = vpop.xlane.xlu1 %835  ;;  %v1019_v17 = vmul.f32 %v2033_v24, %v971_v31  ;;  %v2921_v45 = vadd.f32 %v2862_v62, %v1041_v13 }
 0x339   : > { %2036 = vrsqrt.f32 %v993_v51  ;;  %v959_v14 = vmax.f32 %v943_v36, 0.0  ;;  %v1038_v25 = vmul.f32 %v2857_v11, %v1018_v1  ;;  %v2929_v43 = vmul.f32 0.0078125, %v834_v32 }
 0x33a   : > { %v990_v16 = vadd.f32 1e-05, %v958_v15  ;;  %v1039_v27 = vmul.f32 %v2857_v11, %v1019_v17  ;;  %v1073_v31 = vpack.c.bf16 %v2921_v45, %v2913_v40  ;;  %v976_v36 = vsub.f32 %v2760_v50, %v2874_v55 }
 0x33b   : > { %v991_v57 = vadd.f32 1e-05, %v959_v14  ;;  %v830_v20 = vpop.xlane.xlu0 %829  ;;  %v2910_v19 = vadd.f32 %v2862_v62, %v1038_v25  ;;  %v2935_v1 = vmul.f32 0.0078125, %v836_v18  ;;  %v977_v32 = vsub.f32 %v2771_v61, %v2879_v8 }
 0x33c   : > { %2038 = vrsqrt.f32 %v990_v16  ;;  %v2915_v5 = vmul.f32 0.0078125, %v830_v20  ;;  %v832_v47 = vpop.xlane.xlu1 %831  ;;  %v2918_v59 = vadd.f32 %v2862_v62, %v1039_v27  ;;  %v932_v20 = vmul.f32 %v2929_v43, %v2929_v43 }
 0x33d   : > { %2040 = vrsqrt.f32 %v991_v57  ;;  %v2923_v12 = vmul.f32 0.0078125, %v832_v47 }
 0x33e   : > { %v1072_v25 = vpack.c.bf16 %v2918_v59, %v2910_v19  ;;  %v930_v23 = vmul.f32 %v2915_v5, %v2915_v5 }
 0x33f   : > { %v895_v30 = vpop.xlane.xlu0 %894  ;;  %v931_v34 = vmul.f32 %v2923_v12, %v2923_v12 }
 0x340   : > { %v914_v24 = vmul.f32 0.0078125, %v895_v30  ;;  %v897_v51 = vpop.xlane.xlu1 %896  ;;  %1856 = vmatprep.mubr.bf16.mxu1 %v1072_v25  ;;  %v974_v25 = vsub.f32 %v2777_v2, %v2887_v41  ;;  %v933_v30 = vmul.f32 %v2935_v1, %v2935_v1 }
 0x341   : > { %v915_v15 = vmul.f32 0.0078125, %v897_v51  ;;  %1857 = vmatmul.mubr.bf16.gmra.mrb[20].mxu1 %v1073_v31 }
 0x342   : > { %v2035_v17 = vpop.eup %2034  ;;  %v946_v13 = vsub.f32 %v914_v24, %v930_v23  ;;  %v975_v23 = vsub.f32 %v2780_v4, %v2893_v28 }
 0x343   : > { %v2037_v14 = vpop.eup %2036  ;;  %v947_v16 = vsub.f32 %v915_v15, %v931_v34  ;;  %v899_v27 = vpop.xlane.xlu0 %898  ;;  %v1024_v57 = vmul.f32 %v2035_v17, %v976_v36 }
 0x344   : > { %v962_v50 = vmax.f32 %v946_v13, 0.0  ;;  %v916_v55 = vmul.f32 0.0078125, %v899_v27  ;;  %v901_v18 = vpop.xlane.xlu1 %900  ;;  %v1025_v47 = vmul.f32 %v2037_v14, %v977_v32 }
 0x345   : > { %v963_v31 = vmax.f32 %v947_v16, 0.0  ;;  %v917_v61 = vmul.f32 0.0078125, %v901_v18  ;;  %v1044_v36 = vmul.f32 %v2857_v11, %v1024_v57 }
 0x346   : > { %v2039_v8 = vpop.eup %2038  ;;  %v994_v24 = vadd.f32 1e-05, %v962_v50  ;;  %v948_v51 = vsub.f32 %v916_v55, %v932_v20  ;;  %v1045_v13 = vmul.f32 %v2857_v11, %v1025_v47 }
 0x347   : > { %v2041_v34 = vpop.eup %2040  ;;  %v995_v15 = vadd.f32 1e-05, %v963_v31  ;;  %v949_v17 = vsub.f32 %v917_v61, %v933_v30  ;;  %v1022_v32 = vmul.f32 %v2039_v8, %v974_v25  ;;  %v2957_v57 = vadd.f32 %v2862_v62, %v1044_v36 }
 0x348   : > { %2042 = vrsqrt.f32 %v994_v24  ;;  %v964_v2 = vmax.f32 %v948_v51, 0.0  ;;  %v1023_v41 = vmul.f32 %v2041_v34, %v975_v23  ;;  %v2960_v50 = vadd.f32 %v2862_v62, %v1045_v13 }
 0x349   : > { %2044 = vrsqrt.f32 %v995_v15  ;;  %v965_v14 = vmax.f32 %v949_v17, 0.0  ;;  %v1042_v16 = vmul.f32 %v2857_v11, %v1022_v32  ;;  %v978_v25 = vsub.f32 %v2817_v26, %v2915_v5 }
 0x34a   : > { %v996_v27 = vadd.f32 1e-05, %v964_v2  ;;  %v1043_v4 = vmul.f32 %v2857_v11, %v1023_v41  ;;  %v1075_v47 = vpack.c.bf16 %v2960_v50, %v2957_v57  ;;  %v979_v31 = vsub.f32 %v2820_v7, %v2923_v12  ;;  %v2997_v2 = vld [vmem:[#allocation10 + $0x2] ss:$0 sm:$0xff] }
 0x34b   : > { %v997_v28 = vadd.f32 1e-05, %v965_v14  ;;  %v2954_v20 = vadd.f32 %v2862_v62, %v1042_v16  ;;  %v980_v24 = vsub.f32 %v2800_v44, %v2929_v43  ;;  %v981_v34 = vsub.f32 %v2811_v58, %v2935_v1 }
 0x34c   : > { %2046 = vrsqrt.f32 %v996_v27  ;;  %v2963_v55 = vadd.f32 %v2862_v62, %v1043_v4 }
 0x34d   : > { %2048 = vrsqrt.f32 %v997_v28 }
 0x34e   : > { %v1074_v18 = vpack.c.bf16 %v2963_v55, %v2954_v20 }
 0x350   : > { %1860 = vmatprep.mubr.bf16.mxu1 %v1074_v18 }
 0x351   : > { %1861 = vmatmul.mubr.bf16.gmra.mrb[24].mxu1 %v1075_v47 }
 0x352   : > { %v2043_v30 = vpop.eup %2042 }
 0x353   : > { %v2045_v61 = vpop.eup %2044  ;;  %v1026_v8 = vmul.f32 %v2043_v30, %v978_v25 }
 0x354   : > { %v1027_v23 = vmul.f32 %v2045_v61, %v979_v31 }
 0x355   : > { %v1046_v51 = vmul.f32 %v2857_v11, %v1026_v8 }
 0x356   : > { %v2047_v36 = vpop.eup %2046  ;;  %v1047_v15 = vmul.f32 %v2857_v11, %v1027_v23 }
 0x357   : > { %v2049_v26 = vpop.eup %2048  ;;  %v2980_v5 = vadd.f32 %v2862_v62, %v1046_v51  ;;  %v1028_v17 = vmul.f32 %v2047_v36, %v980_v24 }
 0x358   : > { %v2983_v7 = vadd.f32 %v2862_v62, %v1047_v15  ;;  %v1029_v12 = vmul.f32 %v2049_v26, %v981_v34 }
 0x359   : > { %v1048_v32 = vmul.f32 %v2857_v11, %v1028_v17 }
 0x35a   : > { %v1076_v44 = vpack.c.bf16 %v2983_v7, %v2980_v5  ;;  %v1049_v43 = vmul.f32 %v2857_v11, %v1029_v12 }
 0x35b   : > { %v2990_v58 = vadd.f32 %v2862_v62, %v1048_v32 }
 0x35c   : > { %1864 = vmatprep.mubr.bf16.mxu1 %v1076_v44  ;;  %v2993_v1 = vadd.f32 %v2862_v62, %v1049_v43 }
 0x35e   : > { %v1077_v13 = vpack.c.bf16 %v2993_v1, %v2990_v58 }
 0x360   : > { %1865 = vmatmul.mubr.bf16.gmra.mrb[28].mxu1 %v1077_v13 }
 0x403   : > { %v1854_v41 = vpop.f32.mrb[16].mxu1 }
 0x404   : > { %v1185_v14 = vadd.f32 %v1854_v41, %v2642_v42  ;;  %v1176_v16 = vpop.f32.mrb[17].mxu1 }
 0x405   : > { %v1177_v27 = vadd.f32 %v1176_v16, %v2638_v35  ;;  %v1855_v11 = vpop.f32.mrb[18].mxu1 }
 0x406   : > { %v1245_v4 = vadd.f32 %v2997_v2, %v1185_v14  ;;  %v1188_v28 = vadd.f32 %v1855_v11, %v2644_v46  ;;  %v1179_v18 = vpop.f32.mrb[19].mxu1 }
 0x407   : > { %v1243_v62 = vadd.f32 %v2997_v2, %v1177_v27  ;;  %v1180_v47 = vadd.f32 %v1179_v18, %v2640_v39 }
 0x408   : > { %v1672_v25 = vmul.f32 -1.442695, %v1245_v4  ;;  %v1246_v30 = vadd.f32 %v2997_v2, %v1188_v28 }
 0x409   : > { %v1670_v31 = vmul.f32 -1.442695, %v1243_v62  ;;  %v1244_v61 = vadd.f32 %v2997_v2, %v1180_v47  ;;  %v1358_v62 = vsub.f32 %v2869_v54, %v2681_v33 }
 0x40a   : > { %2050 = vpow2.f32 %v1672_v25  ;;  %v1673_v42 = vmul.f32 -1.442695, %v1246_v30  ;;  %v1356_v30 = vsub.f32 %v2866_v48, %v2693_v52 }
 0x40b   : > { %2052 = vpow2.f32 %v1670_v31  ;;  %v1671_v35 = vmul.f32 -1.442695, %v1244_v61 }
 0x40c   : > { %2054 = vpow2.f32 %v1673_v42 }
 0x40d   : > { %2056 = vpow2.f32 %v1671_v35 }
 0x414   : > { %v2051_v8 = vpop.eup %2050  ;;  %v1858_v23 = vpop.f32.mrb[20].mxu1 }
 0x415   : > { %v2053_v46 = vpop.eup %2052  ;;  %v1309_v24 = vadd.f32 1.0, %v2051_v8  ;;  %v1201_v51 = vadd.f32 %v1858_v23, %v2650_v56  ;;  %v1192_v36 = vpop.f32.mrb[21].mxu1 }
 0x416   : > { %v2055_v39 = vpop.eup %2054  ;;  %v1307_v34 = vadd.f32 1.0, %v2053_v46  ;;  %v1193_v15 = vadd.f32 %v1192_v36, %v2646_v49  ;;  %v1859_v26 = vpop.f32.mrb[22].mxu1 }
 0x417   : > { %v2057_v17 = vpop.eup %2056  ;;  %2058 = vrcp.f32 %v1309_v24  ;;  %v1310_v12 = vadd.f32 1.0, %v2055_v39  ;;  %v1249_v32 = vadd.f32 %v2997_v2, %v1201_v51  ;;  %v1204_v44 = vadd.f32 %v1859_v26, %v2652_v60  ;;  %v1195_v43 = vpop.f32.mrb[23].mxu1 }
 0x418   : > { %2060 = vrcp.f32 %v1307_v34  ;;  %v1308_v13 = vadd.f32 1.0, %v2057_v17  ;;  %v1247_v41 = vadd.f32 %v2997_v2, %v1193_v15  ;;  %v1196_v56 = vadd.f32 %v1195_v43, %v2648_v53 }
 0x419   : > { %2062 = vrcp.f32 %v1310_v12  ;;  %v1676_v14 = vmul.f32 -1.442695, %v1249_v32  ;;  %v1250_v16 = vadd.f32 %v2997_v2, %v1204_v44  ;;  %v1357_v60 = vsub.f32 %v2877_v21, %v2673_v37 }
 0x41a   : > { %2064 = vrcp.f32 %v1308_v13  ;;  %v1674_v49 = vmul.f32 -1.442695, %v1247_v41  ;;  %v1248_v27 = vadd.f32 %v2997_v2, %v1196_v56  ;;  %v1355_v53 = vsub.f32 %v2872_v29, %v2676_v38 }
 0x41b   : > { %2066 = vpow2.f32 %v1676_v14  ;;  %v1677_v11 = vmul.f32 -1.442695, %v1250_v16  ;;  %v1361_v16 = vsub.f32 %v2913_v40, %v2709_v22 }
 0x41c   : > { %2068 = vpow2.f32 %v1674_v49  ;;  %v1675_v4 = vmul.f32 -1.442695, %v1248_v27  ;;  %v1359_v27 = vsub.f32 %v2910_v19, %v2724_v9 }
 0x41d   : > { %2070 = vpow2.f32 %v1677_v11 }
 0x41e   : > { %2072 = vpow2.f32 %v1675_v4 }
 0x421   : > { %v2059_v28 = vpop.eup %2058 }
 0x422   : > { %v2061_v18 = vpop.eup %2060  ;;  %v1373_v47 = vmul.f32 %v2059_v28, %v1357_v60 }
 0x423   : > { %v2063_v25 = vpop.eup %2062  ;;  %v1371_v31 = vmul.f32 %v2061_v18, %v1355_v53  ;;  %v3196_v53 = vld [vmem:[#allocation20_spill] sm:$0xff] }
 0x424   : > { %v2065_v61 = vpop.eup %2064  ;;  %v1374_v42 = vmul.f32 %v2063_v25, %v1358_v62  ;;  %v1862_v35 = vpop.f32.mrb[24].mxu1  ;;  %v1389_v21 = vadd.f32 %v1373_v47, %v2673_v37  ;;  %v1360_v18 = vsub.f32 %v2918_v59, %v3196_v53  ;;  %v3197_v47 = vld [vmem:[#allocation18_spill] sm:$0xff] }
 0x425   : > { %v2067_v8 = vpop.eup %2066  ;;  %v1372_v23 = vmul.f32 %v2065_v61, %v1356_v30  ;;  %v1217_v46 = vadd.f32 %v1862_v35, %v2658_v6  ;;  %v1208_v29 = vpop.f32.mrb[25].mxu1  ;;  %v1387_v51 = vadd.f32 %v1371_v31, %v2676_v38 }
 0x426   : > { %v2069_v24 = vpop.eup %2068  ;;  %v1390_v54 = vadd.f32 %v1374_v42, %v2681_v33  ;;  %v1313_v36 = vadd.f32 1.0, %v2067_v8  ;;  %v1209_v39 = vadd.f32 %v1208_v29, %v2654_v63  ;;  %v1863_v48 = vpop.f32.mrb[26].mxu1  ;;  %v3198_v42 = vld [vmem:[#allocation16_spill] sm:$0xff] }
 0x427   : > { %v2071_v34 = vpop.eup %2070  ;;  %v1388_v15 = vadd.f32 %v1372_v23, %v2693_v52  ;;  %v1311_v26 = vadd.f32 1.0, %v2069_v24  ;;  %v1253_v37 = vadd.f32 %v2997_v2, %v1217_v46  ;;  %v1220_v17 = vadd.f32 %v1863_v48, %v2660_v10  ;;  %v1211_v6 = vpop.f32.mrb[27].mxu1  ;;  %v3199_v46 = vld [vmem:[#allocation19_spill] sm:$0xff] }
 0x428   : > { %v2073_v12 = vpop.eup %2072  ;;  %v1733_v32 = vpack.c.bf16 %v1390_v54, %v1389_v21  ;;  %2074 = vrcp.f32 %v1313_v36  ;;  %v1314_v38 = vadd.f32 1.0, %v2071_v34  ;;  %v1251_v33 = vadd.f32 %v2997_v2, %v1209_v39  ;;  %v3200_v36 = vld [vmem:[#allocation17_spill] sm:$0xff] }
 0x429   : > { %v1728_v44 = vpack.c.bf16 %v1388_v15, %v1387_v51  ;;  %2076 = vrcp.f32 %v1311_v26  ;;  %v1312_v63 = vadd.f32 1.0, %v2073_v12  ;;  %v1680_v43 = vmul.f32 -1.442695, %v1253_v37 }
 0x42a   : > { %1765 = vst [vmem:[%s3034_s24 + $0x8] sm:$0xff] %v1733_v32   ;;  %2078 = vrcp.f32 %v1314_v38  ;;  %v1678_v52 = vmul.f32 -1.442695, %v1251_v33  ;;  %v1254_v10 = vadd.f32 %v2997_v2, %v1220_v17  ;;  %v1212_v13 = vadd.f32 %v1211_v6, %v2656_v3 }
 0x42b   : > { %1729 = vst [vmem:[%s3034_s24] sm:$0xff] %v1728_v44   ;;  %2080 = vrcp.f32 %v1312_v63  ;;  %v1362_v3 = vsub.f32 %v2921_v45, %v2716_v0  ;;  %v3201_v63 = vld [vmem:[#allocation21_spill] sm:$0xff] }
 0x42c   : > { %2082 = vpow2.f32 %v1680_v43  ;;  %v1681_v41 = vmul.f32 -1.442695, %v1254_v10  ;;  %v1252_v56 = vadd.f32 %v2997_v2, %v1212_v13  ;;  %v1365_v43 = vsub.f32 %v2957_v57, %v3201_v63  ;;  %v3202_v10 = vld [vmem:[#allocation23_spill] sm:$0xff] }
 0x42d   : > { %2084 = vpow2.f32 %v1678_v52  ;;  %v1363_v13 = vsub.f32 %v2954_v20, %v3202_v10 }
 0x42e   : > { %2086 = vpow2.f32 %v1681_v41  ;;  %v1679_v14 = vmul.f32 -1.442695, %v1252_v56 }
 0x430   : > { %2088 = vpow2.f32 %v1679_v14 }
 0x432   : > { %v2075_v49 = vpop.eup %2074 }
 0x433   : > { %v2077_v11 = vpop.eup %2076  ;;  %v1377_v4 = vmul.f32 %v2075_v49, %v1361_v16  ;;  %v1866_v60 = vpop.f32.mrb[28].mxu1 }
 0x434   : > { %v2079_v28 = vpop.eup %2078  ;;  %v1375_v62 = vmul.f32 %v2077_v11, %v1359_v27  ;;  %v1233_v25 = vadd.f32 %v1866_v60, %v3197_v47  ;;  %v1224_v30 = vpop.f32.mrb[29].mxu1  ;;  %v3204_v11 = vld [vmem:[#allocation24_spill] sm:$0xff] }
 0x435   : > { %v2081_v31 = vpop.eup %2080  ;;  %v1393_v40 = vadd.f32 %v1377_v4, %v2709_v22  ;;  %v1378_v61 = vmul.f32 %v2079_v28, %v1362_v3  ;;  %v1225_v19 = vadd.f32 %v1224_v30, %v3198_v42  ;;  %v1867_v35 = vpop.f32.mrb[30].mxu1  ;;  %v1364_v3 = vsub.f32 %v2963_v55, %v3204_v11  ;;  %v3205_v42 = vld [vmem:[#allocation25_spill] sm:$0xff] }
 0x436   : > { %v2083_v8 = vpop.eup %2082  ;;  %v1391_v45 = vadd.f32 %v1375_v62, %v2724_v9  ;;  %v1376_v21 = vmul.f32 %v2081_v31, %v1360_v18  ;;  %v1257_v23 = vadd.f32 %v2997_v2, %v1233_v25  ;;  %v1236_v29 = vadd.f32 %v1867_v35, %v3199_v46  ;;  %v1227_v59 = vpop.f32.mrb[31].mxu1  ;;  %v3207_v46 = vld [vmem:[#allocation26_spill] sm:$0xff] }
 0x437   : > { %v2085_v24 = vpop.eup %2084  ;;  %v1394_v51 = vadd.f32 %v1378_v61, %v2716_v0  ;;  %v1317_v54 = vadd.f32 1.0, %v2083_v8  ;;  %v1255_v22 = vadd.f32 %v2997_v2, %v1225_v19  ;;  %v1228_v39 = vadd.f32 %v1227_v59, %v3200_v36  ;;  %v3206_v8 = vld [vmem:[#allocation27_spill] sm:$0xff] }
 0x438   : > { %v2087_v48 = vpop.eup %2086  ;;  %v1392_v34 = vadd.f32 %v1376_v21, %v3196_v53  ;;  %v1315_v9 = vadd.f32 1.0, %v2085_v24  ;;  %v1684_v15 = vmul.f32 -1.442695, %v1257_v23  ;;  %v1258_v26 = vadd.f32 %v2997_v2, %v1236_v29  ;;  %v3208_v24 = vld [vmem:[#allocation28_spill] sm:$0xff] }
 0x439   : > { %v1743_v37 = vpack.c.bf16 %v1394_v51, %v1393_v40  ;;  %2090 = vrcp.f32 %v1317_v54  ;;  %v1318_v17 = vadd.f32 1.0, %v2087_v48  ;;  %v1682_v0 = vmul.f32 -1.442695, %v1255_v22 }
 0x43a   : > { %v2089_v6 = vpop.eup %2088  ;;  %v1738_v12 = vpack.c.bf16 %v1392_v34, %v1391_v45  ;;  %2092 = vrcp.f32 %v1315_v9  ;;  %v1256_v32 = vadd.f32 %v2997_v2, %v1228_v39  ;;  %v1685_v33 = vmul.f32 -1.442695, %v1258_v26  ;;  %v3203_v2 = vld [vmem:[#allocation22_spill] sm:$0xff] }
 0x43b   : > { %1767 = vst [vmem:[%s3034_s24 + $0x18] sm:$0xff] %v1743_v37   ;;  %2094 = vrcp.f32 %v1318_v17  ;;  %v1316_v38 = vadd.f32 1.0, %v2089_v6  ;;  %v1366_v56 = vsub.f32 %v2960_v50, %v3203_v2  ;;  %v1369_v19 = vsub.f32 %v2990_v58, %v3205_v42 }
 0x43c   : > { %1766 = vst [vmem:[%s3034_s24 + $0x10] sm:$0xff] %v1738_v12   ;;  %2096 = vpow2.f32 %v1684_v15  ;;  %v1683_v44 = vmul.f32 -1.442695, %v1256_v32  ;;  %v1367_v45 = vsub.f32 %v2980_v5, %v3206_v8  ;;  %v1370_v29 = vsub.f32 %v2993_v1, %v3207_v46 }
 0x43d   : > { %2098 = vrcp.f32 %v1316_v38  ;;  %v1368_v51 = vsub.f32 %v2983_v7, %v3208_v24 }
 0x43e   : > { %2100 = vpow2.f32 %v1682_v0 }
 0x43f   : > { %2102 = vpow2.f32 %v1685_v33 }
 0x440   : > { %2104 = vpow2.f32 %v1683_v44 }
 0x443   : > { %v2091_v52 = vpop.eup %2090 }
 0x444   : > { %v2093_v41 = vpop.eup %2092  ;;  %v1381_v14 = vmul.f32 %v2091_v52, %v1365_v43 }
 0x445   : > { %v2095_v16 = vpop.eup %2094  ;;  %v1379_v49 = vmul.f32 %v2093_v41, %v1363_v13 }
 0x446   : > { %v2097_v27 = vpop.eup %2096  ;;  %v1382_v4 = vmul.f32 %v2095_v16, %v1366_v56  ;;  %v1397_v53 = vadd.f32 %v1381_v14, %v3201_v63 }
 0x447   : > { %v2099_v60 = vpop.eup %2098  ;;  %v1321_v28 = vadd.f32 1.0, %v2097_v27  ;;  %v1395_v25 = vadd.f32 %v1379_v49, %v3202_v10 }
 0x448   : > { %v2101_v57 = vpop.eup %2100  ;;  %v1398_v20 = vadd.f32 %v1382_v4, %v3203_v2  ;;  %v1380_v18 = vmul.f32 %v2099_v60, %v1364_v3 }
 0x449   : > { %v2103_v62 = vpop.eup %2102  ;;  %2106 = vrcp.f32 %v1321_v28  ;;  %v1319_v50 = vadd.f32 1.0, %v2101_v57 }
 0x44a   : > { %v2105_v47 = vpop.eup %2104  ;;  %v1753_v30 = vpack.c.bf16 %v1398_v20, %v1397_v53  ;;  %v1396_v55 = vadd.f32 %v1380_v18, %v3204_v11  ;;  %v1322_v31 = vadd.f32 1.0, %v2103_v62 }
 0x44b   : > { %2108 = vrcp.f32 %v1319_v50  ;;  %v1320_v40 = vadd.f32 1.0, %v2105_v47 }
 0x44c   : > { %1769 = vst [vmem:[%s3034_s24 + $0x28] sm:$0xff] %v1753_v30   ;;  %v1748_v61 = vpack.c.bf16 %v1396_v55, %v1395_v25  ;;  %2110 = vrcp.f32 %v1322_v31 }
 0x44d   : > { %2112 = vrcp.f32 %v1320_v40 }
 0x44e   : > { %1768 = vst [vmem:[%s3034_s24 + $0x20] sm:$0xff] %v1748_v61  }
 0x453   : > { %v2107_v35 = vpop.eup %2106 }
 0x454   : > { %v1385_v21 = vmul.f32 %v2107_v35, %v1369_v19 }
 0x455   : > { %v2109_v23 = vpop.eup %2108 }
 0x456   : > { %v2111_v59 = vpop.eup %2110  ;;  %v1383_v54 = vmul.f32 %v2109_v23, %v1367_v45  ;;  %v1401_v5 = vadd.f32 %v1385_v21, %v3205_v42 }
 0x457   : > { %v2113_v22 = vpop.eup %2112  ;;  %v1386_v36 = vmul.f32 %v2111_v59, %v1370_v29 }
 0x458   : > { %v1384_v58 = vmul.f32 %v2113_v22, %v1368_v51  ;;  %v1399_v1 = vadd.f32 %v1383_v54, %v3206_v8 }
 0x459   : > { %v1402_v39 = vadd.f32 %v1386_v36, %v3207_v46 }
 0x45a   : > { %v1400_v48 = vadd.f32 %v1384_v58, %v3208_v24 }
 0x45b   : > { %v1763_v34 = vpack.c.bf16 %v1402_v39, %v1401_v5 }
 0x45c   : > { %v1758_v7 = vpack.c.bf16 %v1400_v48, %v1399_v1 }
 0x45d   : > { %1771 = vst [vmem:[%s3034_s24 + $0x38] sm:$0xff] %v1763_v34  }
 0x45e   : > { %1770 = vst [vmem:[%s3034_s24 + $0x30] sm:$0xff] %v1758_v7  }
 0x45f   : > { %2269 = shalt.err (!%p2266_p13)
}
 0x460   : > { %s2270_s29 = scalar_lea.hbm %s3094_s7, 1024  ;;  %s2274_s10 = scalar_lea.hbm %s3147_s5, 2048 }
 0x461   : > { %p2271_p0 = scmp.ne.s32.totalorder %s3094_s7, %s2270_s29  ;;  %p2275_p1 = scmp.lt.u32.totalorder %s3094_s7, %s3147_s5 }
 0x462   : > { %p2276_p2 = scmp.lt.u32.totalorder %s2274_s10, %s2270_s29  ;;  %p2278_p8 = scmp.lt.u32.totalorder %s2270_s29, %s3094_s7 }
 0x463   : > { %p2272_p5 = pnand %p2271_p0, %p2523_p6 }
 0x464   : > { %p2277_p4 = por %p2276_p2, %p2275_p1 }
 0x465   : > { %p2273_p11 = pneg %p2272_p5 }
 0x466   : > { %p2279_p10 = por %p2278_p8, %p2277_p4 }
 0x468   : > { %p2280_p12 = pnand %p2279_p10, %p2273_p11 }
 0x46a   : > { %2283 = shalt.err (!%p2280_p12)
}
 0x46b   : > { %s2343_s26 = smov 64   ;;  %s2344_s17 = smov 4  }
 0x46c   : > { %1886 = dma.vmem_to_hbm [thread:$0]  (%p2523_p6), %s3096_s16, 1024, %s3094_s7, %s1484_s22, %s2343_s26, %s2343_s26, %s2344_s17  }
 0x46d PF: > { %s1512_s13 = sand.u32 1, %s2318_s18   ;;  %p3209_p3 = scmp.ne.s32.totalorder %s3170_s25, 0 }
 0x46e   : > { %p3210_p7 = scmp.ge.s32.totalorder %s2330_s21, 2  ;;  %s1513_s6 = scalar_lea.sflag [#allocation4], %s1512_s13 }
 0x470   : > { %p1906_p9 = pnand %p3210_p7, %p3209_p3 }
 0x472   : > { %2313 = dma.done.wait (!%p1906_p9), %s1513_s6, 1024  }
 0x473   : > { %2315 = vsyncadd (!%p1906_p9), %s1513_s6, 4294966272  ;;  %p20_p13 = scmp.ge.s32.totalorder %s2513_s12, 4   ;;  %s3211_s18 = smov %s2322_s19 }
 0x474   : > { %s3212_s19 = smov %s2326_s20  ;;  %s3213_s20 = smov %s2529_s30 }
 0x475   : > { %s3214_s21 = smov %s2513_s12  ;;  %22 = sbr.rel (!%p20_p13) target bundleno = 7 (0x7), region = 101 }
 0x47c   :  { %1518 = vsyncpa [#allocation3], 1 }
 0x47d   :  { %1520 = vsyncpa [#allocation3 + $0x1], 1 }
 0x47e   :  { %1521 = vsyncpa [#allocation6], 1 }
 0x47f   :  { %1522 = vsyncpa [#allocation9], 1 }
 0x480   :  { %1523 = vsyncpa [#allocation4], 1 }
 0x481   :  { %1525 = vsyncpa [#allocation4 + $0x1], 1 }

</bundles_post_ra>
